<compile_context>
chip_gen: v7x
topology: tpu7x:2x2x1
jax: 0.10.0
libtpu: 0.0.40
codegen_flags: <defaults>
</compile_context>

<pallas_src>
import functools

import jax
import jax.numpy as jnp
from jax import lax
from jax.experimental import pallas as pl
from jax.experimental.pallas import tpu as pltpu

LN_EPS = 1e-5   # nn.LayerNorm default eps
BN_EPS = 1e-5   # nn.BatchNorm1d default eps (kept separate on purpose)


def _round_up(n, m):
    return ((n + m - 1) // m) * m


def _layernorm(x, w, b):
    # PyTorch LayerNorm: biased variance over last dim.
    mu = jnp.mean(x, axis=-1, keepdims=True)
    xc = x - mu
    var = jnp.mean(xc * xc, axis=-1, keepdims=True)
    inv = lax.rsqrt(var + LN_EPS)
    return xc * inv * w + b


def oprnet_kernel(
    x_ref,                   # (TB, D)           f32   flattened features tile
    ln1_w_ref, ln1_b_ref,    # (1, D)            f32
    w1_ref,                  # (D, BASE)         bf16
    b1_ref,                  # (1, BASE)         f32
    ln2_w_ref, ln2_b_ref,    # (1, BASE)         f32
    w_heads_ref,             # (BASE, HEAD_PAD)  bf16  [wc | wa | 0-pad]
    b_heads_ref,             # (1, HEAD_PAD)     f32
    ws1_ref,                 # (BASE, BASE)      bf16
    bs1_ref,                 # (1, BASE)         f32
    ws2_row_ref,             # (1, BASE)         f32   (BN scale & /10 folded in)
    bs2_ref,                 # (1, 1)            f32   (folded)
    out_ref,                 # (TB, HEAD_PAD)    f32   [pred | aux | sel | 0-pad]
    *,
    sel_col: int,
):
    x = x_ref[...].astype(jnp.float32)

    # preparation: Flatten (glue) -> Dropout(eval=id) -> LN -> Linear -> LN -> ReLU
    h = _layernorm(x, ln1_w_ref[...], ln1_b_ref[...])
    z = jnp.dot(h.astype(jnp.bfloat16), w1_ref[...],
                preferred_element_type=jnp.float32) + b1_ref[...]
    z = _layernorm(z, ln2_w_ref[...], ln2_b_ref[...])
    z = jnp.maximum(z, 0.0)
    z_bf = z.astype(jnp.bfloat16)

    # classifier + aux_classifier: one lane-dense MXU pass
    heads = jnp.dot(z_bf, w_heads_ref[...],
                    preferred_element_type=jnp.float32) + b_heads_ref[...]

    # selector: Linear -> ReLU -> (BN + /10 folded) -> Linear(.,1) -> Sigmoid
    s = jnp.dot(z_bf, ws1_ref[...],
                preferred_element_type=jnp.float32) + bs1_ref[...]
    s = jnp.maximum(s, 0.0)
    # N=1 matmul replaced by VPU multiply + lane reduction (folded ws2 row)
    sel_logit = jnp.sum(s * ws2_row_ref[...], axis=-1, keepdims=True) + bs2_ref[...]
    sel = jax.nn.sigmoid(sel_logit)

    # single lane-dense store: drop sel into column `sel_col`
    col = lax.broadcasted_iota(jnp.int32, heads.shape, 1)
    out_ref[...] = jnp.where(col == sel_col, sel, heads).astype(out_ref.dtype)


def oprnet_forward(x_raw, packed):
    """x_raw: (B, C, H, W) NCHW input (features == identity -> flattened)."""
    B = x_raw.shape[0]
    x = x_raw.reshape(B, -1).astype(jnp.float32)        # nn.Flatten()
    D = x.shape[1]
    num_classes = packed["num_classes"]
    base_dim = packed["w1"].shape[1]
    head_pad = packed["w_heads"].shape[1]
    sel_col = 2 * num_classes

    # Batch tiling: TB multiple of 8 (f32 sublane); pad B so the grid is exact.
    if B <= 256:
        TB = _round_up(B, 8)
    else:
        TB = 256
    B_pad = _round_up(B, TB)
    if B_pad != B:
        x = jnp.pad(x, ((0, B_pad - B), (0, 0)))

    grid = (B_pad // TB,)

    def resident(shape):
        # Weight stays in VMEM across all batch tiles (constant block index).
        return pl.BlockSpec(shape, lambda i: (0, 0))

    in_specs = [
        pl.BlockSpec((TB, D), lambda i: (i, 0)),           # x (pipelined over batch)
        resident((1, D)), resident((1, D)),                # ln1 w/b
        resident((D, base_dim)), resident((1, base_dim)),  # w1, b1
        resident((1, base_dim)), resident((1, base_dim)),  # ln2 w/b
        resident((base_dim, head_pad)), resident((1, head_pad)),   # fused heads
        resident((base_dim, base_dim)), resident((1, base_dim)),   # ws1, bs1
        resident((1, base_dim)),                           # ws2 row (folded)
        resident((1, 1)),                                  # bs2 (folded)
    ]

    out = pl.pallas_call(
        functools.partial(oprnet_kernel, sel_col=sel_col),
        grid=grid,
        in_specs=in_specs,
        out_specs=pl.BlockSpec((TB, head_pad), lambda i: (i, 0)),
        out_shape=jax.ShapeDtypeStruct((B_pad, head_pad), jnp.float32),
        compiler_params=pltpu.CompilerParams(
            # "parallel": lets v7x's 2 TensorCores split the batch tiles;
            # no-op on v5e/v6e (1 TC).
            dimension_semantics=("parallel",),
            # 48 MiB: above the 16/32 MiB scoped defaults, leaves headroom on
            # v7x's 64 MiB physical VMEM.
            vmem_limit_bytes=48 << 20,
        ),
    )(
        x,
        packed["ln1_w"], packed["ln1_b"],
        packed["w1"], packed["b1"],
        packed["ln2_w"], packed["ln2_b"],
        packed["w_heads"], packed["b_heads"],
        packed["ws1"], packed["bs1"],
        packed["ws2_row"], packed["bs2"],
    )

    pred = out[:B, :num_classes]
    aux = out[:B, num_classes:2 * num_classes]
    sel = out[:B, sel_col:sel_col + 1]
    return pred, sel, aux


def init_params(key, dim_features, base_dim, num_classes):
    """Raw parameters mirroring the PyTorch module (eval mode)."""
    ks = jax.random.split(key, 5)
    std = 0.01      # _initialize_weights: Linear ~ N(0, 0.01), bias = 0
    f32 = jnp.float32
    return {
        "ln1_w": jnp.ones((dim_features,), f32),
        "ln1_b": jnp.zeros((dim_features,), f32),
        "w1": std * jax.random.normal(ks[0], (dim_features, base_dim), f32),
        "b1": jnp.zeros((base_dim,), f32),
        "ln2_w": jnp.ones((base_dim,), f32),
        "ln2_b": jnp.zeros((base_dim,), f32),
        "wc": std * jax.random.normal(ks[1], (base_dim, num_classes), f32),
        "bc": jnp.zeros((num_classes,), f32),
        "ws1": std * jax.random.normal(ks[2], (base_dim, base_dim), f32),
        "bs1": jnp.zeros((base_dim,), f32),
        "ws2": std * jax.random.normal(ks[3], (base_dim, 1), f32),
        "bs2": jnp.zeros((1,), f32),
        "wa": std * jax.random.normal(ks[4], (base_dim, num_classes), f32),
        "ba": jnp.zeros((num_classes,), f32),
        # BatchNorm1d(base_dim) eval-mode stats (fresh): weight=1, bias=0,
        # running_mean=0, running_var=1.
        "bn_w": jnp.ones((base_dim,), f32),
        "bn_b": jnp.zeros((base_dim,), f32),
        "bn_mean": jnp.zeros((base_dim,), f32),
        "bn_var": jnp.ones((base_dim,), f32),
    }


def fold_and_pack(p, num_classes):
    """One-time constant folding + packing into the kernel's parameter layout."""
    f32, bf16 = jnp.float32, jnp.bfloat16
    dim_features, base_dim = p["w1"].shape

    # Fold BatchNorm1d (eval, its own eps) + the /10 LambdaLayer into ws2/bs2:
    #   ((relu(s)*scale + shift) * 0.1) @ ws2 + bs2
    #     = relu(s) @ (ws2 * scale[:,None] * 0.1) + ((shift*0.1) @ ws2 + bs2)
    scale = p["bn_w"] / jnp.sqrt(p["bn_var"] + BN_EPS)
    shift = p["bn_b"] - p["bn_mean"] * scale
    ws2_folded = p["ws2"][:, 0] * scale * 0.1                          # (base_dim,)
    bs2_folded = p["bs2"][0] + jnp.dot(shift * 0.1, p["ws2"][:, 0])    # scalar

    # Fuse classifier + aux_classifier into one lane-dense head (>=128 wide).
    head_used = 2 * num_classes + 1                 # [pred | aux | sel slot]
    head_pad = _round_up(max(head_used, 128), 128)
    w_heads = jnp.zeros((base_dim, head_pad), f32)
    w_heads = w_heads.at[:, :num_classes].set(p["wc"])
    w_heads = w_heads.at[:, num_classes:2 * num_classes].set(p["wa"])
    b_heads = jnp.zeros((1, head_pad), f32)
    b_heads = b_heads.at[0, :num_classes].set(p["bc"])
    b_heads = b_heads.at[0, num_classes:2 * num_classes].set(p["ba"])

    return {
        "num_classes": num_classes,
        "ln1_w": p["ln1_w"].reshape(1, dim_features),
        "ln1_b": p["ln1_b"].reshape(1, dim_features),
        "w1": p["w1"].astype(bf16),
        "b1": p["b1"].reshape(1, base_dim),
        "ln2_w": p["ln2_w"].reshape(1, base_dim),
        "ln2_b": p["ln2_b"].reshape(1, base_dim),
        "w_heads": w_heads.astype(bf16),
        "b_heads": b_heads,
        "ws1": p["ws1"].astype(bf16),
        "bs1": p["bs1"].reshape(1, base_dim),
        "ws2_row": ws2_folded.reshape(1, base_dim),
        "bs2": bs2_folded.reshape(1, 1).astype(f32),
    }


def oprnet_reference(x_raw, p):
    """Pure-JAX f32 reference of the PyTorch forward (eval mode)."""
    x = x_raw.reshape(x_raw.shape[0], -1)

    def ln(v, w, b):
        mu = v.mean(-1, keepdims=True)
        var = ((v - mu) ** 2).mean(-1, keepdims=True)
        return (v - mu) / jnp.sqrt(var + LN_EPS) * w + b

    h = ln(x, p["ln1_w"], p["ln1_b"])
    z = h @ p["w1"] + p["b1"]
    z = jnp.maximum(ln(z, p["ln2_w"], p["ln2_b"]), 0.0)

    pred = z @ p["wc"] + p["bc"]
    s = jnp.maximum(z @ p["ws1"] + p["bs1"], 0.0)
    s = (s - p["bn_mean"]) / jnp.sqrt(p["bn_var"] + BN_EPS) * p["bn_w"] + p["bn_b"]
    s = s / 10.0
    sel = jax.nn.sigmoid(s @ p["ws2"] + p["bs2"])
    aux = z @ p["wa"] + p["ba"]
    return pred, sel, aux


if __name__ == "__main__":
    # TODO(synk): `features` (CNN_LSTM) is an externally injected module with no
    # definition in this file; it is modeled as identity so dim_features = C*H*W.
    # Dropout is inference-mode identity; BatchNorm1d uses running stats.
    B, C, H, W = 2, 4, 16, 16
    dim_features = C * H * W        # 1024
    base_dim = 1024                 # fixed in the module
    num_classes = 10

    key = jax.random.PRNGKey(0)
    k_x, k_p = jax.random.split(key)
    x = jax.random.normal(k_x, (B, C, H, W), jnp.float32)

    raw_params = init_params(k_p, dim_features, base_dim, num_classes)
    packed = fold_and_pack(raw_params, num_classes)

    pred, sel, aux = oprnet_forward(x, packed)
    jax.block_until_ready((pred, sel, aux))

    assert pred.shape == (B, num_classes)
    assert sel.shape == (B, 1)
    assert aux.shape == (B, num_classes)

    # Correctness vs f32 reference (bf16 MXU operands -> relative tolerance).
    pred_r, sel_r, aux_r = oprnet_reference(x, raw_params)
    assert jnp.allclose(pred, pred_r, rtol=5e-2, atol=2e-2)
    assert jnp.allclose(sel, sel_r, rtol=5e-2, atol=2e-2)
    assert jnp.allclose(aux, aux_r, rtol=5e-2, atol=2e-2)

    print("KERNEL_OK")
</pallas_src>

<mosaic_0001>
module attributes {stable_mosaic.version = 11 : i64} {
  func.func @oprnet_kernel(%arg0: i32, %arg1: memref<8x1024xf32, #tpu.memory_space<vmem>>, %arg2: memref<1x1024xf32, #tpu.memory_space<vmem>>, %arg3: memref<1x1024xf32, #tpu.memory_space<vmem>>, %arg4: memref<1024x1024xbf16, #tpu.memory_space<vmem>>, %arg5: memref<1x1024xf32, #tpu.memory_space<vmem>>, %arg6: memref<1x1024xf32, #tpu.memory_space<vmem>>, %arg7: memref<1x1024xf32, #tpu.memory_space<vmem>>, %arg8: memref<1024x128xbf16, #tpu.memory_space<vmem>>, %arg9: memref<1x128xf32, #tpu.memory_space<vmem>>, %arg10: memref<1024x1024xbf16, #tpu.memory_space<vmem>>, %arg11: memref<1x1024xf32, #tpu.memory_space<vmem>>, %arg12: memref<1x1024xf32, #tpu.memory_space<vmem>>, %arg13: memref<1x1xf32, #tpu.memory_space<vmem>>, %arg14: memref<8x128xf32, #tpu.memory_space<vmem>>) attributes {dimension_semantics = [#tpu.dimension_semantics<parallel>], iteration_bounds = array<i64: 1>, scalar_prefetch = 0 : i64, scratch_operands = 0 : i64, tpu.core_type = #tpu.core_type<tc>, window_params = [{transform_indices = @transform_0, window_bounds = array<i64: 8, 1024>}, {pipeline_mode = #tpu.pipeline_mode<synchronous>, transform_indices = @transform_1, window_bounds = array<i64: 1, 1024>}, {pipeline_mode = #tpu.pipeline_mode<synchronous>, transform_indices = @transform_2, window_bounds = array<i64: 1, 1024>}, {pipeline_mode = #tpu.pipeline_mode<synchronous>, transform_indices = @transform_3, window_bounds = array<i64: 1024, 1024>}, {pipeline_mode = #tpu.pipeline_mode<synchronous>, transform_indices = @transform_4, window_bounds = array<i64: 1, 1024>}, {pipeline_mode = #tpu.pipeline_mode<synchronous>, transform_indices = @transform_5, window_bounds = array<i64: 1, 1024>}, {pipeline_mode = #tpu.pipeline_mode<synchronous>, transform_indices = @transform_6, window_bounds = array<i64: 1, 1024>}, {pipeline_mode = #tpu.pipeline_mode<synchronous>, transform_indices = @transform_7, window_bounds = array<i64: 1024, 128>}, {pipeline_mode = #tpu.pipeline_mode<synchronous>, transform_indices = @transform_8, window_bounds = array<i64: 1, 128>}, {pipeline_mode = #tpu.pipeline_mode<synchronous>, transform_indices = @transform_9, window_bounds = array<i64: 1024, 1024>}, {pipeline_mode = #tpu.pipeline_mode<synchronous>, transform_indices = @transform_10, window_bounds = array<i64: 1, 1024>}, {pipeline_mode = #tpu.pipeline_mode<synchronous>, transform_indices = @transform_11, window_bounds = array<i64: 1, 1024>}, {pipeline_mode = #tpu.pipeline_mode<synchronous>, transform_indices = @transform_12, window_bounds = array<i64: 1, 1>}, {transform_indices = @transform_13, window_bounds = array<i64: 8, 128>}]} {
    %c0 = arith.constant 0 : index
    %c0_0 = arith.constant 0 : index
    %0 = vector.load %arg1[%c0, %c0_0] : memref<8x1024xf32, #tpu.memory_space<vmem>>, vector<8x1024xf32>
    %c0_1 = arith.constant 0 : index
    %c0_2 = arith.constant 0 : index
    %1 = vector.load %arg2[%c0_1, %c0_2] : memref<1x1024xf32, #tpu.memory_space<vmem>>, vector<1x1024xf32>
    %c0_3 = arith.constant 0 : index
    %c0_4 = arith.constant 0 : index
    %2 = vector.load %arg3[%c0_3, %c0_4] : memref<1x1024xf32, #tpu.memory_space<vmem>>, vector<1x1024xf32>
    %cst = arith.constant dense<0.000000e+00> : vector<8xf32>
    %3 = vector.multi_reduction <add>, %0, %cst [1] : vector<8x1024xf32> to vector<8xf32>
    %4 = vector.shape_cast %3 : vector<8xf32> to vector<8x1xf32>
    %cst_5 = arith.constant 1.024000e+03 : f32
    %5 = vector.broadcast %cst_5 : f32 to vector<8x1xf32>
    %6 = arith.divf %4, %5 : vector<8x1xf32>
    %7 = vector.broadcast %6 : vector<8x1xf32> to vector<8x1024xf32>
    %8 = arith.subf %0, %7 : vector<8x1024xf32>
    %9 = arith.mulf %8, %8 : vector<8x1024xf32>
    %cst_6 = arith.constant dense<0.000000e+00> : vector<8xf32>
    %10 = vector.multi_reduction <add>, %9, %cst_6 [1] : vector<8x1024xf32> to vector<8xf32>
    %11 = vector.shape_cast %10 : vector<8xf32> to vector<8x1xf32>
    %cst_7 = arith.constant 1.024000e+03 : f32
    %12 = vector.broadcast %cst_7 : f32 to vector<8x1xf32>
    %13 = arith.divf %11, %12 : vector<8x1xf32>
    %cst_8 = arith.constant 9.99999974E-6 : f32
    %14 = vector.broadcast %cst_8 : f32 to vector<8x1xf32>
    %15 = arith.addf %13, %14 : vector<8x1xf32>
    %16 = math.rsqrt %15 : vector<8x1xf32>
    %17 = vector.broadcast %16 : vector<8x1xf32> to vector<8x1024xf32>
    %18 = arith.mulf %8, %17 : vector<8x1024xf32>
    %19 = vector.broadcast %1 : vector<1x1024xf32> to vector<8x1024xf32>
    %20 = arith.mulf %18, %19 : vector<8x1024xf32>
    %21 = vector.broadcast %2 : vector<1x1024xf32> to vector<8x1024xf32>
    %22 = arith.addf %20, %21 : vector<8x1024xf32>
    %23 = arith.truncf %22 : vector<8x1024xf32> to vector<8x1024xbf16>
    %c0_9 = arith.constant 0 : index
    %c0_10 = arith.constant 0 : index
    %24 = vector.load %arg4[%c0_9, %c0_10] : memref<1024x1024xbf16, #tpu.memory_space<vmem>>, vector<1024x1024xbf16>
    %cst_11 = arith.constant dense<0.000000e+00> : vector<8x1024xf32>
    %25 = tpu.matmul %23, %24, %cst_11 {dimension_numbers = #tpu.dot_dimension_numbers<[1], [0], [0], [1], [0, 0, 1, 1], [], []>} : vector<8x1024xbf16>, vector<1024x1024xbf16>, vector<8x1024xf32> -> vector<8x1024xf32>
    %c0_12 = arith.constant 0 : index
    %c0_13 = arith.constant 0 : index
    %26 = vector.load %arg5[%c0_12, %c0_13] : memref<1x1024xf32, #tpu.memory_space<vmem>>, vector<1x1024xf32>
    %27 = vector.broadcast %26 : vector<1x1024xf32> to vector<8x1024xf32>
    %28 = arith.addf %25, %27 : vector<8x1024xf32>
    %c0_14 = arith.constant 0 : index
    %c0_15 = arith.constant 0 : index
    %29 = vector.load %arg6[%c0_14, %c0_15] : memref<1x1024xf32, #tpu.memory_space<vmem>>, vector<1x1024xf32>
    %c0_16 = arith.constant 0 : index
    %c0_17 = arith.constant 0 : index
    %30 = vector.load %arg7[%c0_16, %c0_17] : memref<1x1024xf32, #tpu.memory_space<vmem>>, vector<1x1024xf32>
    %cst_18 = arith.constant dense<0.000000e+00> : vector<8xf32>
    %31 = vector.multi_reduction <add>, %28, %cst_18 [1] : vector<8x1024xf32> to vector<8xf32>
    %32 = vector.shape_cast %31 : vector<8xf32> to vector<8x1xf32>
    %cst_19 = arith.constant 1.024000e+03 : f32
    %33 = vector.broadcast %cst_19 : f32 to vector<8x1xf32>
    %34 = arith.divf %32, %33 : vector<8x1xf32>
    %35 = vector.broadcast %34 : vector<8x1xf32> to vector<8x1024xf32>
    %36 = arith.subf %28, %35 : vector<8x1024xf32>
    %37 = arith.mulf %36, %36 : vector<8x1024xf32>
    %cst_20 = arith.constant dense<0.000000e+00> : vector<8xf32>
    %38 = vector.multi_reduction <add>, %37, %cst_20 [1] : vector<8x1024xf32> to vector<8xf32>
    %39 = vector.shape_cast %38 : vector<8xf32> to vector<8x1xf32>
    %cst_21 = arith.constant 1.024000e+03 : f32
    %40 = vector.broadcast %cst_21 : f32 to vector<8x1xf32>
    %41 = arith.divf %39, %40 : vector<8x1xf32>
    %cst_22 = arith.constant 9.99999974E-6 : f32
    %42 = vector.broadcast %cst_22 : f32 to vector<8x1xf32>
    %43 = arith.addf %41, %42 : vector<8x1xf32>
    %44 = math.rsqrt %43 : vector<8x1xf32>
    %45 = vector.broadcast %44 : vector<8x1xf32> to vector<8x1024xf32>
    %46 = arith.mulf %36, %45 : vector<8x1024xf32>
    %47 = vector.broadcast %29 : vector<1x1024xf32> to vector<8x1024xf32>
    %48 = arith.mulf %46, %47 : vector<8x1024xf32>
    %49 = vector.broadcast %30 : vector<1x1024xf32> to vector<8x1024xf32>
    %50 = arith.addf %48, %49 : vector<8x1024xf32>
    %cst_23 = arith.constant 0.000000e+00 : f32
    %51 = vector.broadcast %cst_23 : f32 to vector<8x1024xf32>
    %52 = arith.maximumf %50, %51 : vector<8x1024xf32>
    %53 = arith.truncf %52 : vector<8x1024xf32> to vector<8x1024xbf16>
    %c0_24 = arith.constant 0 : index
    %c0_25 = arith.constant 0 : index
    %54 = vector.load %arg8[%c0_24, %c0_25] : memref<1024x128xbf16, #tpu.memory_space<vmem>>, vector<1024x128xbf16>
    %cst_26 = arith.constant dense<0.000000e+00> : vector<8x128xf32>
    %55 = tpu.matmul %53, %54, %cst_26 {dimension_numbers = #tpu.dot_dimension_numbers<[1], [0], [0], [1], [0, 0, 1, 1], [], []>} : vector<8x1024xbf16>, vector<1024x128xbf16>, vector<8x128xf32> -> vector<8x128xf32>
    %c0_27 = arith.constant 0 : index
    %c0_28 = arith.constant 0 : index
    %56 = vector.load %arg9[%c0_27, %c0_28] : memref<1x128xf32, #tpu.memory_space<vmem>>, vector<1x128xf32>
    %57 = vector.broadcast %56 : vector<1x128xf32> to vector<8x128xf32>
    %58 = arith.addf %55, %57 : vector<8x128xf32>
    %c0_29 = arith.constant 0 : index
    %c0_30 = arith.constant 0 : index
    %59 = vector.load %arg10[%c0_29, %c0_30] : memref<1024x1024xbf16, #tpu.memory_space<vmem>>, vector<1024x1024xbf16>
    %cst_31 = arith.constant dense<0.000000e+00> : vector<8x1024xf32>
    %60 = tpu.matmul %53, %59, %cst_31 {dimension_numbers = #tpu.dot_dimension_numbers<[1], [0], [0], [1], [0, 0, 1, 1], [], []>} : vector<8x1024xbf16>, vector<1024x1024xbf16>, vector<8x1024xf32> -> vector<8x1024xf32>
    %c0_32 = arith.constant 0 : index
    %c0_33 = arith.constant 0 : index
    %61 = vector.load %arg11[%c0_32, %c0_33] : memref<1x1024xf32, #tpu.memory_space<vmem>>, vector<1x1024xf32>
    %62 = vector.broadcast %61 : vector<1x1024xf32> to vector<8x1024xf32>
    %63 = arith.addf %60, %62 : vector<8x1024xf32>
    %cst_34 = arith.constant 0.000000e+00 : f32
    %64 = vector.broadcast %cst_34 : f32 to vector<8x1024xf32>
    %65 = arith.maximumf %63, %64 : vector<8x1024xf32>
    %c0_35 = arith.constant 0 : index
    %c0_36 = arith.constant 0 : index
    %66 = vector.load %arg12[%c0_35, %c0_36] : memref<1x1024xf32, #tpu.memory_space<vmem>>, vector<1x1024xf32>
    %67 = vector.broadcast %66 : vector<1x1024xf32> to vector<8x1024xf32>
    %68 = arith.mulf %65, %67 : vector<8x1024xf32>
    %cst_37 = arith.constant dense<0.000000e+00> : vector<8xf32>
    %69 = vector.multi_reduction <add>, %68, %cst_37 [1] : vector<8x1024xf32> to vector<8xf32>
    %70 = vector.shape_cast %69 : vector<8xf32> to vector<8x1xf32>
    %c0_38 = arith.constant 0 : index
    %c0_39 = arith.constant 0 : index
    %71 = vector.load %arg13[%c0_38, %c0_39] : memref<1x1xf32, #tpu.memory_space<vmem>>, vector<1x1xf32>
    %72 = vector.broadcast %71 : vector<1x1xf32> to vector<8x1xf32>
    %73 = arith.addf %70, %72 : vector<8x1xf32>
    %74 = arith.negf %73 : vector<8x1xf32>
    %75 = math.exp %74 : vector<8x1xf32>
    %cst_40 = arith.constant 1.000000e+00 : f32
    %76 = vector.broadcast %cst_40 : f32 to vector<8x1xf32>
    %77 = arith.addf %76, %75 : vector<8x1xf32>
    %78 = arith.divf %76, %77 : vector<8x1xf32>
    %79 = tpu.iota {dimensions = array<i32: 1>} : vector<8x128xi32>
    %c20_i32 = arith.constant 20 : i32
    %80 = vector.broadcast %c20_i32 : i32 to vector<8x128xi32>
    %81 = arith.cmpi eq, %79, %80 : vector<8x128xi32>
    %82 = vector.shape_cast %78 : vector<8x1xf32> to vector<8x1xf32>
    %83 = vector.broadcast %82 : vector<8x1xf32> to vector<8x128xf32>
    %84 = arith.select %81, %83, %58 : vector<8x128xi1>, vector<8x128xf32>
    %c0_41 = arith.constant 0 : index
    %c0_42 = arith.constant 0 : index
    %85 = vector.load %arg14[%c0_41, %c0_42] : memref<8x128xf32, #tpu.memory_space<vmem>>, vector<8x128xf32>
    tpu.vector_store %arg14[%c0_41, %c0_42], %84 {strides = array<i32>} : memref<8x128xf32, #tpu.memory_space<vmem>>, vector<8x128xf32>,
    return
  }
  func.func @transform_0(%arg0: i32) -> (i32, i32) {
    %c0_i32 = arith.constant 0 : i32
    %c0_i32_0 = arith.constant 0 : i32
    return %arg0, %c0_i32 : i32, i32
  }
  func.func @transform_1(%arg0: i32) -> (i32, i32) {
    %c0_i32 = arith.constant 0 : i32
    %c0_i32_0 = arith.constant 0 : i32
    %c0_i32_1 = arith.constant 0 : i32
    return %c0_i32, %c0_i32_0 : i32, i32
  }
  func.func @transform_2(%arg0: i32) -> (i32, i32) {
    %c0_i32 = arith.constant 0 : i32
    %c0_i32_0 = arith.constant 0 : i32
    %c0_i32_1 = arith.constant 0 : i32
    return %c0_i32, %c0_i32_0 : i32, i32
  }
  func.func @transform_3(%arg0: i32) -> (i32, i32) {
    %c0_i32 = arith.constant 0 : i32
    %c0_i32_0 = arith.constant 0 : i32
    %c0_i32_1 = arith.constant 0 : i32
    return %c0_i32, %c0_i32_0 : i32, i32
  }
  func.func @transform_4(%arg0: i32) -> (i32, i32) {
    %c0_i32 = arith.constant 0 : i32
    %c0_i32_0 = arith.constant 0 : i32
    %c0_i32_1 = arith.constant 0 : i32
    return %c0_i32, %c0_i32_0 : i32, i32
  }
  func.func @transform_5(%arg0: i32) -> (i32, i32) {
    %c0_i32 = arith.constant 0 : i32
    %c0_i32_0 = arith.constant 0 : i32
    %c0_i32_1 = arith.constant 0 : i32
    return %c0_i32, %c0_i32_0 : i32, i32
  }
  func.func @transform_6(%arg0: i32) -> (i32, i32) {
    %c0_i32 = arith.constant 0 : i32
    %c0_i32_0 = arith.constant 0 : i32
    %c0_i32_1 = arith.constant 0 : i32
    return %c0_i32, %c0_i32_0 : i32, i32
  }
  func.func @transform_7(%arg0: i32) -> (i32, i32) {
    %c0_i32 = arith.constant 0 : i32
    %c0_i32_0 = arith.constant 0 : i32
    %c0_i32_1 = arith.constant 0 : i32
    return %c0_i32, %c0_i32_0 : i32, i32
  }
  func.func @transform_8(%arg0: i32) -> (i32, i32) {
    %c0_i32 = arith.constant 0 : i32
    %c0_i32_0 = arith.constant 0 : i32
    %c0_i32_1 = arith.constant 0 : i32
    return %c0_i32, %c0_i32_0 : i32, i32
  }
  func.func @transform_9(%arg0: i32) -> (i32, i32) {
    %c0_i32 = arith.constant 0 : i32
    %c0_i32_0 = arith.constant 0 : i32
    %c0_i32_1 = arith.constant 0 : i32
    return %c0_i32, %c0_i32_0 : i32, i32
  }
  func.func @transform_10(%arg0: i32) -> (i32, i32) {
    %c0_i32 = arith.constant 0 : i32
    %c0_i32_0 = arith.constant 0 : i32
    %c0_i32_1 = arith.constant 0 : i32
    return %c0_i32, %c0_i32_0 : i32, i32
  }
  func.func @transform_11(%arg0: i32) -> (i32, i32) {
    %c0_i32 = arith.constant 0 : i32
    %c0_i32_0 = arith.constant 0 : i32
    %c0_i32_1 = arith.constant 0 : i32
    return %c0_i32, %c0_i32_0 : i32, i32
  }
  func.func @transform_12(%arg0: i32) -> (i32, i32) {
    %c0_i32 = arith.constant 0 : i32
    %c0_i32_0 = arith.constant 0 : i32
    %c0_i32_1 = arith.constant 0 : i32
    return %c0_i32, %c0_i32_0 : i32, i32
  }
  func.func @transform_13(%arg0: i32) -> (i32, i32) {
    %c0_i32 = arith.constant 0 : i32
    %c0_i32_0 = arith.constant 0 : i32
    return %arg0, %c0_i32 : i32, i32
  }
}

</mosaic_0001>

<bundles_post_ra>
// kernel: tpu_custom_call.1
= control target key start
LH: loop header
LB: loop body
LE: loop exit
PB: predicated region body
PF: predicated region fallthrough
CT: control target
= control target key end

     0   :  { %s11224_s0 = inlined_call_operand.hbm [shape: f32[8,1024], index: 0, kind: input, shape index: {}]   ;;  %s11225_s1 = inlined_call_operand.hbm [shape: f32[1,1024], index: 1, kind: input, shape index: {}]   ;;  %s11226_s2 = inlined_call_operand.hbm [shape: f32[1,1024], index: 2, kind: input, shape index: {}]   ;;  %s11227_s3 = inlined_call_operand.hbm [shape: bf16[1024,1024], index: 3, kind: input, shape index: {}]   ;;  %s11228_s4 = inlined_call_operand.hbm [shape: f32[1,1024], index: 4, kind: input, shape index: {}]   ;;  %s11229_s5 = inlined_call_operand.hbm [shape: f32[1,1024], index: 5, kind: input, shape index: {}]   ;;  %s11230_s6 = inlined_call_operand.hbm [shape: f32[1,1024], index: 6, kind: input, shape index: {}]   ;;  %s11231_s7 = inlined_call_operand.hbm [shape: bf16[1024,128], index: 7, kind: input, shape index: {}]   ;;  %s11232_s8 = inlined_call_operand.hbm [shape: f32[1,128], index: 8, kind: input, shape index: {}]   ;;  %s11233_s9 = inlined_call_operand.hbm [shape: bf16[1024,1024], index: 9, kind: input, shape index: {}]   ;;  %s11234_s10 = inlined_call_operand.hbm [shape: f32[1,1024], index: 10, kind: input, shape index: {}]   ;;  %s11235_s11 = inlined_call_operand.hbm [shape: f32[1,1024], index: 11, kind: input, shape index: {}]   ;;  %s11236_s12 = inlined_call_operand.<no memory space> [shape: f32[1,1], index: 12, kind: input, shape index: {}]   ;;  %s11237_s13 = inlined_call_operand.hbm [shape: f32[8,128], index: 13, kind: output, shape index: {}]  }
   0x1   :  { %v18_v0 = vstv %s11236_s12 }
   0x2   :  { %19 = vst [vmem:[#allocation2] sm:$0x1] %v18_v0 }
   0x3   :  { %20 = vsyncpa [#allocation4], 0 }
   0x4   :  { %21 = vsyncpa [#allocation7], 0 }
   0x5   :  { %22 = vsyncpa [#allocation10], 0 }
   0x6   :  { %23 = vsyncpa [#allocation13], 0 }
   0x7   :  { %24 = vsyncpa [#allocation16], 0 }
   0x8   :  { %25 = vsyncpa [#allocation19], 0 }
   0x9   :  { %26 = vsyncpa [#allocation22], 0 }
   0xa   :  { %27 = vsyncpa [#allocation5], 0  ;;  %s10534_s27 = smov [#allocation6]   ;;  %s10535_s29 = smov [#allocation9]  }
   0xb   :  { %s44_s28 = sshll.u32 %s10534_s27, 4  ;;  %s63_s30 = sshll.u32 %s10535_s29, 4  ;;  %s45_s28 = int_to_ptr.vmem [resolvable:$true] %s44_s28  ;;  %s10625_s30 = int_to_ptr.vmem [resolvable:$true] %s63_s30 }
   0xc   :  { %s10232_s12 = scalar_lea.hbm %s11225_s1, 128 }
   0xd   :  { %p10233_p0 = scmp.ne.s32.totalorder %s11225_s1, %s10232_s12  ;;  %p10236_p1 = scmp.lt.u32.totalorder %s10232_s12, %s11225_s1 }
   0xf   :  { %p10238_p2 = pnand %p10236_p1, %p10233_p0 }
  0x11   :  { %10241 = shalt.err (!%p10238_p2)
}
  0x12   :  { %s10242_s20 = scalar_lea.vmem %s45_s28, 128  ;;  %p10247_p4 = scmp.lt.s32.totalorder %s45_s28, %s45_s28 }
  0x13   :  { %p10243_p3 = scmp.ne.s32.totalorder %s45_s28, %s10242_s20  ;;  %p10248_p5 = scmp.lt.s32.totalorder %s10242_s20, %s10242_s20 }
  0x15   :  { %p10249_p6 = por %p10248_p5, %p10247_p4 }
  0x17   :  { %p10250_p7 = pnand %p10249_p6, %p10243_p3 }
  0x19   :  { %10253 = shalt.err (!%p10250_p7)
}
  0x1a   :  { %47 = dma.hbm_to_vmem [thread:$0]  %s11225_s1, 128, %s45_s28, [#allocation7]  }
  0x1b   :  { %s10254_s25 = scalar_lea.hbm %s11227_s3, 65536 }
  0x1c   :  { %p10255_p8 = scmp.ne.s32.totalorder %s11227_s3, %s10254_s25  ;;  %p10258_p9 = scmp.lt.u32.totalorder %s10254_s25, %s11227_s3 }
  0x1e   :  { %p10260_p10 = pnand %p10258_p9, %p10255_p8 }
  0x20   :  { %10263 = shalt.err (!%p10260_p10)
}
  0x21   :  { %s10264_s15 = scalar_lea.vmem %s10625_s30, 65536  ;;  %p10269_p12 = scmp.lt.s32.totalorder %s10625_s30, %s10625_s30 }
  0x22   :  { %p10265_p11 = scmp.ne.s32.totalorder %s10625_s30, %s10264_s15  ;;  %p10270_p13 = scmp.lt.s32.totalorder %s10264_s15, %s10264_s15 }
  0x24   :  { %p10271_p0 = por %p10270_p13, %p10269_p12 }
  0x26   :  { %p10272_p1 = pnand %p10271_p0, %p10265_p11 }
  0x28   :  { %10275 = shalt.err (!%p10272_p1)
}
  0x29   :  { %s10536_s1 = smov 512   ;;  %s10537_s28 = smov 32  }
  0x2a   :  { %69 = dma.hbm_to_vmem [thread:$0]  %s11227_s3, 65536, %s10625_s30, [#allocation10], %s10536_s1, %s10536_s1, %s10537_s28  }
  0x2b   :  { %s10538_s17 = smov [#allocation12]   ;;  %s10539_s19 = smov [#allocation15]  }
  0x2c   :  { %s86_s18 = sshll.u32 %s10538_s17, 4  ;;  %s105_s20 = sshll.u32 %s10539_s19, 4  ;;  %s87_s18 = int_to_ptr.vmem [resolvable:$true] %s86_s18  ;;  %s10659_s20 = int_to_ptr.vmem [resolvable:$true] %s105_s20 }
  0x2d   :  { %s10276_s23 = scalar_lea.hbm %s11229_s5, 128 }
  0x2e   :  { %p10277_p2 = scmp.ne.s32.totalorder %s11229_s5, %s10276_s23  ;;  %p10280_p3 = scmp.lt.u32.totalorder %s10276_s23, %s11229_s5 }
  0x30   :  { %p10282_p4 = pnand %p10280_p3, %p10277_p2 }
  0x32   :  { %10285 = shalt.err (!%p10282_p4)
}
  0x33   :  { %s10286_s3 = scalar_lea.vmem %s87_s18, 128  ;;  %p10291_p6 = scmp.lt.s32.totalorder %s87_s18, %s87_s18 }
  0x34   :  { %p10287_p5 = scmp.ne.s32.totalorder %s87_s18, %s10286_s3  ;;  %p10292_p7 = scmp.lt.s32.totalorder %s10286_s3, %s10286_s3 }
  0x36   :  { %p10293_p8 = por %p10292_p7, %p10291_p6 }
  0x38   :  { %p10294_p9 = pnand %p10293_p8, %p10287_p5 }
  0x3a   :  { %10297 = shalt.err (!%p10294_p9)
}
  0x3b   :  { %89 = dma.hbm_to_vmem [thread:$0]  %s11229_s5, 128, %s87_s18, [#allocation13]  }
  0x3c   :  { %s10298_s12 = scalar_lea.hbm %s11231_s7, 8192 }
  0x3d   :  { %p10299_p10 = scmp.ne.s32.totalorder %s11231_s7, %s10298_s12  ;;  %p10302_p11 = scmp.lt.u32.totalorder %s10298_s12, %s11231_s7 }
  0x3f   :  { %p10304_p12 = pnand %p10302_p11, %p10299_p10 }
  0x41   :  { %10307 = shalt.err (!%p10304_p12)
}
  0x42   :  { %s10308_s22 = scalar_lea.vmem %s10659_s20, 8192  ;;  %p10313_p0 = scmp.lt.s32.totalorder %s10659_s20, %s10659_s20 }
  0x43   :  { %p10309_p13 = scmp.ne.s32.totalorder %s10659_s20, %s10308_s22  ;;  %p10314_p1 = scmp.lt.s32.totalorder %s10308_s22, %s10308_s22 }
  0x45   :  { %p10315_p2 = por %p10314_p1, %p10313_p0 }
  0x47   :  { %p10316_p3 = pnand %p10315_p2, %p10309_p13 }
  0x49   :  { %10319 = shalt.err (!%p10316_p3)
}
  0x4a   :  { %s10540_s5 = smov 64   ;;  %s10541_s18 = smov 4  }
  0x4b   :  { %111 = dma.hbm_to_vmem [thread:$0]  %s11231_s7, 8192, %s10659_s20, [#allocation16], %s10540_s5, %s10540_s5, %s10541_s18  }
  0x4c   :  { %s10542_s25 = smov [#allocation18]   ;;  %s10543_s27 = smov [#allocation3]  }
  0x4d   :  { %s127_s26 = sshll.u32 %s10542_s25, 4  ;;  %s34_s3 = sshll.u32 %s10543_s27, 4  ;;  %s128_s26 = int_to_ptr.vmem [resolvable:$true] %s127_s26  ;;  %s35_s3 = int_to_ptr.vmem [resolvable:$true] %s34_s3 }
  0x4e   :  { %s10320_s14 = scalar_lea.hbm %s11233_s9, 65536 }
  0x4f   :  { %p10321_p4 = scmp.ne.s32.totalorder %s11233_s9, %s10320_s14  ;;  %p10324_p5 = scmp.lt.u32.totalorder %s10320_s14, %s11233_s9 }
  0x51   :  { %p10326_p6 = pnand %p10324_p5, %p10321_p4 }
  0x53   :  { %10329 = shalt.err (!%p10326_p6)
}
  0x54   :  { %s10330_s7 = scalar_lea.vmem %s128_s26, 65536  ;;  %p10335_p8 = scmp.lt.s32.totalorder %s128_s26, %s128_s26 }
  0x55   :  { %p10331_p7 = scmp.ne.s32.totalorder %s128_s26, %s10330_s7  ;;  %p10336_p9 = scmp.lt.s32.totalorder %s10330_s7, %s10330_s7 }
  0x57   :  { %p10337_p10 = por %p10336_p9, %p10335_p8 }
  0x59   :  { %p10338_p11 = pnand %p10337_p10, %p10331_p7 }
  0x5b   :  { %10341 = shalt.err (!%p10338_p11)
}
  0x5c   :  { %133 = dma.hbm_to_vmem [thread:$0]  %s11233_s9, 65536, %s128_s26, [#allocation19], %s10536_s1, %s10536_s1, %s10537_s28  }
  0x5d   :  { %s10342_s5 = scalar_lea.hbm %s11224_s0, 1024 }
  0x5e   :  { %p10343_p12 = scmp.ne.s32.totalorder %s11224_s0, %s10342_s5  ;;  %p10346_p13 = scmp.lt.u32.totalorder %s10342_s5, %s11224_s0 }
  0x60   :  { %p10348_p0 = pnand %p10346_p13, %p10343_p12 }
  0x62   :  { %10351 = shalt.err (!%p10348_p0)
}
  0x63   :  { %s10352_s27 = scalar_lea.vmem %s35_s3, 1024  ;;  %p10357_p2 = scmp.lt.s32.totalorder %s35_s3, %s35_s3 }
  0x64   :  { %p10353_p1 = scmp.ne.s32.totalorder %s35_s3, %s10352_s27  ;;  %p10358_p3 = scmp.lt.s32.totalorder %s10352_s27, %s10352_s27 }
  0x66   :  { %p10359_p4 = por %p10358_p3, %p10357_p2 }
  0x68   :  { %p10360_p5 = pnand %p10359_p4, %p10353_p1 }
  0x6a   :  { %10363 = shalt.err (!%p10360_p5)
}
  0x6b   :  { %37 = dma.hbm_to_vmem [thread:$0]  %s11224_s0, 1024, %s35_s3, [#allocation4]  }
  0x6c   :  { %s10544_s28 = smov [#allocation8]   ;;  %s10545_s30 = smov [#allocation11]  }
  0x6d   :  { %s54_s26 = sshll.u32 %s10544_s28, 4  ;;  %s76_s29 = sshll.u32 %s10545_s30, 4  ;;  %s55_s26 = int_to_ptr.vmem [resolvable:$true] %s54_s26  ;;  %s77_s29 = int_to_ptr.vmem [resolvable:$true] %s76_s29 }
  0x6e   :  { %s10364_s12 = scalar_lea.hbm %s11226_s2, 128 }
  0x6f   :  { %p10365_p6 = scmp.ne.s32.totalorder %s11226_s2, %s10364_s12  ;;  %p10368_p7 = scmp.lt.u32.totalorder %s10364_s12, %s11226_s2 }
  0x71   :  { %p10370_p8 = pnand %p10368_p7, %p10365_p6 }
  0x73   :  { %10373 = shalt.err (!%p10370_p8)
}
  0x74   :  { %s10374_s0 = scalar_lea.vmem %s55_s26, 128  ;;  %p10379_p10 = scmp.lt.s32.totalorder %s55_s26, %s55_s26 }
  0x75   :  { %p10375_p9 = scmp.ne.s32.totalorder %s55_s26, %s10374_s0  ;;  %p10380_p11 = scmp.lt.s32.totalorder %s10374_s0, %s10374_s0 }
  0x77   :  { %p10381_p12 = por %p10380_p11, %p10379_p10 }
  0x79   :  { %p10382_p13 = pnand %p10381_p12, %p10375_p9 }
  0x7b   :  { %10385 = shalt.err (!%p10382_p13)
}
  0x7c   :  { %57 = dma.hbm_to_vmem [thread:$0]  %s11226_s2, 128, %s55_s26, [#allocation7]  }
  0x7d   :  { %s10386_s5 = scalar_lea.hbm %s11228_s4, 128 }
  0x7e   :  { %p10387_p0 = scmp.ne.s32.totalorder %s11228_s4, %s10386_s5  ;;  %p10390_p1 = scmp.lt.u32.totalorder %s10386_s5, %s11228_s4 }
  0x80   :  { %p10392_p2 = pnand %p10390_p1, %p10387_p0 }
  0x82   :  { %10395 = shalt.err (!%p10392_p2)
}
  0x83   :  { %s10396_s27 = scalar_lea.vmem %s77_s29, 128  ;;  %p10401_p4 = scmp.lt.s32.totalorder %s77_s29, %s77_s29 }
  0x84   :  { %p10397_p3 = scmp.ne.s32.totalorder %s77_s29, %s10396_s27  ;;  %p10402_p5 = scmp.lt.s32.totalorder %s10396_s27, %s10396_s27 }
  0x86   :  { %p10403_p6 = por %p10402_p5, %p10401_p4 }
  0x88   :  { %p10404_p7 = pnand %p10403_p6, %p10397_p3 }
  0x8a   :  { %10407 = shalt.err (!%p10404_p7)
}
  0x8b   :  { %79 = dma.hbm_to_vmem [thread:$0]  %s11228_s4, 128, %s77_s29, [#allocation10]  }
  0x8c   :  { %s10546_s1 = smov [#allocation14]   ;;  %s10547_s26 = smov [#allocation17]  }
  0x8d   :  { %s96_s28 = sshll.u32 %s10546_s1, 4  ;;  %s118_s30 = sshll.u32 %s10547_s26, 4  ;;  %s97_s28 = int_to_ptr.vmem [resolvable:$true] %s96_s28  ;;  %s119_s30 = int_to_ptr.vmem [resolvable:$true] %s118_s30 }
  0x8e   :  { %s10408_s12 = scalar_lea.hbm %s11230_s6, 128 }
  0x8f   :  { %p10409_p8 = scmp.ne.s32.totalorder %s11230_s6, %s10408_s12  ;;  %p10412_p9 = scmp.lt.u32.totalorder %s10408_s12, %s11230_s6 }
  0x91   :  { %p10414_p10 = pnand %p10412_p9, %p10409_p8 }
  0x93   :  { %10417 = shalt.err (!%p10414_p10)
}
  0x94   :  { %s10418_s4 = scalar_lea.vmem %s97_s28, 128  ;;  %p10423_p12 = scmp.lt.s32.totalorder %s97_s28, %s97_s28 }
  0x95   :  { %p10419_p11 = scmp.ne.s32.totalorder %s97_s28, %s10418_s4  ;;  %p10424_p13 = scmp.lt.s32.totalorder %s10418_s4, %s10418_s4 }
  0x97   :  { %p10425_p0 = por %p10424_p13, %p10423_p12 }
  0x99   :  { %p10426_p1 = pnand %p10425_p0, %p10419_p11 }
  0x9b   :  { %10429 = shalt.err (!%p10426_p1)
}
  0x9c   :  { %99 = dma.hbm_to_vmem [thread:$0]  %s11230_s6, 128, %s97_s28, [#allocation13]  }
  0x9d   :  { %s10430_s21 = scalar_lea.hbm %s11232_s8, 16 }
  0x9e   :  { %p10431_p2 = scmp.ne.s32.totalorder %s11232_s8, %s10430_s21  ;;  %p10434_p3 = scmp.lt.u32.totalorder %s10430_s21, %s11232_s8 }
  0xa0   :  { %p10436_p4 = pnand %p10434_p3, %p10431_p2 }
  0xa2   :  { %10439 = shalt.err (!%p10436_p4)
}
  0xa3   :  { %s10440_s24 = scalar_lea.vmem %s119_s30, 16  ;;  %s10444_s25 = scalar_lea.vmem %s119_s30, 32 }
  0xa4   :  { %p10441_p5 = scmp.ne.s32.totalorder %s119_s30, %s10440_s24  ;;  %p10445_p6 = scmp.lt.s32.totalorder %s119_s30, %s119_s30 }
  0xa5   :  { %p10446_p7 = scmp.lt.s32.totalorder %s10444_s25, %s10440_s24 }
  0xa7   :  { %p10447_p8 = por %p10446_p7, %p10445_p6 }
  0xa9   :  { %p10448_p9 = pnand %p10447_p8, %p10441_p5 }
  0xab   :  { %10451 = shalt.err (!%p10448_p9)
}
  0xac   :  { %121 = dma.hbm_to_vmem [thread:$0]  %s11232_s8, 16, %s119_s30, [#allocation16]  }
  0xad   :  { %s10548_s2 = smov [#allocation20]   ;;  %s10549_s1 = smov [#allocation21]  }
  0xae   :  { %s140_s9 = sshll.u32 %s10548_s2, 4  ;;  %s150_s28 = sshll.u32 %s10549_s1, 4  ;;  %s141_s9 = int_to_ptr.vmem [resolvable:$true] %s140_s9  ;;  %s151_s28 = int_to_ptr.vmem [resolvable:$true] %s150_s28 }
  0xaf   :  { %s10452_s15 = scalar_lea.hbm %s11234_s10, 128 }
  0xb0   :  { %p10453_p10 = scmp.ne.s32.totalorder %s11234_s10, %s10452_s15  ;;  %p10456_p11 = scmp.lt.u32.totalorder %s10452_s15, %s11234_s10 }
  0xb2   :  { %p10458_p12 = pnand %p10456_p11, %p10453_p10 }
  0xb4   :  { %10461 = shalt.err (!%p10458_p12)
}
  0xb5   :  { %s10462_s8 = scalar_lea.vmem %s141_s9, 128  ;;  %p10467_p0 = scmp.lt.s32.totalorder %s141_s9, %s141_s9 }
  0xb6   :  { %p10463_p13 = scmp.ne.s32.totalorder %s141_s9, %s10462_s8  ;;  %p10468_p1 = scmp.lt.s32.totalorder %s10462_s8, %s10462_s8 }
  0xb8   :  { %p10469_p2 = por %p10468_p1, %p10467_p0 }
  0xba   :  { %p10470_p3 = pnand %p10469_p2, %p10463_p13 }
  0xbc   :  { %10473 = shalt.err (!%p10470_p3)
}
  0xbd   :  { %143 = dma.hbm_to_vmem [thread:$0]  %s11234_s10, 128, %s141_s9, [#allocation19]  }
  0xbe   :  { %s10474_s0 = scalar_lea.hbm %s11235_s11, 128 }
  0xbf   :  { %p10475_p4 = scmp.ne.s32.totalorder %s11235_s11, %s10474_s0  ;;  %p10478_p5 = scmp.lt.u32.totalorder %s10474_s0, %s11235_s11 }
  0xc1   :  { %p10480_p6 = pnand %p10478_p5, %p10475_p4 }
  0xc3   :  { %10483 = shalt.err (!%p10480_p6)
}
  0xc4   :  { %s10484_s5 = scalar_lea.vmem %s151_s28, 128  ;;  %p10489_p8 = scmp.lt.s32.totalorder %s151_s28, %s151_s28 }
  0xc5   :  { %p10485_p7 = scmp.ne.s32.totalorder %s151_s28, %s10484_s5  ;;  %p10490_p9 = scmp.lt.s32.totalorder %s10484_s5, %s10484_s5 }
  0xc7   :  { %p10491_p10 = por %p10490_p9, %p10489_p8 }
  0xc9   :  { %p10492_p11 = pnand %p10491_p10, %p10485_p7 }
  0xcb   :  { %10495 = shalt.err (!%p10492_p11)
}
  0xcc   :  { %153 = dma.hbm_to_vmem [thread:$0]  %s11235_s11, 128, %s151_s28, [#allocation22]  }
  0xcd   :  { %10518 = dma.done.wait [#allocation4], 1024  }
  0xce   :  { %10519 = vsyncadd [#allocation4], 4294966272 }
  0xcf   :  { %10520 = dma.done.wait [#allocation7], 256  }
  0xd0   :  { %10521 = vsyncadd [#allocation7], 4294967040 }
  0xd1   :  { %10522 = dma.done.wait [#allocation10], 65664  }
  0xd2   :  { %10523 = vsyncadd [#allocation10], 4294901632 }
  0xd3   :  { %10524 = dma.done.wait [#allocation13], 256  }
  0xd4   :  { %10525 = vsyncadd [#allocation13], 4294967040 }
  0xd5   :  { %10526 = dma.done.wait [#allocation16], 8208  }
  0xd6   :  { %10527 = vsyncadd [#allocation16], 4294959088 }
  0xd7   :  { %10528 = dma.done.wait [#allocation19], 65664  }
  0xd8   :  { %10529 = vsyncadd [#allocation19], 4294901632 }
  0xd9   :  { %10530 = dma.done.wait [#allocation22], 128  }
  0xda   :  { %10531 = vsyncadd [#allocation22], 4294967168  ;;  %v10789_v1 = vld [vmem:[#allocation3] sm:$0xff]  ;;  %v10791_v2 = vld [vmem:[#allocation3 + $0x8] sm:$0xff]  ;;  %s10551_s11 = smov [#allocation23]  }
  0xdb   :  { %v10793_v3 = vld [vmem:[#allocation3 + $0x10] sm:$0xff]  ;;  %v203_v4 = vadd.f32 %v10791_v2, %v10789_v1  ;;  %v10797_v5 = vld [vmem:[#allocation3 + $0x18] sm:$0xff]  ;;  %v10799_v6 = vld [vmem:[#allocation3 + $0x20] sm:$0xff]  ;;  %s8834_s23 = sshll.u32 %s10551_s11, 4  ;;  %s8835_s23 = int_to_ptr.vmem [resolvable:$true] %s8834_s23 }
  0xdc   :  { %v10802_v8 = vld [vmem:[#allocation3 + $0x28] sm:$0xff]  ;;  %v10805_v10 = vld [vmem:[#allocation3 + $0x30] sm:$0xff]  ;;  %v10808_v12 = vld [vmem:[#allocation3 + $0x38] sm:$0xff]  ;;  %s10496_s24 = scalar_lea.vmem %s8835_s23, 128  ;;  %p10501_p13 = scmp.lt.s32.totalorder %s8835_s23, %s8835_s23 }
  0xdd   :  { %v204_v7 = vadd.f32 %v203_v4, %v10793_v3  ;;  %v356_v16 = vld [vmem:[#allocation9] sm:$0xff]  ;;  %v357_v18 = vld [vmem:[#allocation9 + $0x8] sm:$0xff]  ;;  %p10497_p12 = scmp.ne.s32.totalorder %s8835_s23, %s10496_s24  ;;  %p10502_p0 = scmp.lt.s32.totalorder %s10496_s24, %s10496_s24 }
  0xde   :  { %v360_v17 = vld [vmem:[#allocation9 + $0x20] sm:$0xff]  ;;  %v361_v20 = vld [vmem:[#allocation9 + $0x28] sm:$0xff] }
  0xdf   :  { %v205_v9 = vadd.f32 %v204_v7, %v10797_v5  ;;  %v8850_v19 = vcombine.high %v356_v16, %v360_v17  ;;  %v8849_v21 = vcombine.low %v356_v16, %v360_v17  ;;  %v364_v22 = vld [vmem:[#allocation9 + $0x40] sm:$0xff]  ;;  %v8852_v24 = vcombine.high %v357_v18, %v361_v20  ;;  %v365_v27 = vld [vmem:[#allocation9 + $0x48] sm:$0xff]  ;;  %p10503_p1 = por %p10502_p0, %p10501_p13 }
  0xe0   :  { %v368_v23 = vld [vmem:[#allocation9 + $0x60] sm:$0xff]  ;;  %v8851_v25 = vcombine.low %v357_v18, %v361_v20  ;;  %v369_v28 = vld [vmem:[#allocation9 + $0x68] sm:$0xff] }
  0xe1   :  { %v206_v11 = vadd.f32 %v205_v9, %v10799_v6  ;;  %v8858_v26 = vcombine.high %v364_v22, %v368_v23  ;;  %v372_v29 = vld [vmem:[#allocation9 + $0x80] sm:$0xff]  ;;  %3470 = vmatprep.subr.bf16.mxu0 %v8850_v19  ;;  %v8860_v30 = vcombine.high %v365_v27, %v369_v28  ;;  %v373_v32 = vld [vmem:[#allocation9 + $0x88] sm:$0xff]  ;;  %3634 = vmatprep.subr.bf16.mxu1 %v8852_v24  ;;  %p10504_p2 = pnand %p10503_p1, %p10497_p12 }
  0xe2   :  { %v376_v31 = vld [vmem:[#allocation9 + $0xa0] sm:$0xff]  ;;  %v377_v33 = vld [vmem:[#allocation9 + $0xa8] sm:$0xff]  ;;  %3471 = vmatpush1.bf16.msra.mxu0 %v8849_v21  ;;  %v8857_v34 = vcombine.low %v364_v22, %v368_v23  ;;  %3635 = vmatpush1.bf16.msra.mxu1 %v8851_v25  ;;  %v8859_v35 = vcombine.low %v365_v27, %v369_v28 }
  0xe3   :  { %v207_v13 = vadd.f32 %v206_v11, %v10802_v8  ;;  %3472 = vmatprep.subr.bf16.mxu0 %v8858_v26  ;;  %v8866_v36 = vcombine.high %v372_v29, %v376_v31  ;;  %3636 = vmatprep.subr.bf16.mxu1 %v8860_v30  ;;  %v8868_v37 = vcombine.high %v373_v32, %v377_v33  ;;  %v380_v38 = vld [vmem:[#allocation9 + $0xc0] sm:$0xff]  ;;  %v381_v40 = vld [vmem:[#allocation9 + $0xc8] sm:$0xff] }
  0xe4   :  { %v384_v39 = vld [vmem:[#allocation9 + $0xe0] sm:$0xff]  ;;  %v385_v41 = vld [vmem:[#allocation9 + $0xe8] sm:$0xff]  ;;  %v8865_v42 = vcombine.low %v372_v29, %v376_v31  ;;  %v8867_v43 = vcombine.low %v373_v32, %v377_v33 }
  0xe5   :  { %v208_v14 = vadd.f32 %v207_v13, %v10805_v10  ;;  %v8874_v44 = vcombine.high %v380_v38, %v384_v39  ;;  %v8876_v45 = vcombine.high %v381_v40, %v385_v41  ;;  %v388_v46 = vld [vmem:[#allocation9 + $0x100] sm:$0xff]  ;;  %v389_v48 = vld [vmem:[#allocation9 + $0x108] sm:$0xff]  ;;  %v8873_v50 = vcombine.low %v380_v38, %v384_v39 }
  0xe6   :  { %3473 = vmatpush1.bf16.msra.mxu0 %v8857_v34  ;;  %3637 = vmatpush1.bf16.msra.mxu1 %v8859_v35  ;;  %v392_v47 = vld [vmem:[#allocation9 + $0x120] sm:$0xff]  ;;  %v393_v49 = vld [vmem:[#allocation9 + $0x128] sm:$0xff]  ;;  %v8875_v51 = vcombine.low %v381_v40, %v385_v41 }
  0xe7   :  { %v209_v15 = vadd.f32 %v208_v14, %v10808_v12  ;;  %3474 = vmatprep.subr.bf16.mxu0 %v8866_v36  ;;  %3638 = vmatprep.subr.bf16.mxu1 %v8868_v37  ;;  %v8882_v52 = vcombine.high %v388_v46, %v392_v47  ;;  %v8884_v53 = vcombine.high %v389_v48, %v393_v49  ;;  %v396_v54 = vld [vmem:[#allocation9 + $0x140] sm:$0xff]  ;;  %v397_v56 = vld [vmem:[#allocation9 + $0x148] sm:$0xff] }
  0xe8   :  { %v400_v55 = vld [vmem:[#allocation9 + $0x160] sm:$0xff]  ;;  %v401_v57 = vld [vmem:[#allocation9 + $0x168] sm:$0xff]  ;;  %v8881_v58 = vcombine.low %v388_v46, %v392_v47  ;;  %v8883_v59 = vcombine.low %v389_v48, %v393_v49 }
  0xe9   :  { %210 = vadd.xlane.f32.xlu0 %v209_v15  ;;  %v8890_v60 = vcombine.high %v396_v54, %v400_v55  ;;  %v8892_v61 = vcombine.high %v397_v56, %v401_v57  ;;  %v404_v62 = vld [vmem:[#allocation9 + $0x180] sm:$0xff]  ;;  %v405_v0 = vld [vmem:[#allocation9 + $0x188] sm:$0xff]  ;;  %v8889_v7 = vcombine.low %v396_v54, %v400_v55  ;;  %v8891_v9 = vcombine.low %v397_v56, %v401_v57 }
  0xea   :  { %3475 = vmatpush1.bf16.msra.mxu0 %v8865_v42  ;;  %3639 = vmatpush1.bf16.msra.mxu1 %v8867_v43  ;;  %v408_v63 = vld [vmem:[#allocation9 + $0x1a0] sm:$0xff]  ;;  %v409_v4 = vld [vmem:[#allocation9 + $0x1a8] sm:$0xff] }
  0xeb   :  { %3476 = vmatprep.subr.bf16.mxu0 %v8874_v44  ;;  %3640 = vmatprep.subr.bf16.mxu1 %v8876_v45  ;;  %v8898_v11 = vcombine.high %v404_v62, %v408_v63  ;;  %v8900_v13 = vcombine.high %v405_v0, %v409_v4  ;;  %v412_v14 = vld [vmem:[#allocation9 + $0x1c0] sm:$0xff]  ;;  %v413_v16 = vld [vmem:[#allocation9 + $0x1c8] sm:$0xff]  ;;  %v8897_v18 = vcombine.low %v404_v62, %v408_v63 }
  0xec   :  { %v416_v15 = vld [vmem:[#allocation9 + $0x1e0] sm:$0xff]  ;;  %v417_v17 = vld [vmem:[#allocation9 + $0x1e8] sm:$0xff]  ;;  %v8899_v19 = vcombine.low %v405_v0, %v409_v4 }
  0xed   :  { %v8906_v20 = vcombine.high %v412_v14, %v416_v15  ;;  %v8908_v21 = vcombine.high %v413_v16, %v417_v17  ;;  %v420_v22 = vld [vmem:[#allocation9 + $0x200] sm:$0xff]  ;;  %v421_v24 = vld [vmem:[#allocation9 + $0x208] sm:$0xff]  ;;  %v8905_v26 = vcombine.low %v412_v14, %v416_v15  ;;  %v8907_v27 = vcombine.low %v413_v16, %v417_v17 }
  0xee   :  { %3477 = vmatpush1.bf16.msra.mxu0 %v8873_v50  ;;  %3641 = vmatpush1.bf16.msra.mxu1 %v8875_v51  ;;  %v424_v23 = vld [vmem:[#allocation9 + $0x220] sm:$0xff]  ;;  %v425_v25 = vld [vmem:[#allocation9 + $0x228] sm:$0xff] }
  0xef   :  { %3478 = vmatprep.subr.bf16.mxu0 %v8882_v52  ;;  %3642 = vmatprep.subr.bf16.mxu1 %v8884_v53  ;;  %v8914_v28 = vcombine.high %v420_v22, %v424_v23  ;;  %v8916_v29 = vcombine.high %v421_v24, %v425_v25  ;;  %v428_v30 = vld [vmem:[#allocation9 + $0x240] sm:$0xff]  ;;  %v429_v32 = vld [vmem:[#allocation9 + $0x248] sm:$0xff]  ;;  %v8913_v34 = vcombine.low %v420_v22, %v424_v23 }
  0xf0   :  { %v432_v31 = vld [vmem:[#allocation9 + $0x260] sm:$0xff]  ;;  %v433_v33 = vld [vmem:[#allocation9 + $0x268] sm:$0xff]  ;;  %v8915_v35 = vcombine.low %v421_v24, %v425_v25 }
  0xf1   :  { %v8922_v36 = vcombine.high %v428_v30, %v432_v31  ;;  %v8924_v37 = vcombine.high %v429_v32, %v433_v33  ;;  %v436_v38 = vld [vmem:[#allocation9 + $0x280] sm:$0xff]  ;;  %v437_v40 = vld [vmem:[#allocation9 + $0x288] sm:$0xff]  ;;  %v8921_v42 = vcombine.low %v428_v30, %v432_v31  ;;  %v8923_v43 = vcombine.low %v429_v32, %v433_v33 }
  0xf2   :  { %3479 = vmatpush1.bf16.msra.mxu0 %v8881_v58  ;;  %3643 = vmatpush1.bf16.msra.mxu1 %v8883_v59  ;;  %v440_v39 = vld [vmem:[#allocation9 + $0x2a0] sm:$0xff]  ;;  %v441_v41 = vld [vmem:[#allocation9 + $0x2a8] sm:$0xff] }
  0xf3   :  { %3480 = vmatprep.subr.bf16.mxu0 %v8890_v60  ;;  %3644 = vmatprep.subr.bf16.mxu1 %v8892_v61  ;;  %v8930_v44 = vcombine.high %v436_v38, %v440_v39  ;;  %v8932_v45 = vcombine.high %v437_v40, %v441_v41  ;;  %v8929_v0 = vcombine.low %v436_v38, %v440_v39  ;;  %v452_v17 = vld [vmem:[#allocation9 + $0x300] sm:$0xff]  ;;  %v469_v33 = vld [vmem:[#allocation9 + $0x388] sm:$0xff] }
  0xf4   :  { %v8931_v4 = vcombine.low %v437_v40, %v441_v41  ;;  %v460_v23 = vld [vmem:[#allocation9 + $0x340] sm:$0xff]  ;;  %v477_v41 = vld [vmem:[#allocation9 + $0x3c8] sm:$0xff] }
  0xf5   :  { %v464_v24 = vld [vmem:[#allocation9 + $0x360] sm:$0xff] }
  0xf6   :  { %3481 = vmatpush1.bf16.msra.mxu0 %v8889_v7  ;;  %3645 = vmatpush1.bf16.msra.mxu1 %v8891_v9  ;;  %v448_v7 = vld [vmem:[#allocation9 + $0x2e0] sm:$0xff]  ;;  %v445_v9 = vld [vmem:[#allocation9 + $0x2c8] sm:$0xff] }
  0xf7   :  { %3482 = vmatprep.subr.bf16.mxu0 %v8898_v11  ;;  %3646 = vmatprep.subr.bf16.mxu1 %v8900_v13  ;;  %v449_v13 = vld [vmem:[#allocation9 + $0x2e8] sm:$0xff]  ;;  %v468_v31 = vld [vmem:[#allocation9 + $0x380] sm:$0xff] }
  0xf8   :  { %v8940_v14 = vcombine.high %v445_v9, %v449_v13  ;;  %v8939_v16 = vcombine.low %v445_v9, %v449_v13  ;;  %v472_v32 = vld [vmem:[#allocation9 + $0x3a0] sm:$0xff] }
  0xf9   :  { %v476_v39 = vld [vmem:[#allocation9 + $0x3c0] sm:$0xff] }
  0xfa   :  { %3483 = vmatpush1.bf16.msra.mxu0 %v8897_v18  ;;  %3647 = vmatpush1.bf16.msra.mxu1 %v8899_v19  ;;  %v456_v18 = vld [vmem:[#allocation9 + $0x320] sm:$0xff]  ;;  %v453_v19 = vld [vmem:[#allocation9 + $0x308] sm:$0xff] }
  0xfb   :  { %3484 = vmatprep.subr.bf16.mxu0 %v8906_v20  ;;  %3648 = vmatprep.subr.bf16.mxu1 %v8908_v21  ;;  %v8946_v20 = vcombine.high %v452_v17, %v456_v18  ;;  %v457_v21 = vld [vmem:[#allocation9 + $0x328] sm:$0xff]  ;;  %v8945_v22 = vcombine.low %v452_v17, %v456_v18  ;;  %v480_v40 = vld [vmem:[#allocation9 + $0x3e0] sm:$0xff] }
  0xfc   :  { %v8948_v25 = vcombine.high %v453_v19, %v457_v21 }
  0xfe   :  { %3485 = vmatpush1.bf16.msra.mxu0 %v8905_v26  ;;  %3649 = vmatpush1.bf16.msra.mxu1 %v8907_v27  ;;  %v8947_v26 = vcombine.low %v453_v19, %v457_v21  ;;  %v8954_v27 = vcombine.high %v460_v23, %v464_v24 }
  0xff   :  { %3486 = vmatprep.subr.bf16.mxu0 %v8914_v28  ;;  %3650 = vmatprep.subr.bf16.mxu1 %v8916_v29  ;;  %v461_v28 = vld [vmem:[#allocation9 + $0x348] sm:$0xff] }
 0x100   :  { %v465_v29 = vld [vmem:[#allocation9 + $0x368] sm:$0xff] }
 0x101   :  { %v8956_v30 = vcombine.high %v461_v28, %v465_v29 }
 0x102   :  { %3487 = vmatpush1.bf16.msra.mxu0 %v8913_v34  ;;  %3651 = vmatpush1.bf16.msra.mxu1 %v8915_v35  ;;  %v473_v34 = vld [vmem:[#allocation9 + $0x3a8] sm:$0xff]  ;;  %v8953_v35 = vcombine.low %v460_v23, %v464_v24 }
 0x103   :  { %3488 = vmatprep.subr.bf16.mxu0 %v8922_v36  ;;  %3652 = vmatprep.subr.bf16.mxu1 %v8924_v37  ;;  %v8955_v36 = vcombine.low %v461_v28, %v465_v29  ;;  %v8962_v37 = vcombine.high %v468_v31, %v472_v32  ;;  %v8964_v38 = vcombine.high %v469_v33, %v473_v34 }
 0x106   :  { %3489 = vmatpush1.bf16.msra.mxu0 %v8921_v42  ;;  %3653 = vmatpush1.bf16.msra.mxu1 %v8923_v43  ;;  %v481_v42 = vld [vmem:[#allocation9 + $0x3e8] sm:$0xff]  ;;  %v8961_v43 = vcombine.low %v468_v31, %v472_v32 }
 0x107   :  { %3490 = vmatprep.subr.bf16.mxu0 %v8930_v44  ;;  %3654 = vmatprep.subr.bf16.mxu1 %v8932_v45  ;;  %v8963_v44 = vcombine.low %v469_v33, %v473_v34  ;;  %v8970_v45 = vcombine.high %v476_v39, %v480_v40 }
 0x10a   :  { %3491 = vmatpush1.bf16.msra.mxu0 %v8929_v0  ;;  %3655 = vmatpush1.bf16.msra.mxu1 %v8931_v4  ;;  %v10874_v4 = vld [vmem:[#allocation6] sm:$0xff] }
 0x10b   :  { %3656 = vmatprep.subr.bf16.mxu1 %v8940_v14 }
 0x10e   :  { %3657 = vmatpush1.bf16.msra.mxu1 %v8939_v16 }
 0x10f   :  { %3658 = vmatprep.subr.bf16.mxu1 %v8948_v25 }
 0x112   :  { %3659 = vmatpush1.bf16.msra.mxu1 %v8947_v26 }
 0x113   :  { %3660 = vmatprep.subr.bf16.mxu1 %v8956_v30 }
 0x116   :  { %3661 = vmatpush1.bf16.msra.mxu1 %v8955_v36 }
 0x117   :  { %3662 = vmatprep.subr.bf16.mxu1 %v8964_v38  ;;  %v492_v38 = vld [vmem:[#allocation9 + $0x440] sm:$0xff] }
 0x11a   :  { %3663 = vmatpush1.bf16.msra.mxu1 %v8963_v44 }
 0x176   :  { %v211_v46 = vpop.xlane.xlu0 %210 }
 0x177   :  { %v213_v47 = vmul.f32 0.0009765625, %v211_v46  ;;  %v8972_v46 = vcombine.high %v477_v41, %v481_v42 }
 0x179   :  { %v10814_v48 = vsub.f32 %v10789_v1, %v213_v47  ;;  %v10817_v49 = vsub.f32 %v10791_v2, %v213_v47  ;;  %v10820_v50 = vsub.f32 %v10793_v3, %v213_v47  ;;  %v10823_v51 = vsub.f32 %v10797_v5, %v213_v47  ;;  %3664 = vmatprep.subr.bf16.mxu1 %v8972_v46 }
 0x17a   :  { %v10830_v54 = vsub.f32 %v10799_v6, %v213_v47  ;;  %v10835_v55 = vsub.f32 %v10802_v8, %v213_v47  ;;  %v10840_v56 = vsub.f32 %v10805_v10, %v213_v47  ;;  %v10845_v6 = vsub.f32 %v10808_v12, %v213_v47  ;;  %v444_v12 = vld [vmem:[#allocation9 + $0x2c0] sm:$0xff] }
 0x17b   :  { %v222_v52 = vmul.f32 %v10814_v48, %v10814_v48  ;;  %v223_v53 = vmul.f32 %v10817_v49, %v10817_v49  ;;  %v224_v1 = vmul.f32 %v10820_v50, %v10820_v50  ;;  %v225_v3 = vmul.f32 %v10823_v51, %v10823_v51 }
 0x17c   :  { %v226_v57 = vmul.f32 %v10830_v54, %v10830_v54  ;;  %v227_v59 = vmul.f32 %v10835_v55, %v10835_v55  ;;  %v228_v8 = vmul.f32 %v10840_v56, %v10840_v56  ;;  %v229_v62 = vmul.f32 %v10845_v6, %v10845_v6 }
 0x17d   :  { %v230_v2 = vadd.f32 %v223_v53, %v222_v52  ;;  %v8938_v11 = vcombine.high %v444_v12, %v448_v7  ;;  %v8937_v15 = vcombine.low %v444_v12, %v448_v7  ;;  %v8969_v47 = vcombine.low %v476_v39, %v480_v40  ;;  %v10853_v53 = vld [vmem:[#allocation9 + $0x400] sm:$0xff] }
 0x17e   :  { %v8971_v52 = vcombine.low %v477_v41, %v481_v42  ;;  %v496_v41 = vld [vmem:[#allocation9 + $0x460] sm:$0xff]  ;;  %v493_v42 = vld [vmem:[#allocation9 + $0x448] sm:$0xff] }
 0x17f   :  { %v231_v5 = vadd.f32 %v230_v2, %v224_v1  ;;  %3492 = vmatprep.subr.bf16.mxu0 %v8938_v11  ;;  %v10855_v1 = vld [vmem:[#allocation9 + $0x420] sm:$0xff]  ;;  %v10857_v2 = vld [vmem:[#allocation9 + $0x408] sm:$0xff]  ;;  %v10882_v11 = vld [vmem:[#allocation8] sm:$0xff] }
 0x180   :  { %3493 = vmatpush1.bf16.msra.mxu0 %v8937_v15  ;;  %3665 = vmatpush1.bf16.msra.mxu1 %v8971_v52  ;;  %v500_v52 = vld [vmem:[#allocation9 + $0x480] sm:$0xff] }
 0x181   :  { %v232_v58 = vadd.f32 %v231_v5, %v225_v3  ;;  %3494 = vmatprep.subr.bf16.mxu0 %v8946_v20  ;;  %v8978_v3 = vcombine.high %v10853_v53, %v10855_v1  ;;  %v10861_v5 = vld [vmem:[#allocation9 + $0x428] sm:$0xff] }
 0x183   :  { %v233_v60 = vadd.f32 %v232_v58, %v226_v57  ;;  %v8977_v57 = vcombine.low %v10853_v53, %v10855_v1  ;;  %v8979_v58 = vcombine.low %v10857_v2, %v10861_v5  ;;  %v513_v53 = vld [vmem:[#allocation9 + $0x4e8] sm:$0xff] }
 0x184   :  { %3495 = vmatpush1.bf16.msra.mxu0 %v8945_v22 }
 0x185   :  { %v234_v61 = vadd.f32 %v233_v60, %v227_v59  ;;  %3496 = vmatprep.subr.bf16.mxu0 %v8954_v27  ;;  %v8980_v59 = vcombine.high %v10857_v2, %v10861_v5 }
 0x187   :  { %v235_v10 = vadd.f32 %v234_v61, %v228_v8  ;;  %3675 = vmatprep.subr.bf16.mxu1 %v8980_v59  ;;  %v251_v61 = vlaneseq }
 0x188   :  { %3497 = vmatpush1.bf16.msra.mxu0 %v8953_v35 }
 0x189   :  { %v236_v63 = vadd.f32 %v235_v10, %v229_v62  ;;  %3498 = vmatprep.subr.bf16.mxu0 %v8962_v37  ;;  %v252_v10 = vshrl.u32 %v251_v61, 7 }
 0x18b   :  { %237 = vadd.xlane.f32.xlu0 %v236_v63  ;;  %v10870_v63 = vsub.s32 1, %v252_v10  ;;  %v10872_v0 = vsub.s32 0, %v252_v10  ;;  %v10876_v12 = vsub.s32 3, %v252_v10  ;;  %v10878_v7 = vsub.s32 2, %v252_v10 }
 0x18c   :  { %3499 = vmatpush1.bf16.msra.mxu0 %v8961_v43  ;;  %v10880_v9 = vsub.s32 5, %v252_v10  ;;  %v10888_v15 = vsub.s32 4, %v252_v10  ;;  %v10904_v24 = vsub.s32 7, %v252_v10  ;;  %v10915_v32 = vsub.s32 6, %v252_v10  ;;  %v497_v43 = vld [vmem:[#allocation9 + $0x468] sm:$0xff]  ;;  %v504_v10 = vld [vmem:[#allocation9 + $0x4a0] sm:$0xff] }
 0x18d   :  { %3500 = vmatprep.subr.bf16.mxu0 %v8970_v45  ;;  %v258_v13 = vrot.slane %v10874_v4, %v10870_v63  ;;  %v254_v14 = vrot.slane %v10874_v4, %v10872_v0  ;;  %v307_v16 = vrot.slane %v10882_v11, %v10870_v63  ;;  %v266_v17 = vrot.slane %v10874_v4, %v10876_v12 }
 0x18e   :  { %v262_v18 = vrot.slane %v10874_v4, %v10878_v7  ;;  %v274_v19 = vrot.slane %v10874_v4, %v10880_v9  ;;  %v303_v21 = vrot.slane %v10882_v11, %v10872_v0  ;;  %v315_v22 = vrot.slane %v10882_v11, %v10876_v12 }
 0x18f   :  { %v311_v23 = vrot.slane %v10882_v11, %v10878_v7  ;;  %v323_v30 = vrot.slane %v10882_v11, %v10880_v9  ;;  %v270_v31 = vrot.slane %v10874_v4, %v10888_v15  ;;  %v319_v45 = vrot.slane %v10882_v11, %v10888_v15 }
 0x190   :  { %3501 = vmatpush1.bf16.msra.mxu0 %v8969_v47  ;;  %v278_v47 = vrot.slane %v10874_v4, %v10915_v32  ;;  %v8993_v2 = vcombine.low %v500_v52, %v504_v10 }
 0x191   :  { %3511 = vmatprep.subr.bf16.mxu0 %v8978_v3 }
 0x218   :  { %v238_v60 = vpop.xlane.xlu0 %237 }
 0x219   :  { %v239_v8 = vmul.f32 0.0009765625, %v238_v60  ;;  %v327_v60 = vrot.slane %v10882_v11, %v10915_v32 }
 0x21b   :  { %v240_v62 = vadd.f32 1e-05, %v239_v8  ;;  %v8986_v8 = vcombine.high %v492_v38, %v496_v41 }
 0x21d   :  { %10224 = vrsqrt.f32 %v240_v62  ;;  %v8988_v62 = vcombine.high %v493_v42, %v497_v43 }
 0x227   :  { %v10225_v20 = vpop.eup %10224 }
 0x228   :  { %v243_v25 = vmul.f32 %v10225_v20, %v10817_v49  ;;  %v242_v26 = vmul.f32 %v10225_v20, %v10814_v48  ;;  %v245_v27 = vmul.f32 %v10225_v20, %v10823_v51  ;;  %v244_v28 = vmul.f32 %v10225_v20, %v10820_v50 }
 0x229   :  { %v247_v29 = vmul.f32 %v10225_v20, %v10835_v55  ;;  %v246_v48 = vmul.f32 %v10225_v20, %v10830_v54  ;;  %v249_v51 = vmul.f32 %v10225_v20, %v10845_v6  ;;  %v282_v50 = vrot.slane %v10874_v4, %v10904_v24 }
 0x22a   :  { %v292_v33 = vmul.f32 %v258_v13, %v243_v25  ;;  %v291_v34 = vmul.f32 %v254_v14, %v242_v26  ;;  %v294_v35 = vmul.f32 %v266_v17, %v245_v27  ;;  %v293_v49 = vmul.f32 %v262_v18, %v244_v28  ;;  %v501_v13 = vld [vmem:[#allocation9 + $0x488] sm:$0xff]  ;;  %v516_v26 = vld [vmem:[#allocation9 + $0x500] sm:$0xff] }
 0x22b   :  { %v296_v36 = vmul.f32 %v274_v19, %v247_v29  ;;  %v331_v54 = vrot.slane %v10882_v11, %v10904_v24  ;;  %v295_v3 = vmul.f32 %v270_v31, %v246_v48  ;;  %v298_v59 = vmul.f32 %v282_v50, %v249_v51  ;;  %v505_v14 = vld [vmem:[#allocation9 + $0x4a8] sm:$0xff]  ;;  %v520_v27 = vld [vmem:[#allocation9 + $0x520] sm:$0xff] }
 0x22c   :  { %v341_v55 = vadd.f32 %v307_v16, %v292_v33  ;;  %v340_v37 = vadd.f32 %v303_v21, %v291_v34  ;;  %v10921_v39 = vadd.f32 %v311_v23, %v293_v49  ;;  %v343_v40 = vadd.f32 %v315_v22, %v294_v35  ;;  %v508_v22 = vld [vmem:[#allocation9 + $0x4c0] sm:$0xff]  ;;  %v509_v25 = vld [vmem:[#allocation9 + $0x4c8] sm:$0xff] }
 0x22d   :  { %v10923_v44 = vadd.f32 %v323_v30, %v296_v36  ;;  %v248_v16 = vmul.f32 %v10225_v20, %v10840_v56  ;;  %v10944_v17 = vadd.f32 %v319_v45, %v295_v3  ;;  %v10946_v11 = vadd.f32 %v331_v54, %v298_v59  ;;  %v512_v23 = vld [vmem:[#allocation9 + $0x4e0] sm:$0xff]  ;;  %v517_v28 = vld [vmem:[#allocation9 + $0x508] sm:$0xff] }
 0x22e   :  { %v10929_v6 = vpack.c.bf16 %v341_v55, %v341_v55  ;;  %v10931_v46 = vpack.c.bf16 %v340_v37, %v340_v37  ;;  %v10942_v4 = vpack.c.bf16 %v343_v40, %v343_v40  ;;  %v8985_v18 = vcombine.low %v492_v38, %v496_v41  ;;  %v521_v29 = vld [vmem:[#allocation9 + $0x528] sm:$0xff]  ;;  %v524_v35 = vld [vmem:[#allocation9 + $0x540] sm:$0xff] }
 0x22f   :  { %v8987_v56 = vcombine.low %v493_v42, %v497_v43  ;;  %v297_v19 = vmul.f32 %v278_v47, %v248_v16  ;;  %v8994_v20 = vcombine.high %v500_v52, %v504_v10  ;;  %v8996_v21 = vcombine.high %v501_v13, %v505_v14  ;;  %v528_v49 = vld [vmem:[#allocation9 + $0x560] sm:$0xff]  ;;  %v525_v36 = vld [vmem:[#allocation9 + $0x548] sm:$0xff] }
 0x230   :  { %3502 = vmatprep.mubr.bf16.mxu0 %v10929_v6  ;;  %3666 = vmatprep.mubr.bf16.mxu1 %v10929_v6  ;;  %v8995_v5 = vcombine.low %v501_v13, %v505_v14  ;;  %v9001_v30 = vcombine.low %v508_v22, %v512_v23  ;;  %v9003_v31 = vcombine.low %v509_v25, %v513_v53  ;;  %v529_v48 = vld [vmem:[#allocation9 + $0x568] sm:$0xff]  ;;  %v532_v38 = vld [vmem:[#allocation9 + $0x580] sm:$0xff] }
 0x231   :  { %3503 = vmatmul.mubr.bf16.vlgmr.msra.gmra.mrb[0].mxu0 %v10931_v46  ;;  %3667 = vmatmul.mubr.bf16.vlgmr.msra.gmra.mrb[0].mxu1 %v10931_v46  ;;  %v10956_v1 = vadd.f32 %v327_v60, %v297_v19  ;;  %v9010_v33 = vcombine.high %v516_v26, %v520_v27  ;;  %v9012_v34 = vcombine.high %v517_v28, %v521_v29  ;;  %v536_v40 = vld [vmem:[#allocation9 + $0x5a0] sm:$0xff]  ;;  %v533_v41 = vld [vmem:[#allocation9 + $0x588] sm:$0xff] }
 0x232   :  { %3512 = vmatpush1.bf16.msra.mxu0 %v8977_v57  ;;  %3676 = vmatpush1.bf16.msra.mxu1 %v8979_v58  ;;  %v9002_v57 = vcombine.high %v508_v22, %v512_v23  ;;  %v9004_v58 = vcombine.high %v509_v25, %v513_v53  ;;  %v9009_v51 = vcombine.low %v516_v26, %v520_v27  ;;  %v537_v42 = vld [vmem:[#allocation9 + $0x5a8] sm:$0xff]  ;;  %v540_v52 = vld [vmem:[#allocation9 + $0x5c0] sm:$0xff] }
 0x233   :  { %3543 = vmatprep.mubr.bf16.mxu0 %v10942_v4  ;;  %3707 = vmatprep.mubr.bf16.mxu1 %v10942_v4  ;;  %v9011_v50 = vcombine.low %v517_v28, %v521_v29  ;;  %v9018_v55 = vcombine.high %v524_v35, %v528_v49  ;;  %v9020_v37 = vcombine.high %v525_v36, %v529_v48  ;;  %v544_v3 = vld [vmem:[#allocation9 + $0x5e0] sm:$0xff]  ;;  %v541_v59 = vld [vmem:[#allocation9 + $0x5c8] sm:$0xff] }
 0x234   :  { %3513 = vmatprep.subr.bf16.mxu0 %v8986_v8  ;;  %3677 = vmatprep.subr.bf16.mxu1 %v8988_v62  ;;  %v9017_v43 = vcombine.low %v524_v35, %v528_v49  ;;  %v9019_v45 = vcombine.low %v525_v36, %v529_v48  ;;  %v9026_v54 = vcombine.high %v532_v38, %v536_v40  ;;  %v545_v60 = vld [vmem:[#allocation9 + $0x5e8] sm:$0xff]  ;;  %v548_v14 = vld [vmem:[#allocation9 + $0x600] sm:$0xff] }
 0x235   :  { %v9028_v47 = vcombine.high %v533_v41, %v537_v42  ;;  %v9025_v8 = vcombine.low %v532_v38, %v536_v40  ;;  %v9027_v62 = vcombine.low %v533_v41, %v537_v42  ;;  %v9034_v10 = vcombine.high %v540_v52, %v544_v3  ;;  %v552_v16 = vld [vmem:[#allocation9 + $0x620] sm:$0xff]  ;;  %v557_v53 = vld [vmem:[#allocation9 + $0x648] sm:$0xff] }
 0x236   :  { %3514 = vmatpush1.bf16.msra.mxu0 %v8985_v18  ;;  %3678 = vmatpush1.bf16.msra.mxu1 %v8987_v56  ;;  %v9036_v13 = vcombine.high %v541_v59, %v545_v60  ;;  %v549_v18 = vld [vmem:[#allocation9 + $0x608] sm:$0xff]  ;;  %v9033_v19 = vcombine.low %v540_v52, %v544_v3  ;;  %v556_v23 = vld [vmem:[#allocation9 + $0x640] sm:$0xff] }
 0x237   :  { %3515 = vmatprep.subr.bf16.mxu0 %v8994_v20  ;;  %3679 = vmatprep.subr.bf16.mxu1 %v8996_v21  ;;  %v553_v56 = vld [vmem:[#allocation9 + $0x628] sm:$0xff]  ;;  %v9035_v20 = vcombine.low %v541_v59, %v545_v60  ;;  %v9042_v21 = vcombine.high %v548_v14, %v552_v16  ;;  %v560_v25 = vld [vmem:[#allocation9 + $0x660] sm:$0xff] }
 0x238   :  { %v9044_v22 = vcombine.high %v549_v18, %v553_v56  ;;  %v564_v27 = vld [vmem:[#allocation9 + $0x680] sm:$0xff]  ;;  %v565_v29 = vld [vmem:[#allocation9 + $0x688] sm:$0xff] }
 0x239   :  { %v568_v28 = vld [vmem:[#allocation9 + $0x6a0] sm:$0xff]  ;;  %v573_v48 = vld [vmem:[#allocation9 + $0x6c8] sm:$0xff] }
 0x23a   :  { %3516 = vmatpush1.bf16.msra.mxu0 %v8993_v2  ;;  %3680 = vmatpush1.bf16.msra.mxu1 %v8995_v5  ;;  %v561_v2 = vld [vmem:[#allocation9 + $0x668] sm:$0xff]  ;;  %v9041_v5 = vcombine.low %v548_v14, %v552_v16  ;;  %v572_v49 = vld [vmem:[#allocation9 + $0x6c0] sm:$0xff] }
 0x23b   :  { %3517 = vmatprep.subr.bf16.mxu0 %v9002_v57  ;;  %3681 = vmatprep.subr.bf16.mxu1 %v9004_v58  ;;  %v9043_v57 = vcombine.low %v549_v18, %v553_v56  ;;  %v9050_v58 = vcombine.high %v556_v23, %v560_v25  ;;  %v9052_v26 = vcombine.high %v557_v53, %v561_v2  ;;  %v576_v36 = vld [vmem:[#allocation9 + $0x6e0] sm:$0xff]  ;;  %v581_v42 = vld [vmem:[#allocation9 + $0x708] sm:$0xff] }
 0x23c   :  { %v580_v40 = vld [vmem:[#allocation9 + $0x700] sm:$0xff]  ;;  %v589_v60 = vld [vmem:[#allocation9 + $0x748] sm:$0xff] }
 0x23d   :  { %v584_v41 = vld [vmem:[#allocation9 + $0x720] sm:$0xff]  ;;  %v597_v56 = vld [vmem:[#allocation9 + $0x788] sm:$0xff] }
 0x23e   :  { %3518 = vmatpush1.bf16.msra.mxu0 %v9001_v30  ;;  %3682 = vmatpush1.bf16.msra.mxu1 %v9003_v31  ;;  %v569_v30 = vld [vmem:[#allocation9 + $0x6a8] sm:$0xff]  ;;  %v9049_v31 = vcombine.low %v556_v23, %v560_v25  ;;  %v588_v3 = vld [vmem:[#allocation9 + $0x740] sm:$0xff] }
 0x23f   :  { %3519 = vmatprep.subr.bf16.mxu0 %v9010_v33  ;;  %3683 = vmatprep.subr.bf16.mxu1 %v9012_v34  ;;  %v9051_v33 = vcombine.low %v557_v53, %v561_v2  ;;  %v9058_v34 = vcombine.high %v564_v27, %v568_v28  ;;  %v9060_v35 = vcombine.high %v565_v29, %v569_v30  ;;  %v592_v59 = vld [vmem:[#allocation9 + $0x760] sm:$0xff]  ;;  %v605_v2 = vld [vmem:[#allocation9 + $0x7c8] sm:$0xff] }
 0x240   :  { %v596_v16 = vld [vmem:[#allocation9 + $0x780] sm:$0xff] }
 0x241   :  { %v600_v18 = vld [vmem:[#allocation9 + $0x7a0] sm:$0xff] }
 0x242   :  { %3520 = vmatpush1.bf16.msra.mxu0 %v9009_v51  ;;  %3684 = vmatpush1.bf16.msra.mxu1 %v9011_v50  ;;  %v577_v51 = vld [vmem:[#allocation9 + $0x6e8] sm:$0xff]  ;;  %v9057_v50 = vcombine.low %v564_v27, %v568_v28  ;;  %v604_v25 = vld [vmem:[#allocation9 + $0x7c0] sm:$0xff] }
 0x243   :  { %3521 = vmatprep.subr.bf16.mxu0 %v9018_v55  ;;  %3685 = vmatprep.subr.bf16.mxu1 %v9020_v37  ;;  %v9059_v55 = vcombine.low %v565_v29, %v569_v30  ;;  %v9066_v37 = vcombine.high %v572_v49, %v576_v36  ;;  %v9068_v38 = vcombine.high %v573_v48, %v577_v51  ;;  %v608_v53 = vld [vmem:[#allocation9 + $0x7e0] sm:$0xff]  ;;  %v613_v30 = vld [vmem:[#allocation9 + $0x808] sm:$0xff] }
 0x244   :  { %v612_v28 = vld [vmem:[#allocation9 + $0x800] sm:$0xff] }
 0x245   :  { %v616_v29 = vld [vmem:[#allocation9 + $0x820] sm:$0xff] }
 0x246   :  { %3522 = vmatpush1.bf16.msra.mxu0 %v9017_v43  ;;  %3686 = vmatpush1.bf16.msra.mxu1 %v9019_v45  ;;  %v585_v43 = vld [vmem:[#allocation9 + $0x728] sm:$0xff]  ;;  %v9065_v45 = vcombine.low %v572_v49, %v576_v36  ;;  %v620_v36 = vld [vmem:[#allocation9 + $0x840] sm:$0xff] }
 0x247   :  { %3523 = vmatprep.subr.bf16.mxu0 %v9026_v54  ;;  %3687 = vmatprep.subr.bf16.mxu1 %v9028_v47  ;;  %v9067_v54 = vcombine.low %v573_v48, %v577_v51  ;;  %v9074_v47 = vcombine.high %v580_v40, %v584_v41  ;;  %v9076_v52 = vcombine.high %v581_v42, %v585_v43  ;;  %v624_v48 = vld [vmem:[#allocation9 + $0x860] sm:$0xff]  ;;  %v621_v51 = vld [vmem:[#allocation9 + $0x848] sm:$0xff] }
 0x24a   :  { %3524 = vmatpush1.bf16.msra.mxu0 %v9025_v8  ;;  %3688 = vmatpush1.bf16.msra.mxu1 %v9027_v62  ;;  %v593_v8 = vld [vmem:[#allocation9 + $0x768] sm:$0xff]  ;;  %v9073_v62 = vcombine.low %v580_v40, %v584_v41  ;;  %v10964_v40 = vpack.c.bf16 %v10923_v44, %v10923_v44  ;;  %v9114_v41 = vcombine.high %v620_v36, %v624_v48 }
 0x24b   :  { %3525 = vmatprep.subr.bf16.mxu0 %v9034_v10  ;;  %3689 = vmatprep.subr.bf16.mxu1 %v9036_v13  ;;  %v9075_v10 = vcombine.low %v581_v42, %v585_v43  ;;  %v9082_v13 = vcombine.high %v588_v3, %v592_v59  ;;  %v9084_v14 = vcombine.high %v589_v60, %v593_v8  ;;  %v628_v43 = vld [vmem:[#allocation9 + $0x880] sm:$0xff] }
 0x24e   :  { %3526 = vmatpush1.bf16.msra.mxu0 %v9033_v19  ;;  %3690 = vmatpush1.bf16.msra.mxu1 %v9035_v20  ;;  %v601_v19 = vld [vmem:[#allocation9 + $0x7a8] sm:$0xff]  ;;  %v9081_v20 = vcombine.low %v588_v3, %v592_v59  ;;  %v636_v59 = vld [vmem:[#allocation9 + $0x8c0] sm:$0xff] }
 0x24f   :  { %3527 = vmatprep.subr.bf16.mxu0 %v9042_v21  ;;  %3691 = vmatprep.subr.bf16.mxu1 %v9044_v22  ;;  %v9083_v21 = vcombine.low %v589_v60, %v593_v8  ;;  %v9090_v22 = vcombine.high %v596_v16, %v600_v18  ;;  %v9092_v23 = vcombine.high %v597_v56, %v601_v19  ;;  %v640_v60 = vld [vmem:[#allocation9 + $0x8e0] sm:$0xff]  ;;  %v637_v8 = vld [vmem:[#allocation9 + $0x8c8] sm:$0xff] }
 0x252   :  { %3528 = vmatpush1.bf16.msra.mxu0 %v9041_v5  ;;  %3692 = vmatpush1.bf16.msra.mxu1 %v9043_v57  ;;  %v609_v5 = vld [vmem:[#allocation9 + $0x7e8] sm:$0xff]  ;;  %v9089_v57 = vcombine.low %v596_v16, %v600_v18  ;;  %v644_v18 = vld [vmem:[#allocation9 + $0x900] sm:$0xff] }
 0x253   :  { %3529 = vmatprep.subr.bf16.mxu0 %v9050_v58  ;;  %3693 = vmatprep.subr.bf16.mxu1 %v9052_v26  ;;  %v9091_v58 = vcombine.low %v597_v56, %v601_v19  ;;  %v9098_v26 = vcombine.high %v604_v25, %v608_v53  ;;  %v9100_v27 = vcombine.high %v605_v2, %v609_v5  ;;  %v648_v56 = vld [vmem:[#allocation9 + $0x920] sm:$0xff]  ;;  %v645_v19 = vld [vmem:[#allocation9 + $0x908] sm:$0xff] }
 0x256   :  { %3530 = vmatpush1.bf16.msra.mxu0 %v9049_v31  ;;  %3694 = vmatpush1.bf16.msra.mxu1 %v9051_v33  ;;  %v617_v31 = vld [vmem:[#allocation9 + $0x828] sm:$0xff]  ;;  %v9097_v33 = vcombine.low %v604_v25, %v608_v53  ;;  %v652_v53 = vld [vmem:[#allocation9 + $0x940] sm:$0xff] }
 0x257   :  { %3531 = vmatprep.subr.bf16.mxu0 %v9058_v34  ;;  %3695 = vmatprep.subr.bf16.mxu1 %v9060_v35  ;;  %v9099_v34 = vcombine.low %v605_v2, %v609_v5  ;;  %v9106_v35 = vcombine.high %v612_v28, %v616_v29  ;;  %v9108_v49 = vcombine.high %v613_v30, %v617_v31  ;;  %v656_v2 = vld [vmem:[#allocation9 + $0x960] sm:$0xff]  ;;  %v653_v5 = vld [vmem:[#allocation9 + $0x948] sm:$0xff] }
 0x25a   :  { %3532 = vmatpush1.bf16.msra.mxu0 %v9057_v50  ;;  %3696 = vmatpush1.bf16.msra.mxu1 %v9059_v55  ;;  %v625_v50 = vld [vmem:[#allocation9 + $0x868] sm:$0xff]  ;;  %v9105_v55 = vcombine.low %v612_v28, %v616_v29  ;;  %v660_v29 = vld [vmem:[#allocation9 + $0x980] sm:$0xff] }
 0x25b   :  { %3533 = vmatprep.subr.bf16.mxu0 %v9066_v37  ;;  %3697 = vmatprep.subr.bf16.mxu1 %v9068_v38  ;;  %v10960_v37 = vpack.c.bf16 %v10921_v39, %v10921_v39  ;;  %v9107_v38 = vcombine.low %v613_v30, %v617_v31  ;;  %v9116_v42 = vcombine.high %v621_v51, %v625_v50  ;;  %v664_v30 = vld [vmem:[#allocation9 + $0x9a0] sm:$0xff]  ;;  %v661_v31 = vld [vmem:[#allocation9 + $0x988] sm:$0xff] }
 0x25c   :  { %v9113_v39 = vcombine.low %v620_v36, %v624_v48  ;;  %v668_v48 = vld [vmem:[#allocation9 + $0x9c0] sm:$0xff] }
 0x25e   :  { %3534 = vmatpush1.bf16.msra.mxu0 %v9065_v45  ;;  %3698 = vmatpush1.bf16.msra.mxu1 %v9067_v54  ;;  %v632_v45 = vld [vmem:[#allocation9 + $0x8a0] sm:$0xff]  ;;  %v629_v54 = vld [vmem:[#allocation9 + $0x888] sm:$0xff] }
 0x25f   :  { %3535 = vmatprep.subr.bf16.mxu0 %v9074_v47  ;;  %3699 = vmatprep.subr.bf16.mxu1 %v9076_v52  ;;  %v633_v47 = vld [vmem:[#allocation9 + $0x8a8] sm:$0xff]  ;;  %v9115_v52 = vcombine.low %v621_v51, %v625_v50  ;;  %v9122_v44 = vcombine.high %v628_v43, %v632_v45  ;;  %v672_v51 = vld [vmem:[#allocation9 + $0x9e0] sm:$0xff] }
 0x260   :  { %v9124_v3 = vcombine.high %v629_v54, %v633_v47  ;;  %v669_v50 = vld [vmem:[#allocation9 + $0x9c8] sm:$0xff] }
 0x262   :  { %3536 = vmatpush1.bf16.msra.mxu0 %v9073_v62  ;;  %3700 = vmatpush1.bf16.msra.mxu1 %v9075_v10  ;;  %v641_v62 = vld [vmem:[#allocation9 + $0x8e8] sm:$0xff]  ;;  %v9121_v10 = vcombine.low %v628_v43, %v632_v45  ;;  %v676_v45 = vld [vmem:[#allocation9 + $0xa00] sm:$0xff] }
 0x263   :  { %3537 = vmatprep.subr.bf16.mxu0 %v9082_v13  ;;  %3701 = vmatprep.subr.bf16.mxu1 %v9084_v14  ;;  %v9123_v13 = vcombine.low %v629_v54, %v633_v47  ;;  %v9130_v14 = vcombine.high %v636_v59, %v640_v60  ;;  %v9132_v16 = vcombine.high %v637_v8, %v641_v62  ;;  %v680_v54 = vld [vmem:[#allocation9 + $0xa20] sm:$0xff]  ;;  %v677_v47 = vld [vmem:[#allocation9 + $0xa08] sm:$0xff] }
 0x266   :  { %3538 = vmatpush1.bf16.msra.mxu0 %v9081_v20  ;;  %3702 = vmatpush1.bf16.msra.mxu1 %v9083_v21  ;;  %v649_v20 = vld [vmem:[#allocation9 + $0x928] sm:$0xff]  ;;  %v9129_v21 = vcombine.low %v636_v59, %v640_v60  ;;  %v684_v60 = vld [vmem:[#allocation9 + $0xa40] sm:$0xff] }
 0x267   :  { %3539 = vmatprep.subr.bf16.mxu0 %v9090_v22  ;;  %3703 = vmatprep.subr.bf16.mxu1 %v9092_v23  ;;  %v9131_v22 = vcombine.low %v637_v8, %v641_v62  ;;  %v9138_v23 = vcombine.high %v644_v18, %v648_v56  ;;  %v9140_v25 = vcombine.high %v645_v19, %v649_v20  ;;  %v688_v8 = vld [vmem:[#allocation9 + $0xa60] sm:$0xff]  ;;  %v685_v62 = vld [vmem:[#allocation9 + $0xa48] sm:$0xff] }
 0x26a   :  { %3540 = vmatpush1.bf16.msra.mxu0 %v9089_v57  ;;  %3704 = vmatpush1.bf16.msra.mxu1 %v9091_v58  ;;  %v657_v57 = vld [vmem:[#allocation9 + $0x968] sm:$0xff]  ;;  %v9137_v58 = vcombine.low %v644_v18, %v648_v56  ;;  %v692_v56 = vld [vmem:[#allocation9 + $0xa80] sm:$0xff] }
 0x26b   :  { %3541 = vmatprep.subr.bf16.mxu0 %v9098_v26  ;;  %3705 = vmatprep.subr.bf16.mxu1 %v9100_v27  ;;  %v9139_v26 = vcombine.low %v645_v19, %v649_v20  ;;  %v9146_v27 = vcombine.high %v652_v53, %v656_v2  ;;  %v9148_v28 = vcombine.high %v653_v5, %v657_v57  ;;  %v696_v19 = vld [vmem:[#allocation9 + $0xaa0] sm:$0xff]  ;;  %v693_v20 = vld [vmem:[#allocation9 + $0xa88] sm:$0xff] }
 0x26e   :  { %3542 = vmatpush1.bf16.msra.mxu0 %v9097_v33  ;;  %3706 = vmatpush1.bf16.msra.mxu1 %v9099_v34  ;;  %v665_v33 = vld [vmem:[#allocation9 + $0x9a8] sm:$0xff]  ;;  %v9145_v34 = vcombine.low %v652_v53, %v656_v2  ;;  %v700_v2 = vld [vmem:[#allocation9 + $0xac0] sm:$0xff] }
 0x26f   :  { %3552 = vmatprep.subr.bf16.mxu0 %v9106_v35  ;;  %3716 = vmatprep.subr.bf16.mxu1 %v9108_v49  ;;  %v9147_v35 = vcombine.low %v653_v5, %v657_v57  ;;  %v9154_v49 = vcombine.high %v660_v29, %v664_v30  ;;  %v9156_v36 = vcombine.high %v661_v31, %v665_v33  ;;  %v704_v5 = vld [vmem:[#allocation9 + $0xae0] sm:$0xff]  ;;  %v701_v57 = vld [vmem:[#allocation9 + $0xac8] sm:$0xff] }
 0x271   :  { %3544 = vmatmul.mubr.bf16.vlgmr.msra.gmra.mrb[0].mxu0 %v10960_v37  ;;  %3708 = vmatmul.mubr.bf16.vlgmr.msra.gmra.mrb[0].mxu1 %v10960_v37 }
 0x272   :  { %3553 = vmatpush1.bf16.msra.mxu0 %v9105_v55  ;;  %3584 = vmatprep.mubr.bf16.mxu0 %v10964_v40  ;;  %v673_v55 = vld [vmem:[#allocation9 + $0x9e8] sm:$0xff] }
 0x273   :  { %3717 = vmatpush1.bf16.msra.mxu1 %v9107_v38  ;;  %3748 = vmatprep.mubr.bf16.mxu1 %v10964_v40  ;;  %v9153_v38 = vcombine.low %v660_v29, %v664_v30  ;;  %v9164_v43 = vcombine.high %v669_v50, %v673_v55  ;;  %v708_v30 = vld [vmem:[#allocation9 + $0xb00] sm:$0xff] }
 0x274   :  { %3554 = vmatprep.subr.bf16.mxu0 %v9114_v41  ;;  %3718 = vmatprep.subr.bf16.mxu1 %v9116_v42  ;;  %v9155_v41 = vcombine.low %v661_v31, %v665_v33  ;;  %v9162_v42 = vcombine.high %v668_v48, %v672_v51  ;;  %v712_v31 = vld [vmem:[#allocation9 + $0xb20] sm:$0xff]  ;;  %v709_v33 = vld [vmem:[#allocation9 + $0xb08] sm:$0xff] }
 0x276   :  { %3555 = vmatpush1.bf16.msra.mxu0 %v9113_v39  ;;  %v681_v39 = vld [vmem:[#allocation9 + $0xa28] sm:$0xff] }
 0x277   :  { %3719 = vmatpush1.bf16.msra.mxu1 %v9115_v52  ;;  %3556 = vmatprep.subr.bf16.mxu0 %v9122_v44  ;;  %v9161_v52 = vcombine.low %v668_v48, %v672_v51  ;;  %v9163_v44 = vcombine.low %v669_v50, %v673_v55  ;;  %v9172_v59 = vcombine.high %v677_v47, %v681_v39  ;;  %v716_v51 = vld [vmem:[#allocation9 + $0xb40] sm:$0xff]  ;;  %v717_v55 = vld [vmem:[#allocation9 + $0xb48] sm:$0xff] }
 0x278   :  { %3720 = vmatprep.subr.bf16.mxu1 %v9124_v3  ;;  %v9170_v3 = vcombine.high %v676_v45, %v680_v54  ;;  %v720_v50 = vld [vmem:[#allocation9 + $0xb60] sm:$0xff] }
 0x27a   :  { %3557 = vmatpush1.bf16.msra.mxu0 %v9121_v10  ;;  %v689_v10 = vld [vmem:[#allocation9 + $0xa68] sm:$0xff] }
 0x27b   :  { %3721 = vmatpush1.bf16.msra.mxu1 %v9123_v13  ;;  %3558 = vmatprep.subr.bf16.mxu0 %v9130_v14  ;;  %v9169_v13 = vcombine.low %v676_v45, %v680_v54  ;;  %v9171_v14 = vcombine.low %v677_v47, %v681_v39  ;;  %v9180_v18 = vcombine.high %v685_v62, %v689_v10  ;;  %v724_v54 = vld [vmem:[#allocation9 + $0xb80] sm:$0xff]  ;;  %v725_v39 = vld [vmem:[#allocation9 + $0xb88] sm:$0xff] }
 0x27c   :  { %3722 = vmatprep.subr.bf16.mxu1 %v9132_v16  ;;  %v9178_v16 = vcombine.high %v684_v60, %v688_v8  ;;  %v728_v47 = vld [vmem:[#allocation9 + $0xba0] sm:$0xff] }
 0x27e   :  { %3559 = vmatpush1.bf16.msra.mxu0 %v9129_v21  ;;  %v697_v21 = vld [vmem:[#allocation9 + $0xaa8] sm:$0xff] }
 0x27f   :  { %3723 = vmatpush1.bf16.msra.mxu1 %v9131_v22  ;;  %3560 = vmatprep.subr.bf16.mxu0 %v9138_v23  ;;  %v9177_v22 = vcombine.low %v684_v60, %v688_v8  ;;  %v9179_v23 = vcombine.low %v685_v62, %v689_v10  ;;  %v9188_v53 = vcombine.high %v693_v20, %v697_v21  ;;  %v732_v8 = vld [vmem:[#allocation9 + $0xbc0] sm:$0xff]  ;;  %v733_v10 = vld [vmem:[#allocation9 + $0xbc8] sm:$0xff] }
 0x280   :  { %3724 = vmatprep.subr.bf16.mxu1 %v9140_v25  ;;  %v9186_v25 = vcombine.high %v692_v56, %v696_v19  ;;  %v736_v62 = vld [vmem:[#allocation9 + $0xbe0] sm:$0xff] }
 0x282   :  { %3561 = vmatpush1.bf16.msra.mxu0 %v9137_v58  ;;  %v705_v58 = vld [vmem:[#allocation9 + $0xae8] sm:$0xff] }
 0x283   :  { %3725 = vmatpush1.bf16.msra.mxu1 %v9139_v26  ;;  %3562 = vmatprep.subr.bf16.mxu0 %v9146_v27  ;;  %v9185_v26 = vcombine.low %v692_v56, %v696_v19  ;;  %v9187_v27 = vcombine.low %v693_v20, %v697_v21  ;;  %v9196_v29 = vcombine.high %v701_v57, %v705_v58  ;;  %v740_v19 = vld [vmem:[#allocation9 + $0xc00] sm:$0xff]  ;;  %v741_v21 = vld [vmem:[#allocation9 + $0xc08] sm:$0xff] }
 0x284   :  { %3726 = vmatprep.subr.bf16.mxu1 %v9148_v28  ;;  %v9194_v28 = vcombine.high %v700_v2, %v704_v5  ;;  %v744_v20 = vld [vmem:[#allocation9 + $0xc20] sm:$0xff] }
 0x286   :  { %3563 = vmatpush1.bf16.msra.mxu0 %v9145_v34  ;;  %v713_v34 = vld [vmem:[#allocation9 + $0xb28] sm:$0xff] }
 0x287   :  { %3727 = vmatpush1.bf16.msra.mxu1 %v9147_v35  ;;  %3564 = vmatprep.subr.bf16.mxu0 %v9154_v49  ;;  %v9193_v35 = vcombine.low %v700_v2, %v704_v5  ;;  %v9195_v49 = vcombine.low %v701_v57, %v705_v58  ;;  %v9204_v48 = vcombine.high %v709_v33, %v713_v34  ;;  %v748_v5 = vld [vmem:[#allocation9 + $0xc40] sm:$0xff] }
 0x288   :  { %3728 = vmatprep.subr.bf16.mxu1 %v9156_v36  ;;  %v9202_v36 = vcombine.high %v708_v30, %v712_v31  ;;  %v752_v57 = vld [vmem:[#allocation9 + $0xc60] sm:$0xff]  ;;  %v9233_v58 = vcombine.low %v740_v19, %v744_v20 }
 0x28a   :  { %3565 = vmatpush1.bf16.msra.mxu0 %v9153_v38  ;;  %v721_v38 = vld [vmem:[#allocation9 + $0xb68] sm:$0xff] }
 0x28b   :  { %3729 = vmatpush1.bf16.msra.mxu1 %v9155_v41  ;;  %3566 = vmatprep.subr.bf16.mxu0 %v9162_v42  ;;  %v9201_v41 = vcombine.low %v708_v30, %v712_v31  ;;  %v9203_v42 = vcombine.low %v709_v33, %v713_v34  ;;  %v9212_v45 = vcombine.high %v717_v55, %v721_v38  ;;  %v756_v31 = vld [vmem:[#allocation9 + $0xc80] sm:$0xff] }
 0x28c   :  { %3730 = vmatprep.subr.bf16.mxu1 %v9164_v43  ;;  %v9210_v43 = vcombine.high %v716_v51, %v720_v50  ;;  %v9242_v30 = vcombine.high %v748_v5, %v752_v57  ;;  %v760_v33 = vld [vmem:[#allocation9 + $0xca0] sm:$0xff]  ;;  %v10977_v34 = vpack.c.bf16 %v10946_v11, %v10946_v11  ;;  %v765_v11 = vld [vmem:[#allocation9 + $0xcc8] sm:$0xff] }
 0x28e   :  { %3567 = vmatpush1.bf16.msra.mxu0 %v9161_v52  ;;  %v729_v52 = vld [vmem:[#allocation9 + $0xba8] sm:$0xff] }
 0x28f   :  { %3731 = vmatpush1.bf16.msra.mxu1 %v9163_v44  ;;  %3568 = vmatprep.subr.bf16.mxu0 %v9170_v3  ;;  %v9209_v44 = vcombine.low %v716_v51, %v720_v50  ;;  %v9211_v3 = vcombine.low %v717_v55, %v721_v38  ;;  %v9220_v60 = vcombine.high %v725_v39, %v729_v52  ;;  %v764_v55 = vld [vmem:[#allocation9 + $0xcc0] sm:$0xff] }
 0x290   :  { %3732 = vmatprep.subr.bf16.mxu1 %v9172_v59  ;;  %v9218_v59 = vcombine.high %v724_v54, %v728_v47  ;;  %v9250_v51 = vcombine.high %v756_v31, %v760_v33  ;;  %v768_v38 = vld [vmem:[#allocation9 + $0xce0] sm:$0xff] }
 0x292   :  { %3569 = vmatpush1.bf16.msra.mxu0 %v9169_v13  ;;  %v737_v13 = vld [vmem:[#allocation9 + $0xbe8] sm:$0xff] }
 0x293   :  { %3733 = vmatpush1.bf16.msra.mxu1 %v9171_v14  ;;  %3570 = vmatprep.subr.bf16.mxu0 %v9178_v16  ;;  %v9217_v14 = vcombine.low %v724_v54, %v728_v47  ;;  %v9219_v16 = vcombine.low %v725_v39, %v729_v52  ;;  %v9228_v56 = vcombine.high %v733_v10, %v737_v13  ;;  %v772_v47 = vld [vmem:[#allocation9 + $0xd00] sm:$0xff]  ;;  %v773_v52 = vld [vmem:[#allocation9 + $0xd08] sm:$0xff] }
 0x294   :  { %3734 = vmatprep.subr.bf16.mxu1 %v9180_v18  ;;  %v9226_v18 = vcombine.high %v732_v8, %v736_v62  ;;  %v776_v39 = vld [vmem:[#allocation9 + $0xd20] sm:$0xff] }
 0x296   :  { %3571 = vmatpush1.bf16.msra.mxu0 %v9177_v22  ;;  %v745_v22 = vld [vmem:[#allocation9 + $0xc28] sm:$0xff] }
 0x297   :  { %3735 = vmatpush1.bf16.msra.mxu1 %v9179_v23  ;;  %3572 = vmatprep.subr.bf16.mxu0 %v9186_v25  ;;  %v9225_v23 = vcombine.low %v732_v8, %v736_v62  ;;  %v9227_v25 = vcombine.low %v733_v10, %v737_v13  ;;  %v9236_v2 = vcombine.high %v741_v21, %v745_v22  ;;  %v780_v62 = vld [vmem:[#allocation9 + $0xd40] sm:$0xff]  ;;  %v781_v13 = vld [vmem:[#allocation9 + $0xd48] sm:$0xff] }
 0x298   :  { %3736 = vmatprep.subr.bf16.mxu1 %v9188_v53  ;;  %v9234_v53 = vcombine.high %v740_v19, %v744_v20  ;;  %v784_v10 = vld [vmem:[#allocation9 + $0xd60] sm:$0xff] }
 0x299   :  { %v788_v20 = vld [vmem:[#allocation9 + $0xd80] sm:$0xff] }
 0x29a   :  { %3573 = vmatpush1.bf16.msra.mxu0 %v9185_v26  ;;  %v749_v26 = vld [vmem:[#allocation9 + $0xc48] sm:$0xff] }
 0x29b   :  { %3737 = vmatpush1.bf16.msra.mxu1 %v9187_v27  ;;  %3574 = vmatprep.subr.bf16.mxu0 %v9194_v28  ;;  %v753_v27 = vld [vmem:[#allocation9 + $0xc68] sm:$0xff]  ;;  %v10972_v28 = vpack.c.bf16 %v10944_v17, %v10944_v17  ;;  %v9241_v17 = vcombine.low %v748_v5, %v752_v57  ;;  %v796_v57 = vld [vmem:[#allocation9 + $0xdc0] sm:$0xff] }
 0x29c   :  { %3738 = vmatprep.subr.bf16.mxu1 %v9196_v29  ;;  %v9235_v29 = vcombine.low %v741_v21, %v745_v22  ;;  %v792_v21 = vld [vmem:[#allocation9 + $0xda0] sm:$0xff]  ;;  %v789_v22 = vld [vmem:[#allocation9 + $0xd88] sm:$0xff] }
 0x29e   :  { %3575 = vmatpush1.bf16.msra.mxu0 %v9193_v35  ;;  %v9244_v35 = vcombine.high %v749_v26, %v753_v27 }
 0x29f   :  { %3739 = vmatpush1.bf16.msra.mxu1 %v9195_v49  ;;  %3576 = vmatprep.subr.bf16.mxu0 %v9202_v36  ;;  %v757_v49 = vld [vmem:[#allocation9 + $0xc88] sm:$0xff] }
 0x2a0   :  { %3740 = vmatprep.subr.bf16.mxu1 %v9204_v48  ;;  %v761_v36 = vld [vmem:[#allocation9 + $0xca8] sm:$0xff]  ;;  %v9243_v48 = vcombine.low %v749_v26, %v753_v27 }
 0x2a1   :  { %v9252_v50 = vcombine.high %v757_v49, %v761_v36  ;;  %v797_v26 = vld [vmem:[#allocation9 + $0xdc8] sm:$0xff] }
 0x2a2   :  { %3577 = vmatpush1.bf16.msra.mxu0 %v9201_v41  ;;  %v769_v41 = vld [vmem:[#allocation9 + $0xce8] sm:$0xff] }
 0x2a3   :  { %3741 = vmatpush1.bf16.msra.mxu1 %v9203_v42  ;;  %3578 = vmatprep.subr.bf16.mxu0 %v9210_v43  ;;  %v9249_v42 = vcombine.low %v756_v31, %v760_v33  ;;  %v9251_v43 = vcombine.low %v757_v49, %v761_v36  ;;  %v9260_v54 = vcombine.high %v765_v11, %v769_v41  ;;  %v801_v27 = vld [vmem:[#allocation9 + $0xde8] sm:$0xff]  ;;  %v808_v49 = vld [vmem:[#allocation9 + $0xe20] sm:$0xff] }
 0x2a4   :  { %3742 = vmatprep.subr.bf16.mxu1 %v9212_v45  ;;  %v9258_v45 = vcombine.high %v764_v55, %v768_v38  ;;  %v9292_v33 = vcombine.high %v797_v26, %v801_v27  ;;  %v805_v36 = vld [vmem:[#allocation9 + $0xe08] sm:$0xff] }
 0x2a6   :  { %3579 = vmatpush1.bf16.msra.mxu0 %v9209_v44  ;;  %v777_v44 = vld [vmem:[#allocation9 + $0xd28] sm:$0xff] }
 0x2a7   :  { %3743 = vmatpush1.bf16.msra.mxu1 %v9211_v3  ;;  %3580 = vmatprep.subr.bf16.mxu0 %v9218_v59  ;;  %v9257_v3 = vcombine.low %v764_v55, %v768_v38  ;;  %v9259_v59 = vcombine.low %v765_v11, %v769_v41  ;;  %v9268_v8 = vcombine.high %v773_v52, %v777_v44  ;;  %v812_v38 = vld [vmem:[#allocation9 + $0xe40] sm:$0xff]  ;;  %v813_v41 = vld [vmem:[#allocation9 + $0xe48] sm:$0xff] }
 0x2a8   :  { %3744 = vmatprep.subr.bf16.mxu1 %v9220_v60  ;;  %v9266_v60 = vcombine.high %v772_v47, %v776_v39  ;;  %v816_v11 = vld [vmem:[#allocation9 + $0xe60] sm:$0xff] }
 0x2aa   :  { %3581 = vmatpush1.bf16.msra.mxu0 %v9217_v14  ;;  %v785_v14 = vld [vmem:[#allocation9 + $0xd68] sm:$0xff] }
 0x2ab   :  { %3745 = vmatpush1.bf16.msra.mxu1 %v9219_v16  ;;  %3582 = vmatprep.subr.bf16.mxu0 %v9226_v18  ;;  %v9265_v16 = vcombine.low %v772_v47, %v776_v39  ;;  %v9267_v18 = vcombine.low %v773_v52, %v777_v44  ;;  %v9276_v19 = vcombine.high %v781_v13, %v785_v14  ;;  %v820_v39 = vld [vmem:[#allocation9 + $0xe80] sm:$0xff]  ;;  %v821_v44 = vld [vmem:[#allocation9 + $0xe88] sm:$0xff] }
 0x2ac   :  { %3746 = vmatprep.subr.bf16.mxu1 %v9228_v56  ;;  %v9274_v56 = vcombine.high %v780_v62, %v784_v10  ;;  %v824_v52 = vld [vmem:[#allocation9 + $0xea0] sm:$0xff] }
 0x2ae   :  { %3583 = vmatpush1.bf16.msra.mxu0 %v9225_v23  ;;  %v793_v23 = vld [vmem:[#allocation9 + $0xda8] sm:$0xff] }
 0x2af   :  { %3747 = vmatpush1.bf16.msra.mxu1 %v9227_v25  ;;  %3593 = vmatprep.subr.bf16.mxu0 %v9234_v53  ;;  %v9273_v25 = vcombine.low %v780_v62, %v784_v10  ;;  %v9275_v53 = vcombine.low %v781_v13, %v785_v14  ;;  %v9284_v5 = vcombine.high %v789_v22, %v793_v23  ;;  %v828_v10 = vld [vmem:[#allocation9 + $0xec0] sm:$0xff]  ;;  %v829_v14 = vld [vmem:[#allocation9 + $0xec8] sm:$0xff] }
 0x2b0   :  { %3757 = vmatprep.subr.bf16.mxu1 %v9236_v2  ;;  %v9282_v2 = vcombine.high %v788_v20, %v792_v21  ;;  %v832_v13 = vld [vmem:[#allocation9 + $0xee0] sm:$0xff] }
 0x2b1   :  { %3585 = vmatmul.mubr.bf16.vlgmr.msra.gmra.mrb[0].mxu0 %v10972_v28 }
 0x2b2   :  { %3749 = vmatmul.mubr.bf16.vlgmr.msra.gmra.mrb[0].mxu1 %v10972_v28  ;;  %3594 = vmatpush1.bf16.msra.mxu0 %v9233_v58  ;;  %v800_v58 = vld [vmem:[#allocation9 + $0xde0] sm:$0xff] }
 0x2b3   :  { %3625 = vmatprep.mubr.bf16.mxu0 %v10977_v34  ;;  %3758 = vmatpush1.bf16.msra.mxu1 %v9235_v29  ;;  %v9281_v29 = vcombine.low %v788_v20, %v792_v21  ;;  %v9290_v31 = vcombine.high %v796_v57, %v800_v58  ;;  %v836_v21 = vld [vmem:[#allocation9 + $0xf00] sm:$0xff] }
 0x2b4   :  { %3789 = vmatprep.mubr.bf16.mxu1 %v10977_v34  ;;  %3595 = vmatprep.subr.bf16.mxu0 %v9242_v30  ;;  %v9283_v30 = vcombine.low %v789_v22, %v793_v23  ;;  %v840_v22 = vld [vmem:[#allocation9 + $0xf20] sm:$0xff]  ;;  %v837_v23 = vld [vmem:[#allocation9 + $0xf08] sm:$0xff] }
 0x2b5   :  { %3759 = vmatprep.subr.bf16.mxu1 %v9244_v35  ;;  %v804_v35 = vld [vmem:[#allocation9 + $0xe00] sm:$0xff] }
 0x2b6   :  { %3596 = vmatpush1.bf16.msra.mxu0 %v9241_v17  ;;  %v809_v17 = vld [vmem:[#allocation9 + $0xe28] sm:$0xff] }
 0x2b7   :  { %3760 = vmatpush1.bf16.msra.mxu1 %v9243_v48  ;;  %3597 = vmatprep.subr.bf16.mxu0 %v9250_v51  ;;  %v9289_v48 = vcombine.low %v796_v57, %v800_v58  ;;  %v9291_v51 = vcombine.low %v797_v26, %v801_v27  ;;  %v9300_v55 = vcombine.high %v805_v36, %v809_v17  ;;  %v844_v58 = vld [vmem:[#allocation9 + $0xf40] sm:$0xff]  ;;  %v845_v27 = vld [vmem:[#allocation9 + $0xf48] sm:$0xff] }
 0x2b8   :  { %3761 = vmatprep.subr.bf16.mxu1 %v9252_v50  ;;  %v9298_v50 = vcombine.high %v804_v35, %v808_v49  ;;  %v848_v26 = vld [vmem:[#allocation9 + $0xf60] sm:$0xff] }
 0x2ba   :  { %3598 = vmatpush1.bf16.msra.mxu0 %v9249_v42  ;;  %v817_v42 = vld [vmem:[#allocation9 + $0xe68] sm:$0xff] }
 0x2bb   :  { %3762 = vmatpush1.bf16.msra.mxu1 %v9251_v43  ;;  %3599 = vmatprep.subr.bf16.mxu0 %v9258_v45  ;;  %v9297_v43 = vcombine.low %v804_v35, %v808_v49  ;;  %v9299_v45 = vcombine.low %v805_v36, %v809_v17  ;;  %v9308_v47 = vcombine.high %v813_v41, %v817_v42  ;;  %v852_v49 = vld [vmem:[#allocation9 + $0xf80] sm:$0xff]  ;;  %v853_v17 = vld [vmem:[#allocation9 + $0xf88] sm:$0xff] }
 0x2bc   :  { %3763 = vmatprep.subr.bf16.mxu1 %v9260_v54  ;;  %v9306_v54 = vcombine.high %v812_v38, %v816_v11  ;;  %v856_v36 = vld [vmem:[#allocation9 + $0xfa0] sm:$0xff] }
 0x2be   :  { %3600 = vmatpush1.bf16.msra.mxu0 %v9257_v3  ;;  %v825_v3 = vld [vmem:[#allocation9 + $0xea8] sm:$0xff] }
 0x2bf   :  { %3764 = vmatpush1.bf16.msra.mxu1 %v9259_v59  ;;  %3601 = vmatprep.subr.bf16.mxu0 %v9266_v60  ;;  %v9305_v59 = vcombine.low %v812_v38, %v816_v11  ;;  %v9307_v60 = vcombine.low %v813_v41, %v817_v42  ;;  %v9316_v62 = vcombine.high %v821_v44, %v825_v3  ;;  %v860_v11 = vld [vmem:[#allocation9 + $0xfc0] sm:$0xff]  ;;  %v861_v42 = vld [vmem:[#allocation9 + $0xfc8] sm:$0xff] }
 0x2c0   :  { %3765 = vmatprep.subr.bf16.mxu1 %v9268_v8  ;;  %v9314_v8 = vcombine.high %v820_v39, %v824_v52  ;;  %v864_v41 = vld [vmem:[#allocation9 + $0xfe0] sm:$0xff] }
 0x2c2   :  { %3602 = vmatpush1.bf16.msra.mxu0 %v9265_v16  ;;  %v833_v16 = vld [vmem:[#allocation9 + $0xee8] sm:$0xff] }
 0x2c3   :  { %3766 = vmatpush1.bf16.msra.mxu1 %v9267_v18  ;;  %3603 = vmatprep.subr.bf16.mxu0 %v9274_v56  ;;  %v9313_v18 = vcombine.low %v820_v39, %v824_v52  ;;  %v9315_v56 = vcombine.low %v821_v44, %v825_v3  ;;  %v9324_v20 = vcombine.high %v829_v14, %v833_v16  ;;  %v358_v52 = vld [vmem:[#allocation9 + $0x10] sm:$0xff]  ;;  %v359_v3 = vld [vmem:[#allocation9 + $0x18] sm:$0xff] }
 0x2c4   :  { %3767 = vmatprep.subr.bf16.mxu1 %v9276_v19  ;;  %v9322_v19 = vcombine.high %v828_v10, %v832_v13  ;;  %v362_v44 = vld [vmem:[#allocation9 + $0x30] sm:$0xff] }
 0x2c6   :  { %3604 = vmatpush1.bf16.msra.mxu0 %v9273_v25  ;;  %v841_v25 = vld [vmem:[#allocation9 + $0xf28] sm:$0xff] }
 0x2c7   :  { %3768 = vmatpush1.bf16.msra.mxu1 %v9275_v53  ;;  %3605 = vmatprep.subr.bf16.mxu0 %v9282_v2  ;;  %v9321_v53 = vcombine.low %v828_v10, %v832_v13  ;;  %v9323_v2 = vcombine.low %v829_v14, %v833_v16  ;;  %v9332_v57 = vcombine.high %v837_v23, %v841_v25  ;;  %v366_v13 = vld [vmem:[#allocation9 + $0x50] sm:$0xff] }
 0x2c8   :  { %3769 = vmatprep.subr.bf16.mxu1 %v9284_v5  ;;  %v9330_v5 = vcombine.high %v836_v21, %v840_v22  ;;  %v370_v14 = vld [vmem:[#allocation9 + $0x70] sm:$0xff]  ;;  %v8853_v16 = vcombine.low %v358_v52, %v362_v44 }
 0x2ca   :  { %3606 = vmatpush1.bf16.msra.mxu0 %v9281_v29  ;;  %v849_v29 = vld [vmem:[#allocation9 + $0xf68] sm:$0xff] }
 0x2cb   :  { %3770 = vmatpush1.bf16.msra.mxu1 %v9283_v30  ;;  %3607 = vmatprep.subr.bf16.mxu0 %v9290_v31  ;;  %v9329_v30 = vcombine.low %v836_v21, %v840_v22  ;;  %v9331_v31 = vcombine.low %v837_v23, %v841_v25  ;;  %v9340_v35 = vcombine.high %v845_v27, %v849_v29  ;;  %v374_v22 = vld [vmem:[#allocation9 + $0x90] sm:$0xff] }
 0x2cc   :  { %3771 = vmatprep.subr.bf16.mxu1 %v9292_v33  ;;  %v9338_v33 = vcombine.high %v844_v58, %v848_v26  ;;  %v8862_v21 = vcombine.high %v366_v13, %v370_v14  ;;  %v378_v23 = vld [vmem:[#allocation9 + $0xb0] sm:$0xff] }
 0x2ce   :  { %3608 = vmatpush1.bf16.msra.mxu0 %v9289_v48  ;;  %v857_v48 = vld [vmem:[#allocation9 + $0xfa8] sm:$0xff] }
 0x2cf   :  { %3772 = vmatpush1.bf16.msra.mxu1 %v9291_v51  ;;  %3609 = vmatprep.subr.bf16.mxu0 %v9298_v50  ;;  %v9337_v51 = vcombine.low %v844_v58, %v848_v26  ;;  %v9339_v50 = vcombine.low %v845_v27, %v849_v29  ;;  %v9348_v38 = vcombine.high %v853_v17, %v857_v48  ;;  %v382_v26 = vld [vmem:[#allocation9 + $0xd0] sm:$0xff]  ;;  %v383_v29 = vld [vmem:[#allocation9 + $0xd8] sm:$0xff] }
 0x2d0   :  { %3773 = vmatprep.subr.bf16.mxu1 %v9300_v55  ;;  %v9346_v55 = vcombine.high %v852_v49, %v856_v36  ;;  %v386_v27 = vld [vmem:[#allocation9 + $0xf0] sm:$0xff] }
 0x2d2   :  { %3610 = vmatpush1.bf16.msra.mxu0 %v9297_v43  ;;  %v865_v43 = vld [vmem:[#allocation9 + $0xfe8] sm:$0xff] }
 0x2d3   :  { %3774 = vmatpush1.bf16.msra.mxu1 %v9299_v45  ;;  %3611 = vmatprep.subr.bf16.mxu0 %v9306_v54  ;;  %v9345_v45 = vcombine.low %v852_v49, %v856_v36  ;;  %v9347_v54 = vcombine.low %v853_v17, %v857_v48  ;;  %v9356_v39 = vcombine.high %v861_v42, %v865_v43  ;;  %v390_v36 = vld [vmem:[#allocation9 + $0x110] sm:$0xff]  ;;  %v391_v48 = vld [vmem:[#allocation9 + $0x118] sm:$0xff] }
 0x2d4   :  { %3775 = vmatprep.subr.bf16.mxu1 %v9308_v47  ;;  %v9354_v47 = vcombine.high %v860_v11, %v864_v41  ;;  %v394_v17 = vld [vmem:[#allocation9 + $0x130] sm:$0xff] }
 0x2d6   :  { %3612 = vmatpush1.bf16.msra.mxu0 %v9305_v59  ;;  %v363_v59 = vld [vmem:[#allocation9 + $0x38] sm:$0xff] }
 0x2d7   :  { %3776 = vmatpush1.bf16.msra.mxu1 %v9307_v60  ;;  %3613 = vmatprep.subr.bf16.mxu0 %v9314_v8  ;;  %v9353_v60 = vcombine.low %v860_v11, %v864_v41  ;;  %v9355_v8 = vcombine.low %v861_v42, %v865_v43  ;;  %v8856_v10 = vcombine.high %v359_v3, %v363_v59  ;;  %v398_v11 = vld [vmem:[#allocation9 + $0x150] sm:$0xff]  ;;  %v399_v42 = vld [vmem:[#allocation9 + $0x158] sm:$0xff] }
 0x2d8   :  { %3777 = vmatprep.subr.bf16.mxu1 %v9316_v62  ;;  %v8854_v62 = vcombine.high %v358_v52, %v362_v44  ;;  %v402_v41 = vld [vmem:[#allocation9 + $0x170] sm:$0xff]  ;;  %v403_v43 = vld [vmem:[#allocation9 + $0x178] sm:$0xff] }
 0x2d9   :  { %v406_v52 = vld [vmem:[#allocation9 + $0x190] sm:$0xff] }
 0x2da   :  { %3614 = vmatpush1.bf16.msra.mxu0 %v9313_v18  ;;  %v367_v18 = vld [vmem:[#allocation9 + $0x58] sm:$0xff]  ;;  %v410_v44 = vld [vmem:[#allocation9 + $0x1b0] sm:$0xff] }
 0x2db   :  { %3778 = vmatpush1.bf16.msra.mxu1 %v9315_v56  ;;  %3615 = vmatprep.subr.bf16.mxu0 %v9322_v19  ;;  %v371_v56 = vld [vmem:[#allocation9 + $0x78] sm:$0xff]  ;;  %v10984_v19 = vpack.c.bf16 %v10956_v1, %v10956_v1 }
 0x2dc   :  { %3779 = vmatprep.subr.bf16.mxu1 %v9324_v20  ;;  %v8855_v20 = vcombine.low %v359_v3, %v363_v59  ;;  %v8864_v25 = vcombine.high %v367_v18, %v371_v56  ;;  %v8863_v1 = vcombine.low %v367_v18, %v371_v56  ;;  %v407_v3 = vld [vmem:[#allocation9 + $0x198] sm:$0xff]  ;;  %v8901_v56 = vcombine.low %v406_v52, %v410_v44 }
 0x2dd   :  { %v411_v59 = vld [vmem:[#allocation9 + $0x1b8] sm:$0xff] }
 0x2de   :  { %3616 = vmatpush1.bf16.msra.mxu0 %v9321_v53  ;;  %v375_v53 = vld [vmem:[#allocation9 + $0x98] sm:$0xff] }
 0x2df   :  { %3780 = vmatpush1.bf16.msra.mxu1 %v9323_v2  ;;  %3617 = vmatprep.subr.bf16.mxu0 %v9330_v5  ;;  %v379_v2 = vld [vmem:[#allocation9 + $0xb8] sm:$0xff]  ;;  %v8861_v5 = vcombine.low %v366_v13, %v370_v14  ;;  %v414_v13 = vld [vmem:[#allocation9 + $0x1d0] sm:$0xff] }
 0x2e0   :  { %3781 = vmatprep.subr.bf16.mxu1 %v9332_v57  ;;  %v8870_v57 = vcombine.high %v374_v22, %v378_v23  ;;  %v8872_v58 = vcombine.high %v375_v53, %v379_v2  ;;  %v418_v14 = vld [vmem:[#allocation9 + $0x1f0] sm:$0xff]  ;;  %v419_v18 = vld [vmem:[#allocation9 + $0x1f8] sm:$0xff] }
 0x2e2   :  { %3618 = vmatpush1.bf16.msra.mxu0 %v9329_v30  ;;  %v387_v30 = vld [vmem:[#allocation9 + $0xf8] sm:$0xff] }
 0x2e3   :  { %3782 = vmatpush1.bf16.msra.mxu1 %v9331_v31  ;;  %3619 = vmatprep.subr.bf16.mxu0 %v9338_v33  ;;  %v8869_v31 = vcombine.low %v374_v22, %v378_v23  ;;  %v8871_v33 = vcombine.low %v375_v53, %v379_v2  ;;  %v8880_v49 = vcombine.high %v383_v29, %v387_v30  ;;  %v422_v23 = vld [vmem:[#allocation9 + $0x210] sm:$0xff]  ;;  %v423_v53 = vld [vmem:[#allocation9 + $0x218] sm:$0xff] }
 0x2e4   :  { %3783 = vmatprep.subr.bf16.mxu1 %v9340_v35  ;;  %v8878_v35 = vcombine.high %v382_v26, %v386_v27  ;;  %v427_v2 = vld [vmem:[#allocation9 + $0x238] sm:$0xff] }
 0x2e6   :  { %3620 = vmatpush1.bf16.msra.mxu0 %v9337_v51  ;;  %v395_v51 = vld [vmem:[#allocation9 + $0x138] sm:$0xff] }
 0x2e7   :  { %3784 = vmatpush1.bf16.msra.mxu1 %v9339_v50  ;;  %3621 = vmatprep.subr.bf16.mxu0 %v9346_v55  ;;  %v8879_v50 = vcombine.low %v383_v29, %v387_v30  ;;  %v8886_v55 = vcombine.high %v390_v36, %v394_v17  ;;  %v431_v29 = vld [vmem:[#allocation9 + $0x258] sm:$0xff] }
 0x2e8   :  { %3785 = vmatprep.subr.bf16.mxu1 %v9348_v38  ;;  %v8888_v38 = vcombine.high %v391_v48, %v395_v51  ;;  %v435_v30 = vld [vmem:[#allocation9 + $0x278] sm:$0xff] }
 0x2ea   :  { %3622 = vmatpush1.bf16.msra.mxu0 %v9345_v45  ;;  %v8885_v45 = vcombine.low %v390_v36, %v394_v17  ;;  %v438_v36 = vld [vmem:[#allocation9 + $0x290] sm:$0xff] }
 0x2eb   :  { %3786 = vmatpush1.bf16.msra.mxu1 %v9347_v54  ;;  %3623 = vmatprep.subr.bf16.mxu0 %v9354_v47  ;;  %v8887_v54 = vcombine.low %v391_v48, %v395_v51  ;;  %v8894_v47 = vcombine.high %v398_v11, %v402_v41  ;;  %v442_v17 = vld [vmem:[#allocation9 + $0x2b0] sm:$0xff]  ;;  %v439_v48 = vld [vmem:[#allocation9 + $0x298] sm:$0xff] }
 0x2ec   :  { %3787 = vmatprep.subr.bf16.mxu1 %v9356_v39  ;;  %v8896_v39 = vcombine.high %v399_v42, %v403_v43  ;;  %v443_v51 = vld [vmem:[#allocation9 + $0x2b8] sm:$0xff] }
 0x2ee   :  { %3624 = vmatpush1.bf16.msra.mxu0 %v9353_v60  ;;  %v8893_v60 = vcombine.low %v398_v11, %v402_v41  ;;  %v446_v11 = vld [vmem:[#allocation9 + $0x2d0] sm:$0xff] }
 0x2ef   :  { %3788 = vmatpush1.bf16.msra.mxu1 %v9355_v8  ;;  %3798 = vmatprep.subr.bf16.mxu0 %v8854_v62  ;;  %v8895_v8 = vcombine.low %v399_v42, %v403_v43  ;;  %v8902_v62 = vcombine.high %v406_v52, %v410_v44  ;;  %v450_v41 = vld [vmem:[#allocation9 + $0x2f0] sm:$0xff]  ;;  %v447_v42 = vld [vmem:[#allocation9 + $0x2d8] sm:$0xff] }
 0x2f0   :  { %3962 = vmatprep.subr.bf16.mxu1 %v8856_v10  ;;  %v8904_v10 = vcombine.high %v407_v3, %v411_v59  ;;  %v451_v43 = vld [vmem:[#allocation9 + $0x2f8] sm:$0xff]  ;;  %v454_v52 = vld [vmem:[#allocation9 + $0x310] sm:$0xff] }
 0x2f1   :  { %3626 = vmatmul.mubr.bf16.vlgmr.msra.gmra.mrb[0].mxu0 %v10984_v19  ;;  %v458_v44 = vld [vmem:[#allocation9 + $0x330] sm:$0xff] }
 0x2f2   :  { %3790 = vmatmul.mubr.bf16.vlgmr.msra.gmra.mrb[0].mxu1 %v10984_v19  ;;  %3799 = vmatpush1.bf16.msra.mxu0 %v8853_v16  ;;  %v415_v16 = vld [vmem:[#allocation9 + $0x1d8] sm:$0xff] }
 0x2f3   :  { %3830 = vmatprep.mubr.bf16.mxu0 %v10929_v6  ;;  %3963 = vmatpush1.bf16.msra.mxu1 %v8855_v20  ;;  %v8903_v20 = vcombine.low %v407_v3, %v411_v59  ;;  %v8912_v22 = vcombine.high %v415_v16, %v419_v18  ;;  %v455_v3 = vld [vmem:[#allocation9 + $0x318] sm:$0xff] }
 0x2f4   :  { %3994 = vmatprep.mubr.bf16.mxu1 %v10929_v6  ;;  %3800 = vmatprep.subr.bf16.mxu0 %v8862_v21  ;;  %v8877_v6 = vcombine.low %v382_v26, %v386_v27  ;;  %v8910_v21 = vcombine.high %v414_v13, %v418_v14  ;;  %v430_v26 = vld [vmem:[#allocation9 + $0x250] sm:$0xff]  ;;  %v459_v59 = vld [vmem:[#allocation9 + $0x338] sm:$0xff] }
 0x2f5   :  { %3964 = vmatprep.subr.bf16.mxu1 %v8864_v25  ;;  %v426_v25 = vld [vmem:[#allocation9 + $0x230] sm:$0xff] }
 0x2f6   :  { %3801 = vmatpush1.bf16.msra.mxu0 %v8861_v5  ;;  %v8909_v5 = vcombine.low %v414_v13, %v418_v14  ;;  %v434_v27 = vld [vmem:[#allocation9 + $0x270] sm:$0xff] }
 0x2f7   :  { %3965 = vmatpush1.bf16.msra.mxu1 %v8863_v1  ;;  %3802 = vmatprep.subr.bf16.mxu0 %v8870_v57  ;;  %v8911_v1 = vcombine.low %v415_v16, %v419_v18  ;;  %v8918_v57 = vcombine.high %v422_v23, %v426_v25  ;;  %v462_v13 = vld [vmem:[#allocation9 + $0x350] sm:$0xff]  ;;  %v463_v16 = vld [vmem:[#allocation9 + $0x358] sm:$0xff] }
 0x2f8   :  { %3966 = vmatprep.subr.bf16.mxu1 %v8872_v58  ;;  %v8920_v58 = vcombine.high %v423_v53, %v427_v2  ;;  %v466_v14 = vld [vmem:[#allocation9 + $0x370] sm:$0xff]  ;;  %v467_v18 = vld [vmem:[#allocation9 + $0x378] sm:$0xff] }
 0x2fa   :  { %3803 = vmatpush1.bf16.msra.mxu0 %v8869_v31  ;;  %v8917_v31 = vcombine.low %v422_v23, %v426_v25  ;;  %v470_v23 = vld [vmem:[#allocation9 + $0x390] sm:$0xff] }
 0x2fb   :  { %3967 = vmatpush1.bf16.msra.mxu1 %v8871_v33  ;;  %3804 = vmatprep.subr.bf16.mxu0 %v8878_v35  ;;  %v8919_v33 = vcombine.low %v423_v53, %v427_v2  ;;  %v8926_v35 = vcombine.high %v430_v26, %v434_v27  ;;  %v474_v25 = vld [vmem:[#allocation9 + $0x3b0] sm:$0xff]  ;;  %v471_v53 = vld [vmem:[#allocation9 + $0x398] sm:$0xff] }
 0x2fc   :  { %3968 = vmatprep.subr.bf16.mxu1 %v8880_v49  ;;  %v8928_v49 = vcombine.high %v431_v29, %v435_v30  ;;  %v475_v2 = vld [vmem:[#allocation9 + $0x3b8] sm:$0xff] }
 0x2fe   :  { %3805 = vmatpush1.bf16.msra.mxu0 %v8877_v6  ;;  %v8925_v6 = vcombine.low %v430_v26, %v434_v27  ;;  %v478_v26 = vld [vmem:[#allocation9 + $0x3d0] sm:$0xff] }
 0x2ff   :  { %3969 = vmatpush1.bf16.msra.mxu1 %v8879_v50  ;;  %3806 = vmatprep.subr.bf16.mxu0 %v8886_v55  ;;  %v8927_v50 = vcombine.low %v431_v29, %v435_v30  ;;  %v8934_v55 = vcombine.high %v438_v36, %v442_v17  ;;  %v482_v27 = vld [vmem:[#allocation9 + $0x3f0] sm:$0xff]  ;;  %v479_v29 = vld [vmem:[#allocation9 + $0x3d8] sm:$0xff] }
 0x300   :  { %3970 = vmatprep.subr.bf16.mxu1 %v8888_v38  ;;  %v8936_v38 = vcombine.high %v439_v48, %v443_v51  ;;  %v483_v30 = vld [vmem:[#allocation9 + $0x3f8] sm:$0xff] }
 0x302   :  { %3807 = vmatpush1.bf16.msra.mxu0 %v8885_v45  ;;  %v8933_v45 = vcombine.low %v438_v36, %v442_v17  ;;  %v486_v36 = vld [vmem:[#allocation9 + $0x410] sm:$0xff] }
 0x303   :  { %3971 = vmatpush1.bf16.msra.mxu1 %v8887_v54  ;;  %3808 = vmatprep.subr.bf16.mxu0 %v8894_v47  ;;  %v8935_v54 = vcombine.low %v439_v48, %v443_v51  ;;  %v8942_v47 = vcombine.high %v446_v11, %v450_v41  ;;  %v490_v17 = vld [vmem:[#allocation9 + $0x430] sm:$0xff]  ;;  %v487_v48 = vld [vmem:[#allocation9 + $0x418] sm:$0xff] }
 0x304   :  { %3972 = vmatprep.subr.bf16.mxu1 %v8896_v39  ;;  %v8944_v39 = vcombine.high %v447_v42, %v451_v43  ;;  %v491_v51 = vld [vmem:[#allocation9 + $0x438] sm:$0xff] }
 0x306   :  { %3809 = vmatpush1.bf16.msra.mxu0 %v8893_v60  ;;  %v8941_v60 = vcombine.low %v446_v11, %v450_v41  ;;  %v494_v11 = vld [vmem:[#allocation9 + $0x450] sm:$0xff] }
 0x307   :  { %3973 = vmatpush1.bf16.msra.mxu1 %v8895_v8  ;;  %3810 = vmatprep.subr.bf16.mxu0 %v8902_v62  ;;  %v8943_v8 = vcombine.low %v447_v42, %v451_v43  ;;  %v8950_v62 = vcombine.high %v454_v52, %v458_v44  ;;  %v498_v41 = vld [vmem:[#allocation9 + $0x470] sm:$0xff]  ;;  %v8981_v42 = vcombine.low %v486_v36, %v490_v17  ;;  %v495_v43 = vld [vmem:[#allocation9 + $0x458] sm:$0xff] }
 0x308   :  { %3974 = vmatprep.subr.bf16.mxu1 %v8904_v10  ;;  %v8952_v10 = vcombine.high %v455_v3, %v459_v59 }
 0x30a   :  { %3811 = vmatpush1.bf16.msra.mxu0 %v8901_v56  ;;  %v8949_v56 = vcombine.low %v454_v52, %v458_v44  ;;  %v506_v52 = vld [vmem:[#allocation9 + $0x4b0] sm:$0xff] }
 0x30b   :  { %3975 = vmatpush1.bf16.msra.mxu1 %v8903_v20  ;;  %3812 = vmatprep.subr.bf16.mxu0 %v8910_v21  ;;  %v8951_v20 = vcombine.low %v455_v3, %v459_v59  ;;  %v8958_v21 = vcombine.high %v462_v13, %v466_v14  ;;  %v503_v3 = vld [vmem:[#allocation9 + $0x498] sm:$0xff] }
 0x30c   :  { %3976 = vmatprep.subr.bf16.mxu1 %v8912_v22  ;;  %v8960_v22 = vcombine.high %v463_v16, %v467_v18  ;;  %v507_v59 = vld [vmem:[#allocation9 + $0x4b8] sm:$0xff] }
 0x30e   :  { %3813 = vmatpush1.bf16.msra.mxu0 %v8909_v5  ;;  %v8957_v5 = vcombine.low %v462_v13, %v466_v14  ;;  %v510_v13 = vld [vmem:[#allocation9 + $0x4d0] sm:$0xff] }
 0x30f   :  { %3977 = vmatpush1.bf16.msra.mxu1 %v8911_v1  ;;  %3814 = vmatprep.subr.bf16.mxu0 %v8918_v57  ;;  %v8959_v1 = vcombine.low %v463_v16, %v467_v18  ;;  %v8966_v57 = vcombine.high %v470_v23, %v474_v25  ;;  %v514_v14 = vld [vmem:[#allocation9 + $0x4f0] sm:$0xff]  ;;  %v511_v16 = vld [vmem:[#allocation9 + $0x4d8] sm:$0xff] }
 0x310   :  { %3978 = vmatprep.subr.bf16.mxu1 %v8920_v58  ;;  %v8968_v58 = vcombine.high %v471_v53, %v475_v2  ;;  %v515_v18 = vld [vmem:[#allocation9 + $0x4f8] sm:$0xff] }
 0x312   :  { %3815 = vmatpush1.bf16.msra.mxu0 %v8917_v31  ;;  %v8965_v31 = vcombine.low %v470_v23, %v474_v25  ;;  %v522_v23 = vld [vmem:[#allocation9 + $0x530] sm:$0xff]  ;;  %v519_v25 = vld [vmem:[#allocation9 + $0x518] sm:$0xff] }
 0x313   :  { %3979 = vmatpush1.bf16.msra.mxu1 %v8919_v33  ;;  %3816 = vmatprep.subr.bf16.mxu0 %v8926_v35  ;;  %v8967_v33 = vcombine.low %v471_v53, %v475_v2  ;;  %v8974_v35 = vcombine.high %v478_v26, %v482_v27  ;;  %v523_v53 = vld [vmem:[#allocation9 + $0x538] sm:$0xff]  ;;  %v9007_v2 = vcombine.low %v511_v16, %v515_v18 }
 0x314   :  { %3980 = vmatprep.subr.bf16.mxu1 %v8928_v49  ;;  %v8976_v49 = vcombine.high %v479_v29, %v483_v30 }
 0x316   :  { %3817 = vmatpush1.bf16.msra.mxu0 %v8925_v6  ;;  %v8973_v6 = vcombine.low %v478_v26, %v482_v27  ;;  %v527_v26 = vld [vmem:[#allocation9 + $0x558] sm:$0xff] }
 0x317   :  { %3981 = vmatpush1.bf16.msra.mxu1 %v8927_v50  ;;  %3818 = vmatprep.subr.bf16.mxu0 %v8934_v55  ;;  %v8975_v50 = vcombine.low %v479_v29, %v483_v30  ;;  %v8982_v55 = vcombine.high %v486_v36, %v490_v17  ;;  %v531_v27 = vld [vmem:[#allocation9 + $0x578] sm:$0xff]  ;;  %v9015_v30 = vcombine.low %v519_v25, %v523_v53 }
 0x318   :  { %3982 = vmatprep.subr.bf16.mxu1 %v8936_v38  ;;  %v8984_v38 = vcombine.high %v487_v48, %v491_v51  ;;  %v535_v36 = vld [vmem:[#allocation9 + $0x598] sm:$0xff] }
 0x319   :  { %v539_v17 = vld [vmem:[#allocation9 + $0x5b8] sm:$0xff] }
 0x31a   :  { %3819 = vmatpush1.bf16.msra.mxu0 %v8933_v45  ;;  %v499_v45 = vld [vmem:[#allocation9 + $0x478] sm:$0xff] }
 0x31b   :  { %3983 = vmatpush1.bf16.msra.mxu1 %v8935_v54  ;;  %3820 = vmatprep.subr.bf16.mxu0 %v8942_v47  ;;  %v8983_v54 = vcombine.low %v487_v48, %v491_v51  ;;  %v8990_v47 = vcombine.high %v494_v11, %v498_v41  ;;  %v8992_v44 = vcombine.high %v495_v43, %v499_v45 }
 0x31c   :  { %3984 = vmatprep.subr.bf16.mxu1 %v8944_v39  ;;  %v502_v39 = vld [vmem:[#allocation9 + $0x490] sm:$0xff]  ;;  %v9023_v51 = vcombine.low %v527_v26, %v531_v27 }
 0x31e   :  { %3821 = vmatpush1.bf16.msra.mxu0 %v8941_v60  ;;  %v8989_v60 = vcombine.low %v494_v11, %v498_v41  ;;  %v543_v11 = vld [vmem:[#allocation9 + $0x5d8] sm:$0xff] }
 0x31f   :  { %3985 = vmatpush1.bf16.msra.mxu1 %v8943_v8  ;;  %3822 = vmatprep.subr.bf16.mxu0 %v8950_v62  ;;  %v8991_v8 = vcombine.low %v495_v43, %v499_v45  ;;  %v8998_v62 = vcombine.high %v502_v39, %v506_v52  ;;  %v547_v41 = vld [vmem:[#allocation9 + $0x5f8] sm:$0xff]  ;;  %v9031_v43 = vcombine.low %v535_v36, %v539_v17 }
 0x320   :  { %3986 = vmatprep.subr.bf16.mxu1 %v8952_v10  ;;  %v9000_v10 = vcombine.high %v503_v3, %v507_v59 }
 0x322   :  { %3823 = vmatpush1.bf16.msra.mxu0 %v8949_v56  ;;  %v8997_v56 = vcombine.low %v502_v39, %v506_v52  ;;  %v554_v39 = vld [vmem:[#allocation9 + $0x630] sm:$0xff]  ;;  %v551_v52 = vld [vmem:[#allocation9 + $0x618] sm:$0xff] }
 0x323   :  { %3987 = vmatpush1.bf16.msra.mxu1 %v8951_v20  ;;  %3824 = vmatprep.subr.bf16.mxu0 %v8958_v21  ;;  %v9006_v20 = vcombine.high %v510_v13, %v514_v14  ;;  %v9008_v21 = vcombine.high %v511_v16, %v515_v18 }
 0x324   :  { %3988 = vmatprep.subr.bf16.mxu1 %v8960_v22  ;;  %v518_v22 = vld [vmem:[#allocation9 + $0x510] sm:$0xff] }
 0x325   :  { %v9013_v29 = vcombine.low %v518_v22, %v522_v23 }
 0x326   :  { %3825 = vmatpush1.bf16.msra.mxu0 %v8957_v5  ;;  %v9014_v5 = vcombine.high %v518_v22, %v522_v23  ;;  %v567_v22 = vld [vmem:[#allocation9 + $0x698] sm:$0xff] }
 0x327   :  { %3989 = vmatpush1.bf16.msra.mxu1 %v8959_v1  ;;  %3826 = vmatprep.subr.bf16.mxu0 %v8966_v57  ;;  %v9016_v1 = vcombine.high %v519_v25, %v523_v53  ;;  %v526_v57 = vld [vmem:[#allocation9 + $0x550] sm:$0xff]  ;;  %v571_v23 = vld [vmem:[#allocation9 + $0x6b8] sm:$0xff] }
 0x328   :  { %3990 = vmatprep.subr.bf16.mxu1 %v8968_v58  ;;  %v530_v58 = vld [vmem:[#allocation9 + $0x570] sm:$0xff] }
 0x329   :  { %v9021_v48 = vcombine.low %v526_v57, %v530_v58 }
 0x32a   :  { %3827 = vmatpush1.bf16.msra.mxu0 %v8965_v31  ;;  %v9022_v31 = vcombine.high %v526_v57, %v530_v58  ;;  %v575_v57 = vld [vmem:[#allocation9 + $0x6d8] sm:$0xff] }
 0x32b   :  { %3991 = vmatpush1.bf16.msra.mxu1 %v8967_v33  ;;  %3828 = vmatprep.subr.bf16.mxu0 %v8974_v35  ;;  %v9024_v33 = vcombine.high %v527_v26, %v531_v27  ;;  %v534_v35 = vld [vmem:[#allocation9 + $0x590] sm:$0xff]  ;;  %v579_v58 = vld [vmem:[#allocation9 + $0x6f8] sm:$0xff]  ;;  %v9063_v27 = vcombine.low %v567_v22, %v571_v23 }
 0x32c   :  { %3992 = vmatprep.subr.bf16.mxu1 %v8976_v49  ;;  %v538_v49 = vld [vmem:[#allocation9 + $0x5b0] sm:$0xff] }
 0x32e   :  { %3829 = vmatpush1.bf16.msra.mxu0 %v8973_v6  ;;  %v9030_v6 = vcombine.high %v534_v35, %v538_v49 }
 0x32f   :  { %3993 = vmatpush1.bf16.msra.mxu1 %v8975_v50  ;;  %3839 = vmatprep.subr.bf16.mxu0 %v8982_v55  ;;  %v9032_v50 = vcombine.high %v535_v36, %v539_v17  ;;  %v542_v55 = vld [vmem:[#allocation9 + $0x5d0] sm:$0xff]  ;;  %v9071_v17 = vcombine.low %v575_v57, %v579_v58 }
 0x330   :  { %4003 = vmatprep.subr.bf16.mxu1 %v8984_v38  ;;  %v546_v38 = vld [vmem:[#allocation9 + $0x5f0] sm:$0xff] }
 0x331   :  { %3831 = vmatmul.mubr.bf16.vlgmr.msra.gmra.mrb[4].mxu0 %v10931_v46  ;;  %v9038_v45 = vcombine.high %v542_v55, %v546_v38 }
 0x332   :  { %3995 = vmatmul.mubr.bf16.vlgmr.msra.gmra.mrb[4].mxu1 %v10931_v46  ;;  %3840 = vmatpush1.bf16.msra.mxu0 %v8981_v42  ;;  %v8999_v46 = vcombine.low %v503_v3, %v507_v59  ;;  %v9029_v42 = vcombine.low %v534_v35, %v538_v49  ;;  %v9037_v3 = vcombine.low %v542_v55, %v546_v38  ;;  %v583_v35 = vld [vmem:[#allocation9 + $0x718] sm:$0xff] }
 0x333   :  { %3871 = vmatprep.mubr.bf16.mxu0 %v10942_v4  ;;  %4004 = vmatpush1.bf16.msra.mxu1 %v8983_v54  ;;  %v9040_v54 = vcombine.high %v543_v11, %v547_v41  ;;  %v9039_v59 = vcombine.low %v543_v11, %v547_v41  ;;  %v587_v49 = vld [vmem:[#allocation9 + $0x738] sm:$0xff] }
 0x334   :  { %4035 = vmatprep.mubr.bf16.mxu1 %v10942_v4  ;;  %3841 = vmatprep.subr.bf16.mxu0 %v8990_v47  ;;  %v9005_v4 = vcombine.low %v510_v13, %v514_v14  ;;  %v550_v47 = vld [vmem:[#allocation9 + $0x610] sm:$0xff]  ;;  %v559_v13 = vld [vmem:[#allocation9 + $0x658] sm:$0xff]  ;;  %v9079_v41 = vcombine.low %v583_v35, %v587_v49 }
 0x335   :  { %4005 = vmatprep.subr.bf16.mxu1 %v8992_v44  ;;  %v555_v44 = vld [vmem:[#allocation9 + $0x638] sm:$0xff]  ;;  %v9045_v16 = vcombine.low %v550_v47, %v554_v39 }
 0x336   :  { %3842 = vmatpush1.bf16.msra.mxu0 %v8989_v60  ;;  %v9046_v60 = vcombine.high %v550_v47, %v554_v39  ;;  %v563_v14 = vld [vmem:[#allocation9 + $0x678] sm:$0xff]  ;;  %v9047_v18 = vcombine.low %v551_v52, %v555_v44 }
 0x337   :  { %4006 = vmatpush1.bf16.msra.mxu1 %v8991_v8  ;;  %3843 = vmatprep.subr.bf16.mxu0 %v8998_v62  ;;  %v9048_v8 = vcombine.high %v551_v52, %v555_v44  ;;  %v558_v62 = vld [vmem:[#allocation9 + $0x650] sm:$0xff]  ;;  %v9055_v53 = vcombine.low %v559_v13, %v563_v14  ;;  %v591_v55 = vld [vmem:[#allocation9 + $0x758] sm:$0xff] }
 0x338   :  { %4007 = vmatprep.subr.bf16.mxu1 %v9000_v10  ;;  %v562_v10 = vld [vmem:[#allocation9 + $0x670] sm:$0xff]  ;;  %v595_v38 = vld [vmem:[#allocation9 + $0x778] sm:$0xff] }
 0x339   :  { %v9053_v25 = vcombine.low %v558_v62, %v562_v10  ;;  %v599_v47 = vld [vmem:[#allocation9 + $0x798] sm:$0xff]  ;;  %v9087_v44 = vcombine.low %v591_v55, %v595_v38 }
 0x33a   :  { %3844 = vmatpush1.bf16.msra.mxu0 %v8997_v56  ;;  %v9054_v56 = vcombine.high %v558_v62, %v562_v10  ;;  %v603_v39 = vld [vmem:[#allocation9 + $0x7b8] sm:$0xff] }
 0x33b   :  { %4008 = vmatpush1.bf16.msra.mxu1 %v8999_v46  ;;  %3845 = vmatprep.subr.bf16.mxu0 %v9006_v20  ;;  %v9056_v46 = vcombine.high %v559_v13, %v563_v14  ;;  %v566_v20 = vld [vmem:[#allocation9 + $0x690] sm:$0xff]  ;;  %v607_v62 = vld [vmem:[#allocation9 + $0x7d8] sm:$0xff]  ;;  %v9095_v14 = vcombine.low %v599_v47, %v603_v39 }
 0x33c   :  { %4009 = vmatprep.subr.bf16.mxu1 %v9008_v21  ;;  %v570_v21 = vld [vmem:[#allocation9 + $0x6b0] sm:$0xff]  ;;  %v611_v10 = vld [vmem:[#allocation9 + $0x7f8] sm:$0xff] }
 0x33d   :  { %v9061_v26 = vcombine.low %v566_v20, %v570_v21 }
 0x33e   :  { %3846 = vmatpush1.bf16.msra.mxu0 %v9005_v4  ;;  %v9062_v4 = vcombine.high %v566_v20, %v570_v21  ;;  %v615_v20 = vld [vmem:[#allocation9 + $0x818] sm:$0xff] }
 0x33f   :  { %4010 = vmatpush1.bf16.msra.mxu1 %v9007_v2  ;;  %3847 = vmatprep.subr.bf16.mxu0 %v9014_v5  ;;  %v9064_v2 = vcombine.high %v567_v22, %v571_v23  ;;  %v574_v5 = vld [vmem:[#allocation9 + $0x6d0] sm:$0xff]  ;;  %v619_v21 = vld [vmem:[#allocation9 + $0x838] sm:$0xff]  ;;  %v9103_v23 = vcombine.low %v607_v62, %v611_v10 }
 0x340   :  { %4011 = vmatprep.subr.bf16.mxu1 %v9016_v1  ;;  %v578_v1 = vld [vmem:[#allocation9 + $0x6f0] sm:$0xff] }
 0x341   :  { %v9069_v36 = vcombine.low %v574_v5, %v578_v1 }
 0x342   :  { %3848 = vmatpush1.bf16.msra.mxu0 %v9013_v29  ;;  %v9070_v29 = vcombine.high %v574_v5, %v578_v1  ;;  %v623_v1 = vld [vmem:[#allocation9 + $0x858] sm:$0xff] }
 0x343   :  { %4012 = vmatpush1.bf16.msra.mxu1 %v9015_v30  ;;  %3849 = vmatprep.subr.bf16.mxu0 %v9022_v31  ;;  %v9072_v30 = vcombine.high %v575_v57, %v579_v58  ;;  %v582_v31 = vld [vmem:[#allocation9 + $0x710] sm:$0xff]  ;;  %v627_v57 = vld [vmem:[#allocation9 + $0x878] sm:$0xff]  ;;  %v9111_v58 = vcombine.low %v615_v20, %v619_v21 }
 0x344   :  { %4013 = vmatprep.subr.bf16.mxu1 %v9024_v33  ;;  %v586_v33 = vld [vmem:[#allocation9 + $0x730] sm:$0xff] }
 0x345   :  { %v9077_v11 = vcombine.low %v582_v31, %v586_v33 }
 0x346   :  { %3850 = vmatpush1.bf16.msra.mxu0 %v9021_v48  ;;  %v9078_v48 = vcombine.high %v582_v31, %v586_v33  ;;  %v631_v31 = vld [vmem:[#allocation9 + $0x898] sm:$0xff] }
 0x347   :  { %4014 = vmatpush1.bf16.msra.mxu1 %v9023_v51  ;;  %3851 = vmatprep.subr.bf16.mxu0 %v9030_v6  ;;  %v9080_v51 = vcombine.high %v583_v35, %v587_v49  ;;  %v590_v6 = vld [vmem:[#allocation9 + $0x750] sm:$0xff]  ;;  %v635_v33 = vld [vmem:[#allocation9 + $0x8b8] sm:$0xff]  ;;  %v9119_v49 = vcombine.low %v623_v1, %v627_v57 }
 0x348   :  { %4015 = vmatprep.subr.bf16.mxu1 %v9032_v50  ;;  %v594_v50 = vld [vmem:[#allocation9 + $0x770] sm:$0xff] }
 0x349   :  { %v9085_v52 = vcombine.low %v590_v6, %v594_v50 }
 0x34a   :  { %3852 = vmatpush1.bf16.msra.mxu0 %v9029_v42  ;;  %v9086_v42 = vcombine.high %v590_v6, %v594_v50  ;;  %v639_v6 = vld [vmem:[#allocation9 + $0x8d8] sm:$0xff] }
 0x34b   :  { %4016 = vmatpush1.bf16.msra.mxu1 %v9031_v43  ;;  %3853 = vmatprep.subr.bf16.mxu0 %v9038_v45  ;;  %v9088_v43 = vcombine.high %v591_v55, %v595_v38  ;;  %v598_v45 = vld [vmem:[#allocation9 + $0x790] sm:$0xff]  ;;  %v643_v50 = vld [vmem:[#allocation9 + $0x8f8] sm:$0xff] }
 0x34c   :  { %4017 = vmatprep.subr.bf16.mxu1 %v9040_v54  ;;  %v602_v54 = vld [vmem:[#allocation9 + $0x7b0] sm:$0xff] }
 0x34d   :  { %v9093_v13 = vcombine.low %v598_v45, %v602_v54 }
 0x34e   :  { %3854 = vmatpush1.bf16.msra.mxu0 %v9037_v3  ;;  %v9094_v3 = vcombine.high %v598_v45, %v602_v54  ;;  %v651_v45 = vld [vmem:[#allocation9 + $0x938] sm:$0xff]  ;;  %v9135_v54 = vcombine.low %v639_v6, %v643_v50 }
 0x34f   :  { %4018 = vmatpush1.bf16.msra.mxu1 %v9039_v59  ;;  %3855 = vmatprep.subr.bf16.mxu0 %v9046_v60  ;;  %v9096_v59 = vcombine.high %v599_v47, %v603_v39  ;;  %v606_v60 = vld [vmem:[#allocation9 + $0x7d0] sm:$0xff] }
 0x350   :  { %4019 = vmatprep.subr.bf16.mxu1 %v9048_v8  ;;  %v610_v8 = vld [vmem:[#allocation9 + $0x7f0] sm:$0xff] }
 0x351   :  { %v9101_v22 = vcombine.low %v606_v60, %v610_v8 }
 0x352   :  { %3856 = vmatpush1.bf16.msra.mxu0 %v9045_v16  ;;  %v9102_v16 = vcombine.high %v606_v60, %v610_v8 }
 0x353   :  { %4020 = vmatpush1.bf16.msra.mxu1 %v9047_v18  ;;  %3857 = vmatprep.subr.bf16.mxu0 %v9054_v56  ;;  %v9104_v18 = vcombine.high %v607_v62, %v611_v10  ;;  %v614_v56 = vld [vmem:[#allocation9 + $0x810] sm:$0xff] }
 0x354   :  { %4021 = vmatprep.subr.bf16.mxu1 %v9056_v46  ;;  %v618_v46 = vld [vmem:[#allocation9 + $0x830] sm:$0xff] }
 0x355   :  { %v9109_v5 = vcombine.low %v614_v56, %v618_v46 }
 0x356   :  { %3858 = vmatpush1.bf16.msra.mxu0 %v9053_v25  ;;  %v9110_v25 = vcombine.high %v614_v56, %v618_v46 }
 0x357   :  { %4022 = vmatpush1.bf16.msra.mxu1 %v9055_v53  ;;  %3859 = vmatprep.subr.bf16.mxu0 %v9062_v4  ;;  %v9112_v53 = vcombine.high %v615_v20, %v619_v21  ;;  %v622_v4 = vld [vmem:[#allocation9 + $0x850] sm:$0xff] }
 0x358   :  { %4023 = vmatprep.subr.bf16.mxu1 %v9064_v2  ;;  %v626_v2 = vld [vmem:[#allocation9 + $0x870] sm:$0xff] }
 0x359   :  { %v9117_v35 = vcombine.low %v622_v4, %v626_v2 }
 0x35a   :  { %3860 = vmatpush1.bf16.msra.mxu0 %v9061_v26  ;;  %v9118_v26 = vcombine.high %v622_v4, %v626_v2 }
 0x35b   :  { %4024 = vmatpush1.bf16.msra.mxu1 %v9063_v27  ;;  %3861 = vmatprep.subr.bf16.mxu0 %v9070_v29  ;;  %v630_v27 = vld [vmem:[#allocation9 + $0x890] sm:$0xff] }
 0x35c   :  { %4025 = vmatprep.subr.bf16.mxu1 %v9072_v30  ;;  %v634_v29 = vld [vmem:[#allocation9 + $0x8b0] sm:$0xff]  ;;  %v9120_v30 = vcombine.high %v623_v1, %v627_v57 }
 0x35d   :  { %v9125_v55 = vcombine.low %v630_v27, %v634_v29  ;;  %v678_v57 = vld [vmem:[#allocation9 + $0xa10] sm:$0xff] }
 0x35e   :  { %3862 = vmatpush1.bf16.msra.mxu0 %v9069_v36  ;;  %v9126_v36 = vcombine.high %v630_v27, %v634_v29  ;;  %v683_v27 = vld [vmem:[#allocation9 + $0xa38] sm:$0xff] }
 0x35f   :  { %4026 = vmatpush1.bf16.msra.mxu1 %v9071_v17  ;;  %3863 = vmatprep.subr.bf16.mxu0 %v9078_v48  ;;  %v9128_v17 = vcombine.high %v631_v31, %v635_v33  ;;  %v638_v48 = vld [vmem:[#allocation9 + $0x8d0] sm:$0xff] }
 0x360   :  { %4027 = vmatprep.subr.bf16.mxu1 %v9080_v51  ;;  %v642_v51 = vld [vmem:[#allocation9 + $0x8f0] sm:$0xff] }
 0x361   :  { %v9134_v38 = vcombine.high %v638_v48, %v642_v51 }
 0x362   :  { %3864 = vmatpush1.bf16.msra.mxu0 %v9077_v11  ;;  %v9136_v11 = vcombine.high %v639_v6, %v643_v50 }
 0x363   :  { %4028 = vmatpush1.bf16.msra.mxu1 %v9079_v41  ;;  %3865 = vmatprep.subr.bf16.mxu0 %v9086_v42  ;;  %v646_v41 = vld [vmem:[#allocation9 + $0x910] sm:$0xff] }
 0x364   :  { %4029 = vmatprep.subr.bf16.mxu1 %v9088_v43  ;;  %v650_v42 = vld [vmem:[#allocation9 + $0x930] sm:$0xff]  ;;  %v647_v43 = vld [vmem:[#allocation9 + $0x918] sm:$0xff] }
 0x365   :  { %v9142_v47 = vcombine.high %v646_v41, %v650_v42  ;;  %v9144_v39 = vcombine.high %v647_v43, %v651_v45  ;;  %v9141_v60 = vcombine.low %v646_v41, %v650_v42  ;;  %v9143_v8 = vcombine.low %v647_v43, %v651_v45 }
 0x366   :  { %3866 = vmatpush1.bf16.msra.mxu0 %v9085_v52  ;;  %v654_v52 = vld [vmem:[#allocation9 + $0x950] sm:$0xff] }
 0x367   :  { %4030 = vmatpush1.bf16.msra.mxu1 %v9087_v44  ;;  %3867 = vmatprep.subr.bf16.mxu0 %v9094_v3  ;;  %v658_v44 = vld [vmem:[#allocation9 + $0x970] sm:$0xff]  ;;  %v655_v3 = vld [vmem:[#allocation9 + $0x958] sm:$0xff] }
 0x368   :  { %4031 = vmatprep.subr.bf16.mxu1 %v9096_v59  ;;  %v659_v59 = vld [vmem:[#allocation9 + $0x978] sm:$0xff]  ;;  %v9150_v62 = vcombine.high %v654_v52, %v658_v44  ;;  %v9149_v56 = vcombine.low %v654_v52, %v658_v44 }
 0x369   :  { %v9152_v10 = vcombine.high %v655_v3, %v659_v59  ;;  %v9151_v46 = vcombine.low %v655_v3, %v659_v59 }
 0x36a   :  { %3868 = vmatpush1.bf16.msra.mxu0 %v9093_v13  ;;  %v662_v13 = vld [vmem:[#allocation9 + $0x990] sm:$0xff] }
 0x36b   :  { %4032 = vmatpush1.bf16.msra.mxu1 %v9095_v14  ;;  %3869 = vmatprep.subr.bf16.mxu0 %v9102_v16  ;;  %v666_v14 = vld [vmem:[#allocation9 + $0x9b0] sm:$0xff]  ;;  %v663_v16 = vld [vmem:[#allocation9 + $0x998] sm:$0xff] }
 0x36c   :  { %4033 = vmatprep.subr.bf16.mxu1 %v9104_v18  ;;  %v667_v18 = vld [vmem:[#allocation9 + $0x9b8] sm:$0xff]  ;;  %v9158_v20 = vcombine.high %v662_v13, %v666_v14  ;;  %v9157_v4 = vcombine.low %v662_v13, %v666_v14 }
 0x36d   :  { %v9160_v21 = vcombine.high %v663_v16, %v667_v18  ;;  %v9159_v2 = vcombine.low %v663_v16, %v667_v18 }
 0x36e   :  { %3870 = vmatpush1.bf16.msra.mxu0 %v9101_v22  ;;  %v670_v22 = vld [vmem:[#allocation9 + $0x9d0] sm:$0xff] }
 0x36f   :  { %4034 = vmatpush1.bf16.msra.mxu1 %v9103_v23  ;;  %3880 = vmatprep.subr.bf16.mxu0 %v9110_v25  ;;  %v674_v23 = vld [vmem:[#allocation9 + $0x9f0] sm:$0xff]  ;;  %v671_v25 = vld [vmem:[#allocation9 + $0x9d8] sm:$0xff] }
 0x370   :  { %4044 = vmatprep.subr.bf16.mxu1 %v9112_v53  ;;  %v675_v53 = vld [vmem:[#allocation9 + $0x9f8] sm:$0xff]  ;;  %v9165_v29 = vcombine.low %v670_v22, %v674_v23 }
 0x371   :  { %3872 = vmatmul.mubr.bf16.vlgmr.msra.gmra.mrb[4].mxu0 %v10960_v37  ;;  %v9168_v1 = vcombine.high %v671_v25, %v675_v53 }
 0x372   :  { %4036 = vmatmul.mubr.bf16.vlgmr.msra.gmra.mrb[4].mxu1 %v10960_v37  ;;  %3881 = vmatpush1.bf16.msra.mxu0 %v9109_v5  ;;  %v9127_v37 = vcombine.low %v631_v31, %v635_v33  ;;  %v9166_v5 = vcombine.high %v670_v22, %v674_v23 }
 0x373   :  { %3912 = vmatprep.mubr.bf16.mxu0 %v10964_v40  ;;  %4045 = vmatpush1.bf16.msra.mxu1 %v9111_v58  ;;  %v682_v58 = vld [vmem:[#allocation9 + $0xa30] sm:$0xff] }
 0x374   :  { %4076 = vmatprep.mubr.bf16.mxu1 %v10964_v40  ;;  %3882 = vmatprep.subr.bf16.mxu0 %v9118_v26  ;;  %v9133_v40 = vcombine.low %v638_v48, %v642_v51  ;;  %v679_v26 = vld [vmem:[#allocation9 + $0xa18] sm:$0xff]  ;;  %v9174_v31 = vcombine.high %v678_v57, %v682_v58  ;;  %v9173_v48 = vcombine.low %v678_v57, %v682_v58 }
 0x375   :  { %4046 = vmatprep.subr.bf16.mxu1 %v9120_v30  ;;  %v9167_v30 = vcombine.low %v671_v25, %v675_v53  ;;  %v9176_v33 = vcombine.high %v679_v26, %v683_v27  ;;  %v9175_v51 = vcombine.low %v679_v26, %v683_v27 }
 0x376   :  { %3883 = vmatpush1.bf16.msra.mxu0 %v9117_v35  ;;  %v686_v35 = vld [vmem:[#allocation9 + $0xa50] sm:$0xff] }
 0x377   :  { %4047 = vmatpush1.bf16.msra.mxu1 %v9119_v49  ;;  %3884 = vmatprep.subr.bf16.mxu0 %v9126_v36  ;;  %v690_v49 = vld [vmem:[#allocation9 + $0xa70] sm:$0xff]  ;;  %v687_v36 = vld [vmem:[#allocation9 + $0xa58] sm:$0xff] }
 0x378   :  { %4048 = vmatprep.subr.bf16.mxu1 %v9128_v17  ;;  %v691_v17 = vld [vmem:[#allocation9 + $0xa78] sm:$0xff]  ;;  %v9182_v6 = vcombine.high %v686_v35, %v690_v49  ;;  %v9181_v41 = vcombine.low %v686_v35, %v690_v49 }
 0x379   :  { %v9184_v50 = vcombine.high %v687_v36, %v691_v17  ;;  %v9183_v42 = vcombine.low %v687_v36, %v691_v17 }
 0x37a   :  { %3885 = vmatpush1.bf16.msra.mxu0 %v9125_v55  ;;  %v694_v55 = vld [vmem:[#allocation9 + $0xa90] sm:$0xff] }
 0x37b   :  { %4049 = vmatpush1.bf16.msra.mxu1 %v9127_v37  ;;  %3886 = vmatprep.subr.bf16.mxu0 %v9134_v38  ;;  %v698_v37 = vld [vmem:[#allocation9 + $0xab0] sm:$0xff]  ;;  %v695_v38 = vld [vmem:[#allocation9 + $0xa98] sm:$0xff] }
 0x37c   :  { %4050 = vmatprep.subr.bf16.mxu1 %v9136_v11  ;;  %v699_v11 = vld [vmem:[#allocation9 + $0xab8] sm:$0xff]  ;;  %v9190_v43 = vcombine.high %v694_v55, %v698_v37  ;;  %v9189_v52 = vcombine.low %v694_v55, %v698_v37 }
 0x37d   :  { %v9192_v45 = vcombine.high %v695_v38, %v699_v11  ;;  %v9191_v44 = vcombine.low %v695_v38, %v699_v11 }
 0x37e   :  { %3887 = vmatpush1.bf16.msra.mxu0 %v9133_v40  ;;  %v702_v40 = vld [vmem:[#allocation9 + $0xad0] sm:$0xff] }
 0x37f   :  { %4051 = vmatpush1.bf16.msra.mxu1 %v9135_v54  ;;  %3888 = vmatprep.subr.bf16.mxu0 %v9142_v47  ;;  %v706_v54 = vld [vmem:[#allocation9 + $0xaf0] sm:$0xff]  ;;  %v703_v47 = vld [vmem:[#allocation9 + $0xad8] sm:$0xff] }
 0x380   :  { %4052 = vmatprep.subr.bf16.mxu1 %v9144_v39  ;;  %v707_v39 = vld [vmem:[#allocation9 + $0xaf8] sm:$0xff]  ;;  %v9198_v3 = vcombine.high %v702_v40, %v706_v54  ;;  %v9197_v13 = vcombine.low %v702_v40, %v706_v54 }
 0x381   :  { %v9200_v59 = vcombine.high %v703_v47, %v707_v39  ;;  %v9199_v14 = vcombine.low %v703_v47, %v707_v39  ;;  %v755_v40 = vld [vmem:[#allocation9 + $0xc78] sm:$0xff]  ;;  %v758_v39 = vld [vmem:[#allocation9 + $0xc90] sm:$0xff] }
 0x382   :  { %3889 = vmatpush1.bf16.msra.mxu0 %v9141_v60  ;;  %v710_v60 = vld [vmem:[#allocation9 + $0xb10] sm:$0xff] }
 0x383   :  { %4053 = vmatpush1.bf16.msra.mxu1 %v9143_v8  ;;  %3890 = vmatprep.subr.bf16.mxu0 %v9150_v62  ;;  %v714_v8 = vld [vmem:[#allocation9 + $0xb30] sm:$0xff]  ;;  %v711_v62 = vld [vmem:[#allocation9 + $0xb18] sm:$0xff] }
 0x384   :  { %4054 = vmatprep.subr.bf16.mxu1 %v9152_v10  ;;  %v715_v10 = vld [vmem:[#allocation9 + $0xb38] sm:$0xff]  ;;  %v9206_v16 = vcombine.high %v710_v60, %v714_v8  ;;  %v9205_v22 = vcombine.low %v710_v60, %v714_v8 }
 0x385   :  { %v9208_v18 = vcombine.high %v711_v62, %v715_v10  ;;  %v9207_v23 = vcombine.low %v711_v62, %v715_v10 }
 0x386   :  { %3891 = vmatpush1.bf16.msra.mxu0 %v9149_v56  ;;  %v718_v56 = vld [vmem:[#allocation9 + $0xb50] sm:$0xff] }
 0x387   :  { %4055 = vmatpush1.bf16.msra.mxu1 %v9151_v46  ;;  %3892 = vmatprep.subr.bf16.mxu0 %v9158_v20  ;;  %v722_v46 = vld [vmem:[#allocation9 + $0xb70] sm:$0xff]  ;;  %v719_v20 = vld [vmem:[#allocation9 + $0xb58] sm:$0xff] }
 0x388   :  { %4056 = vmatprep.subr.bf16.mxu1 %v9160_v21  ;;  %v723_v21 = vld [vmem:[#allocation9 + $0xb78] sm:$0xff]  ;;  %v9214_v25 = vcombine.high %v718_v56, %v722_v46  ;;  %v9213_v57 = vcombine.low %v718_v56, %v722_v46 }
 0x389   :  { %v9216_v53 = vcombine.high %v719_v20, %v723_v21  ;;  %v9215_v58 = vcombine.low %v719_v20, %v723_v21  ;;  %v774_v21 = vld [vmem:[#allocation9 + $0xd10] sm:$0xff] }
 0x38a   :  { %3893 = vmatpush1.bf16.msra.mxu0 %v9157_v4  ;;  %v726_v4 = vld [vmem:[#allocation9 + $0xb90] sm:$0xff] }
 0x38b   :  { %4057 = vmatpush1.bf16.msra.mxu1 %v9159_v2  ;;  %3894 = vmatprep.subr.bf16.mxu0 %v9166_v5  ;;  %v730_v2 = vld [vmem:[#allocation9 + $0xbb0] sm:$0xff]  ;;  %v727_v5 = vld [vmem:[#allocation9 + $0xb98] sm:$0xff] }
 0x38c   :  { %4058 = vmatprep.subr.bf16.mxu1 %v9168_v1  ;;  %v731_v1 = vld [vmem:[#allocation9 + $0xbb8] sm:$0xff]  ;;  %v9222_v26 = vcombine.high %v726_v4, %v730_v2  ;;  %v9221_v35 = vcombine.low %v726_v4, %v730_v2 }
 0x38d   :  { %v9224_v27 = vcombine.high %v727_v5, %v731_v1  ;;  %v9223_v49 = vcombine.low %v727_v5, %v731_v1  ;;  %v782_v5 = vld [vmem:[#allocation9 + $0xd50] sm:$0xff] }
 0x38e   :  { %3895 = vmatpush1.bf16.msra.mxu0 %v9165_v29  ;;  %v734_v29 = vld [vmem:[#allocation9 + $0xbd0] sm:$0xff] }
 0x38f   :  { %4059 = vmatpush1.bf16.msra.mxu1 %v9167_v30  ;;  %3896 = vmatprep.subr.bf16.mxu0 %v9174_v31  ;;  %v738_v30 = vld [vmem:[#allocation9 + $0xbf0] sm:$0xff]  ;;  %v735_v31 = vld [vmem:[#allocation9 + $0xbd8] sm:$0xff] }
 0x390   :  { %4060 = vmatprep.subr.bf16.mxu1 %v9176_v33  ;;  %v739_v33 = vld [vmem:[#allocation9 + $0xbf8] sm:$0xff]  ;;  %v9230_v36 = vcombine.high %v734_v29, %v738_v30  ;;  %v9229_v55 = vcombine.low %v734_v29, %v738_v30  ;;  %v786_v1 = vld [vmem:[#allocation9 + $0xd70] sm:$0xff] }
 0x391   :  { %v9232_v17 = vcombine.high %v735_v31, %v739_v33  ;;  %v9231_v37 = vcombine.low %v735_v31, %v739_v33  ;;  %v9278_v29 = vcombine.high %v782_v5, %v786_v1  ;;  %v790_v31 = vld [vmem:[#allocation9 + $0xd90] sm:$0xff] }
 0x392   :  { %3897 = vmatpush1.bf16.msra.mxu0 %v9173_v48  ;;  %v742_v48 = vld [vmem:[#allocation9 + $0xc10] sm:$0xff] }
 0x393   :  { %4061 = vmatpush1.bf16.msra.mxu1 %v9175_v51  ;;  %3898 = vmatprep.subr.bf16.mxu0 %v9182_v6  ;;  %v746_v51 = vld [vmem:[#allocation9 + $0xc30] sm:$0xff]  ;;  %v743_v6 = vld [vmem:[#allocation9 + $0xc18] sm:$0xff] }
 0x394   :  { %4062 = vmatprep.subr.bf16.mxu1 %v9184_v50  ;;  %v747_v50 = vld [vmem:[#allocation9 + $0xc38] sm:$0xff]  ;;  %v9238_v38 = vcombine.high %v742_v48, %v746_v51  ;;  %v794_v33 = vld [vmem:[#allocation9 + $0xdb0] sm:$0xff] }
 0x395   :  { %v9240_v11 = vcombine.high %v743_v6, %v747_v50  ;;  %v9239_v54 = vcombine.low %v743_v6, %v747_v50  ;;  %v798_v50 = vld [vmem:[#allocation9 + $0xdd0] sm:$0xff] }
 0x396   :  { %3899 = vmatpush1.bf16.msra.mxu0 %v9181_v41  ;;  %v750_v41 = vld [vmem:[#allocation9 + $0xc50] sm:$0xff] }
 0x397   :  { %4063 = vmatpush1.bf16.msra.mxu1 %v9183_v42  ;;  %3900 = vmatprep.subr.bf16.mxu0 %v9190_v43  ;;  %v754_v42 = vld [vmem:[#allocation9 + $0xc70] sm:$0xff]  ;;  %v9237_v43 = vcombine.low %v742_v48, %v746_v51  ;;  %v9286_v48 = vcombine.high %v790_v31, %v794_v33 }
 0x398   :  { %4064 = vmatprep.subr.bf16.mxu1 %v9192_v45  ;;  %v751_v45 = vld [vmem:[#allocation9 + $0xc58] sm:$0xff]  ;;  %v9246_v47 = vcombine.high %v750_v41, %v754_v42  ;;  %v9245_v60 = vcombine.low %v750_v41, %v754_v42 }
 0x399   :  { %v9247_v8 = vcombine.low %v751_v45, %v755_v40  ;;  %v803_v41 = vld [vmem:[#allocation9 + $0xdf8] sm:$0xff] }
 0x39a   :  { %3901 = vmatpush1.bf16.msra.mxu0 %v9189_v52  ;;  %v762_v52 = vld [vmem:[#allocation9 + $0xcb0] sm:$0xff] }
 0x39b   :  { %4065 = vmatpush1.bf16.msra.mxu1 %v9191_v44  ;;  %3902 = vmatprep.subr.bf16.mxu0 %v9198_v3  ;;  %v9248_v44 = vcombine.high %v751_v45, %v755_v40  ;;  %v759_v3 = vld [vmem:[#allocation9 + $0xc98] sm:$0xff]  ;;  %v9254_v62 = vcombine.high %v758_v39, %v762_v52  ;;  %v9253_v56 = vcombine.low %v758_v39, %v762_v52 }
 0x39c   :  { %4066 = vmatprep.subr.bf16.mxu1 %v9200_v59  ;;  %v763_v59 = vld [vmem:[#allocation9 + $0xcb8] sm:$0xff]  ;;  %v9285_v45 = vcombine.low %v790_v31, %v794_v33 }
 0x39d   :  { %v9256_v10 = vcombine.high %v759_v3, %v763_v59 }
 0x39e   :  { %3903 = vmatpush1.bf16.msra.mxu0 %v9197_v13  ;;  %v766_v13 = vld [vmem:[#allocation9 + $0xcd0] sm:$0xff] }
 0x39f   :  { %4067 = vmatpush1.bf16.msra.mxu1 %v9199_v14  ;;  %3904 = vmatprep.subr.bf16.mxu0 %v9206_v16  ;;  %v770_v14 = vld [vmem:[#allocation9 + $0xcf0] sm:$0xff]  ;;  %v767_v16 = vld [vmem:[#allocation9 + $0xcd8] sm:$0xff] }
 0x3a0   :  { %4068 = vmatprep.subr.bf16.mxu1 %v9208_v18  ;;  %v771_v18 = vld [vmem:[#allocation9 + $0xcf8] sm:$0xff]  ;;  %v9262_v46 = vcombine.high %v766_v13, %v770_v14 }
 0x3a1   :  { %v9264_v20 = vcombine.high %v767_v16, %v771_v18 }
 0x3a2   :  { %3905 = vmatpush1.bf16.msra.mxu0 %v9205_v22  ;;  %v778_v22 = vld [vmem:[#allocation9 + $0xd30] sm:$0xff] }
 0x3a3   :  { %4069 = vmatpush1.bf16.msra.mxu1 %v9207_v23  ;;  %3906 = vmatprep.subr.bf16.mxu0 %v9214_v25  ;;  %v775_v23 = vld [vmem:[#allocation9 + $0xd18] sm:$0xff]  ;;  %v9270_v4 = vcombine.high %v774_v21, %v778_v22 }
 0x3a4   :  { %4070 = vmatprep.subr.bf16.mxu1 %v9216_v53  ;;  %v779_v25 = vld [vmem:[#allocation9 + $0xd38] sm:$0xff]  ;;  %v9263_v53 = vcombine.low %v767_v16, %v771_v18  ;;  %v814_v16 = vld [vmem:[#allocation9 + $0xe50] sm:$0xff] }
 0x3a5   :  { %v9272_v2 = vcombine.high %v775_v23, %v779_v25  ;;  %v818_v18 = vld [vmem:[#allocation9 + $0xe70] sm:$0xff] }
 0x3a6   :  { %3907 = vmatpush1.bf16.msra.mxu0 %v9213_v57  ;;  %v783_v57 = vld [vmem:[#allocation9 + $0xd58] sm:$0xff] }
 0x3a7   :  { %4071 = vmatpush1.bf16.msra.mxu1 %v9215_v58  ;;  %3908 = vmatprep.subr.bf16.mxu0 %v9222_v26  ;;  %v787_v58 = vld [vmem:[#allocation9 + $0xd78] sm:$0xff]  ;;  %v9269_v26 = vcombine.low %v774_v21, %v778_v22  ;;  %v9310_v21 = vcombine.high %v814_v16, %v818_v18 }
 0x3a8   :  { %4072 = vmatprep.subr.bf16.mxu1 %v9224_v27  ;;  %v9271_v27 = vcombine.low %v775_v23, %v779_v25  ;;  %v9280_v30 = vcombine.high %v783_v57, %v787_v58  ;;  %v822_v23 = vld [vmem:[#allocation9 + $0xe90] sm:$0xff] }
 0x3a9   :  { %v826_v25 = vld [vmem:[#allocation9 + $0xeb0] sm:$0xff] }
 0x3aa   :  { %3909 = vmatpush1.bf16.msra.mxu0 %v9221_v35  ;;  %v791_v35 = vld [vmem:[#allocation9 + $0xd98] sm:$0xff] }
 0x3ab   :  { %4073 = vmatpush1.bf16.msra.mxu1 %v9223_v49  ;;  %3910 = vmatprep.subr.bf16.mxu0 %v9230_v36  ;;  %v795_v49 = vld [vmem:[#allocation9 + $0xdb8] sm:$0xff]  ;;  %v9277_v36 = vcombine.low %v782_v5, %v786_v1  ;;  %v9318_v5 = vcombine.high %v822_v23, %v826_v25 }
 0x3ac   :  { %4074 = vmatprep.subr.bf16.mxu1 %v9232_v17  ;;  %v9279_v17 = vcombine.low %v783_v57, %v787_v58  ;;  %v9288_v6 = vcombine.high %v791_v35, %v795_v49  ;;  %v830_v57 = vld [vmem:[#allocation9 + $0xed0] sm:$0xff] }
 0x3ad   :  { %v834_v58 = vld [vmem:[#allocation9 + $0xef0] sm:$0xff] }
 0x3ae   :  { %3911 = vmatpush1.bf16.msra.mxu0 %v9229_v55  ;;  %v802_v55 = vld [vmem:[#allocation9 + $0xdf0] sm:$0xff]  ;;  %v9326_v31 = vcombine.high %v830_v57, %v834_v58 }
 0x3af   :  { %4075 = vmatpush1.bf16.msra.mxu1 %v9231_v37  ;;  %3921 = vmatprep.subr.bf16.mxu0 %v9238_v38  ;;  %v9294_v39 = vcombine.high %v798_v50, %v802_v55 }
 0x3b0   :  { %4085 = vmatprep.subr.bf16.mxu1 %v9240_v11  ;;  %v799_v11 = vld [vmem:[#allocation9 + $0xdd8] sm:$0xff] }
 0x3b1   :  { %3913 = vmatmul.mubr.bf16.vlgmr.msra.gmra.mrb[4].mxu0 %v10972_v28 }
 0x3b2   :  { %4077 = vmatmul.mubr.bf16.vlgmr.msra.gmra.mrb[4].mxu1 %v10972_v28  ;;  %3922 = vmatpush1.bf16.msra.mxu0 %v9237_v43  ;;  %v9255_v28 = vcombine.low %v759_v3, %v763_v59  ;;  %v806_v3 = vld [vmem:[#allocation9 + $0xe10] sm:$0xff] }
 0x3b3   :  { %3953 = vmatprep.mubr.bf16.mxu0 %v10977_v34  ;;  %4086 = vmatpush1.bf16.msra.mxu1 %v9239_v54  ;;  %v810_v59 = vld [vmem:[#allocation9 + $0xe30] sm:$0xff] }
 0x3b4   :  { %4117 = vmatprep.mubr.bf16.mxu1 %v10977_v34  ;;  %3923 = vmatprep.subr.bf16.mxu0 %v9246_v47  ;;  %v9261_v34 = vcombine.low %v766_v13, %v770_v14  ;;  %v9287_v47 = vcombine.low %v791_v35, %v795_v49  ;;  %v9302_v13 = vcombine.high %v806_v3, %v810_v59  ;;  %v838_v35 = vld [vmem:[#allocation9 + $0xf10] sm:$0xff] }
 0x3b5   :  { %4087 = vmatprep.subr.bf16.mxu1 %v9248_v44  ;;  %v9296_v44 = vcombine.high %v799_v11, %v803_v41  ;;  %v842_v49 = vld [vmem:[#allocation9 + $0xf30] sm:$0xff] }
 0x3b6   :  { %3924 = vmatpush1.bf16.msra.mxu0 %v9245_v60  ;;  %v807_v60 = vld [vmem:[#allocation9 + $0xe18] sm:$0xff] }
 0x3b7   :  { %4088 = vmatpush1.bf16.msra.mxu1 %v9247_v8  ;;  %3925 = vmatprep.subr.bf16.mxu0 %v9254_v62  ;;  %v811_v8 = vld [vmem:[#allocation9 + $0xe38] sm:$0xff]  ;;  %v9293_v62 = vcombine.low %v798_v50, %v802_v55  ;;  %v9334_v50 = vcombine.high %v838_v35, %v842_v49 }
 0x3b8   :  { %4089 = vmatprep.subr.bf16.mxu1 %v9256_v10  ;;  %v9295_v10 = vcombine.low %v799_v11, %v803_v41  ;;  %v9304_v14 = vcombine.high %v807_v60, %v811_v8  ;;  %v846_v11 = vld [vmem:[#allocation9 + $0xf50] sm:$0xff] }
 0x3b9   :  { %v850_v41 = vld [vmem:[#allocation9 + $0xf70] sm:$0xff] }
 0x3ba   :  { %3926 = vmatpush1.bf16.msra.mxu0 %v9253_v56  ;;  %v815_v56 = vld [vmem:[#allocation9 + $0xe58] sm:$0xff] }
 0x3bb   :  { %4090 = vmatpush1.bf16.msra.mxu1 %v9255_v28  ;;  %3927 = vmatprep.subr.bf16.mxu0 %v9262_v46  ;;  %v819_v28 = vld [vmem:[#allocation9 + $0xe78] sm:$0xff]  ;;  %v9301_v46 = vcombine.low %v806_v3, %v810_v59 }
 0x3bc   :  { %4091 = vmatprep.subr.bf16.mxu1 %v9264_v20  ;;  %v9303_v20 = vcombine.low %v807_v60, %v811_v8  ;;  %v9312_v22 = vcombine.high %v815_v56, %v819_v28  ;;  %v855_v3 = vld [vmem:[#allocation9 + $0xf98] sm:$0xff]  ;;  %v9341_v60 = vcombine.low %v846_v11, %v850_v41 }
 0x3bd   :  { %v859_v59 = vld [vmem:[#allocation9 + $0xfb8] sm:$0xff] }
 0x3be   :  { %3928 = vmatpush1.bf16.msra.mxu0 %v9261_v34  ;;  %v823_v34 = vld [vmem:[#allocation9 + $0xe98] sm:$0xff] }
 0x3bf   :  { %4092 = vmatpush1.bf16.msra.mxu1 %v9263_v53  ;;  %3929 = vmatprep.subr.bf16.mxu0 %v9270_v4  ;;  %v827_v53 = vld [vmem:[#allocation9 + $0xeb8] sm:$0xff]  ;;  %v9309_v4 = vcombine.low %v814_v16, %v818_v18 }
 0x3c0   :  { %4093 = vmatprep.subr.bf16.mxu1 %v9272_v2  ;;  %v9311_v2 = vcombine.low %v815_v56, %v819_v28  ;;  %v9320_v1 = vcombine.high %v823_v34, %v827_v53  ;;  %v863_v16 = vld [vmem:[#allocation9 + $0xfd8] sm:$0xff]  ;;  %v9351_v28 = vcombine.low %v855_v3, %v859_v59 }
 0x3c1   :  { %v867_v18 = vld [vmem:[#allocation9 + $0xff8] sm:$0xff] }
 0x3c2   :  { %3930 = vmatpush1.bf16.msra.mxu0 %v9269_v26  ;;  %v831_v26 = vld [vmem:[#allocation9 + $0xed8] sm:$0xff] }
 0x3c3   :  { %4094 = vmatpush1.bf16.msra.mxu1 %v9271_v27  ;;  %3931 = vmatprep.subr.bf16.mxu0 %v9278_v29  ;;  %v835_v27 = vld [vmem:[#allocation9 + $0xef8] sm:$0xff]  ;;  %v9317_v29 = vcombine.low %v822_v23, %v826_v25  ;;  %v868_v23 = vld [vmem:[#allocation11] sm:$0xff] }
 0x3c4   :  { %v11002_v51 = vpop.f32.mrb[0].mxu0  ;;  %4095 = vmatprep.subr.bf16.mxu1 %v9280_v30  ;;  %v9319_v30 = vcombine.low %v823_v34, %v827_v53  ;;  %v9328_v33 = vcombine.high %v831_v26, %v835_v27  ;;  %v873_v25 = vrot.slane %v868_v23, %v10872_v0  ;;  %v877_v34 = vrot.slane %v868_v23, %v10870_v63 }
 0x3c5   :  { %v11004_v37 = vpop.f32.mrb[0].mxu1  ;;  %v11006_v38 = vpop.f32.mrb[1].mxu0 }
 0x3c6   :  { %v11008_v42 = vpop.f32.mrb[1].mxu1  ;;  %v3631_v43 = vpop.f32.mrb[2].mxu0  ;;  %3932 = vmatpush1.bf16.msra.mxu0 %v9277_v36  ;;  %v839_v36 = vld [vmem:[#allocation9 + $0xf18] sm:$0xff]  ;;  %v10028_v53 = vadd.f32 %v11002_v51, %v873_v25  ;;  %v897_v51 = vrot.slane %v868_v23, %v10915_v32 }
 0x3c7   :  { %v3795_v40 = vpop.f32.mrb[2].mxu1  ;;  %4096 = vmatpush1.bf16.msra.mxu1 %v9279_v17  ;;  %v3632_v54 = vpop.f32.mrb[3].mxu0  ;;  %3933 = vmatprep.subr.bf16.mxu0 %v9286_v48  ;;  %v843_v17 = vld [vmem:[#allocation9 + $0xf38] sm:$0xff]  ;;  %v9325_v48 = vcombine.low %v830_v57, %v834_v58  ;;  %v885_v57 = vrot.slane %v868_v23, %v10876_v12 }
 0x3c8   :  { %v3796_v52 = vpop.f32.mrb[3].mxu1  ;;  %4097 = vmatprep.subr.bf16.mxu1 %v9288_v6  ;;  %v9327_v6 = vcombine.low %v831_v26, %v835_v27  ;;  %v9336_v55 = vcombine.high %v839_v36, %v843_v17  ;;  %v847_v43 = vld [vmem:[#allocation9 + $0xf58] sm:$0xff]  ;;  %v9333_v40 = vcombine.low %v838_v35, %v842_v49  ;;  %v9335_v54 = vcombine.low %v839_v36, %v843_v17 }
 0x3c9   :  { %v854_v52 = vld [vmem:[#allocation9 + $0xf90] sm:$0xff]  ;;  %v889_v26 = vrot.slane %v868_v23, %v10888_v15  ;;  %v10031_v27 = vadd.f32 %v11008_v42, %v885_v57  ;;  %v901_v17 = vrot.slane %v868_v23, %v10904_v24 }
 0x3ca   :  { %3934 = vmatpush1.bf16.msra.mxu0 %v9285_v45  ;;  %v851_v45 = vld [vmem:[#allocation9 + $0xf78] sm:$0xff] }
 0x3cb   :  { %4098 = vmatpush1.bf16.msra.mxu1 %v9287_v47  ;;  %3935 = vmatprep.subr.bf16.mxu0 %v9294_v39  ;;  %v9342_v47 = vcombine.high %v846_v11, %v850_v41  ;;  %v9344_v39 = vcombine.high %v847_v43, %v851_v45  ;;  %v9343_v8 = vcombine.low %v847_v43, %v851_v45  ;;  %v10160_v45 = vld [vmem:[#allocation15 + $0x40] sm:$0xff]  }
 0x3cc   :  { %4099 = vmatprep.subr.bf16.mxu1 %v9296_v44  ;;  %v858_v44 = vld [vmem:[#allocation9 + $0xfb0] sm:$0xff] }
 0x3cd   :  { %v9349_v56 = vcombine.low %v854_v52, %v858_v44 }
 0x3ce   :  { %3936 = vmatpush1.bf16.msra.mxu0 %v9293_v62  ;;  %v9350_v62 = vcombine.high %v854_v52, %v858_v44  ;;  %v10165_v52 = vld [vmem:[#allocation15 + $0xc8] sm:$0xff]  }
 0x3cf   :  { %4100 = vmatpush1.bf16.msra.mxu1 %v9295_v10  ;;  %3937 = vmatprep.subr.bf16.mxu0 %v9302_v13  ;;  %v9352_v10 = vcombine.high %v855_v3, %v859_v59  ;;  %v862_v13 = vld [vmem:[#allocation9 + $0xfd0] sm:$0xff]  ;;  %v10166_v44 = vld [vmem:[#allocation15 + $0x8] sm:$0xff]  }
 0x3d0   :  { %4101 = vmatprep.subr.bf16.mxu1 %v9304_v14  ;;  %v866_v14 = vld [vmem:[#allocation9 + $0xff0] sm:$0xff]  ;;  %v10167_v3 = vld [vmem:[#allocation15 + $0x88] sm:$0xff]  }
 0x3d2   :  { %3938 = vmatpush1.bf16.msra.mxu0 %v9301_v46  ;;  %v9358_v46 = vcombine.high %v862_v13, %v866_v14 }
 0x3d3   :  { %4102 = vmatpush1.bf16.msra.mxu1 %v9303_v20  ;;  %3939 = vmatprep.subr.bf16.mxu0 %v9310_v21  ;;  %v9360_v20 = vcombine.high %v863_v16, %v867_v18  ;;  %v9357_v21 = vcombine.low %v862_v13, %v866_v14 }
 0x3d4   :  { %4103 = vmatprep.subr.bf16.mxu1 %v9312_v22  ;;  %v9359_v22 = vcombine.low %v863_v16, %v867_v18 }
 0x3d6   :  { %3940 = vmatpush1.bf16.msra.mxu0 %v9309_v4  ;;  %v10029_v4 = vadd.f32 %v11006_v38, %v877_v34 }
 0x3d7   :  { %4104 = vmatpush1.bf16.msra.mxu1 %v9311_v2  ;;  %3941 = vmatprep.subr.bf16.mxu0 %v9318_v5  ;;  %v881_v2 = vrot.slane %v868_v23, %v10878_v7 }
 0x3d8   :  { %4105 = vmatprep.subr.bf16.mxu1 %v9320_v1  ;;  %v4128_v5 = vadd.f32 %v10029_v4, %v10028_v53 }
 0x3d9   :  { %v10030_v1 = vadd.f32 %v11004_v37, %v881_v2 }
 0x3da   :  { %3942 = vmatpush1.bf16.msra.mxu0 %v9317_v29 }
 0x3db   :  { %4106 = vmatpush1.bf16.msra.mxu1 %v9319_v30  ;;  %3943 = vmatprep.subr.bf16.mxu0 %v9326_v31  ;;  %v4129_v58 = vadd.f32 %v10030_v1, %v4128_v5 }
 0x3dc   :  { %4107 = vmatprep.subr.bf16.mxu1 %v9328_v33 }
 0x3dd   :  { %v4130_v30 = vadd.f32 %v10031_v27, %v4129_v58 }
 0x3de   :  { %3944 = vmatpush1.bf16.msra.mxu0 %v9325_v48 }
 0x3df   :  { %4108 = vmatpush1.bf16.msra.mxu1 %v9327_v6  ;;  %3945 = vmatprep.subr.bf16.mxu0 %v9334_v50 }
 0x3e0   :  { %4109 = vmatprep.subr.bf16.mxu1 %v9336_v55 }
 0x3e2   :  { %3946 = vmatpush1.bf16.msra.mxu0 %v9333_v40  ;;  %v10161_v40 = vld [vmem:[#allocation15 + $0xc0] sm:$0xff]  }
 0x3e3   :  { %4110 = vmatpush1.bf16.msra.mxu1 %v9335_v54  ;;  %3947 = vmatprep.subr.bf16.mxu0 %v9342_v47  ;;  %v10162_v54 = vld [vmem:[#allocation15] sm:$0xff]  }
 0x3e4   :  { %4111 = vmatprep.subr.bf16.mxu1 %v9344_v39  ;;  %v10163_v47 = vld [vmem:[#allocation15 + $0x80] sm:$0xff]   ;;  %v10164_v39 = vld [vmem:[#allocation15 + $0x48] sm:$0xff]  }
 0x3e6   :  { %3948 = vmatpush1.bf16.msra.mxu0 %v9341_v60 }
 0x3e7   :  { %4112 = vmatpush1.bf16.msra.mxu1 %v9343_v8  ;;  %3949 = vmatprep.subr.bf16.mxu0 %v9350_v62 }
 0x3e8   :  { %4113 = vmatprep.subr.bf16.mxu1 %v9352_v10 }
 0x3ea   :  { %3950 = vmatpush1.bf16.msra.mxu0 %v9349_v56 }
 0x3eb   :  { %4114 = vmatpush1.bf16.msra.mxu1 %v9351_v28  ;;  %3951 = vmatprep.subr.bf16.mxu0 %v9358_v46 }
 0x3ec   :  { %4115 = vmatprep.subr.bf16.mxu1 %v9360_v20 }
 0x3ee   :  { %3952 = vmatpush1.bf16.msra.mxu0 %v9357_v21 }
 0x3ef   :  { %4116 = vmatpush1.bf16.msra.mxu1 %v9359_v22  ;;  %9940 = vmatprep.subr.bf16.mxu0 %v10160_v45  ;;  %v10190_v45 = vld [vmem:[#allocation15 + $0x38] sm:$0xff]  }
 0x3f0   :  { %9962 = vmatprep.subr.bf16.mxu1 %v10161_v40  ;;  %v10191_v40 = vld [vmem:[#allocation15 + $0xb8] sm:$0xff]  }
 0x3f1   :  { %3954 = vmatmul.mubr.bf16.vlgmr.msra.gmra.mrb[4].mxu0 %v10984_v19 }
 0x3f2   :  { %4118 = vmatmul.mubr.bf16.vlgmr.msra.gmra.mrb[4].mxu1 %v10984_v19  ;;  %v893_v19 = vrot.slane %v868_v23, %v10880_v9  ;;  %9941 = vmatpush3.bf16.msra.mxu0 %v10162_v54  ;;  %v10192_v54 = vld [vmem:[#allocation15 + $0x140] sm:$0xff]  }
 0x3f3   :  { %9963 = vmatpush3.bf16.msra.mxu1 %v10163_v47  ;;  %9942 = vmatprep.subr.bf16.mxu0 %v10164_v39  ;;  %v10193_v47 = vld [vmem:[#allocation15 + $0x1c0] sm:$0xff]  }
 0x3f4   :  { %9964 = vmatprep.subr.bf16.mxu1 %v10165_v52 }
 0x3f6   :  { %9943 = vmatpush3.bf16.msra.mxu0 %v10166_v44 }
 0x3f7   :  { %9965 = vmatpush3.bf16.msra.mxu1 %v10167_v3  ;;  %v11056_v3 = vld [vmem:[#allocation12] sm:$0xff] }
 0x4c4   :  { %v3955_v29 = vpop.f32.mrb[4].mxu0 }
 0x4c5   :  { %v10032_v31 = vadd.f32 %v3955_v29, %v889_v26  ;;  %v4119_v38 = vpop.f32.mrb[4].mxu1  ;;  %v3957_v33 = vpop.f32.mrb[5].mxu0  ;;  %v10168_v26 = vld [vmem:[#allocation15 + $0x50] sm:$0xff]  }
 0x4c6   :  { %v10033_v35 = vadd.f32 %v3957_v33, %v893_v19  ;;  %v4121_v49 = vpop.f32.mrb[5].mxu1  ;;  %v3959_v36 = vpop.f32.mrb[6].mxu0  ;;  %v10034_v55 = vadd.f32 %v4119_v38, %v897_v51  ;;  %v10169_v19 = vld [vmem:[#allocation15 + $0xd0] sm:$0xff]   ;;  %9944 = vmatprep.subr.bf16.mxu0 %v10168_v26  ;;  %v10174_v51 = vld [vmem:[#allocation15 + $0x18] sm:$0xff]   ;;  %v10176_v33 = vld [vmem:[#allocation15 + $0x60] sm:$0xff]  }
 0x4c7   :  { %v4131_v37 = vadd.f32 %v10032_v31, %v4130_v30  ;;  %v4123_v48 = vpop.f32.mrb[6].mxu1  ;;  %v3960_v6 = vpop.f32.mrb[7].mxu0  ;;  %v10035_v41 = vadd.f32 %v4121_v49, %v901_v17  ;;  %v10171_v29 = vld [vmem:[#allocation15 + $0x90] sm:$0xff]   ;;  %v10172_v30 = vld [vmem:[#allocation15 + $0x58] sm:$0xff]   ;;  %9966 = vmatprep.subr.bf16.mxu1 %v10169_v19  ;;  %v10178_v49 = vld [vmem:[#allocation15 + $0x20] sm:$0xff]  }
 0x4c8   :  { %v4124_v50 = vpop.f32.mrb[7].mxu1  ;;  %9967 = vmatpush3.bf16.msra.mxu1 %v10171_v29  ;;  %v10175_v38 = vld [vmem:[#allocation15 + $0x98] sm:$0xff]   ;;  %v10179_v36 = vld [vmem:[#allocation15 + $0xa0] sm:$0xff]   ;;  %v10181_v17 = vld [vmem:[#allocation15 + $0xe8] sm:$0xff]  }
 0x4c9   :  { %v4132_v11 = vadd.f32 %v10033_v35, %v4131_v37  ;;  %v10180_v37 = vld [vmem:[#allocation15 + $0x68] sm:$0xff]   ;;  %v10184_v50 = vld [vmem:[#allocation15 + $0x70] sm:$0xff]  }
 0x4ca   :  { %v10182_v48 = vld [vmem:[#allocation15 + $0x28] sm:$0xff]  }
 0x4cb   :  { %v4133_v42 = vadd.f32 %v10034_v55, %v4132_v11  ;;  %v10183_v6 = vld [vmem:[#allocation15 + $0xa8] sm:$0xff]   ;;  %v10186_v11 = vld [vmem:[#allocation15 + $0x30] sm:$0xff]  }
 0x4cd   :  { %v4134_v43 = vadd.f32 %v10035_v41, %v4133_v42  ;;  %v10188_v42 = vld [vmem:[#allocation15 + $0x78] sm:$0xff]  }
 0x4cf   :  { %4135 = vadd.xlane.f32.xlu1 %v4134_v43  ;;  %v10189_v43 = vld [vmem:[#allocation15 + $0xf8] sm:$0xff]  }
 0x55c   :  { %v4136_v59 = vpop.xlane.xlu1 %4135 }
 0x55d   :  { %v4137_v60 = vmul.f32 0.0009765625, %v4136_v59  ;;  %v11058_v59 = vld [vmem:[#allocation14] sm:$0xff] }
 0x55e   :  { %v4247_v26 = vrot.slane %v11058_v59, %v10880_v9 }
 0x55f   :  { %v11024_v8 = vsub.f32 %v10028_v53, %v4137_v60  ;;  %v11026_v62 = vsub.f32 %v10029_v4, %v4137_v60  ;;  %v11028_v10 = vsub.f32 %v10030_v1, %v4137_v60  ;;  %v11030_v13 = vsub.f32 %v10031_v27, %v4137_v60  ;;  %v10170_v27 = vld [vmem:[#allocation15 + $0x10] sm:$0xff]  }
 0x560   :  { %v11036_v18 = vsub.f32 %v10032_v31, %v4137_v60  ;;  %v11040_v46 = vsub.f32 %v10033_v35, %v4137_v60  ;;  %v11044_v22 = vsub.f32 %v10034_v55, %v4137_v60  ;;  %v11048_v34 = vsub.f32 %v10035_v41, %v4137_v60  ;;  %v10173_v31 = vld [vmem:[#allocation15 + $0xd8] sm:$0xff]   ;;  %9945 = vmatpush3.bf16.msra.mxu0 %v10170_v27  ;;  %v10177_v35 = vld [vmem:[#allocation15 + $0xe0] sm:$0xff]   ;;  %v10185_v55 = vld [vmem:[#allocation15 + $0xf0] sm:$0xff]  }
 0x561   :  { %v4146_v14 = vmul.f32 %v11024_v8, %v11024_v8  ;;  %v4147_v16 = vmul.f32 %v11026_v62, %v11026_v62  ;;  %v4148_v56 = vmul.f32 %v11028_v10, %v11028_v10  ;;  %v4149_v20 = vmul.f32 %v11030_v13, %v11030_v13  ;;  %9946 = vmatprep.subr.bf16.mxu0 %v10172_v30  ;;  %v10187_v41 = vld [vmem:[#allocation15 + $0xb0] sm:$0xff]  }
 0x562   :  { %v4150_v23 = vmul.f32 %v11036_v18, %v11036_v18  ;;  %v4151_v53 = vmul.f32 %v11040_v46, %v11040_v46  ;;  %v4152_v2 = vmul.f32 %v11044_v22, %v11044_v22  ;;  %v4153_v1 = vmul.f32 %v11048_v34, %v11048_v34  ;;  %9968 = vmatprep.subr.bf16.mxu1 %v10173_v31 }
 0x563   :  { %v4154_v28 = vadd.f32 %v4147_v16, %v4146_v14  ;;  %9969 = vmatpush3.bf16.msra.mxu1 %v10175_v38  ;;  %v4182_v60 = vrot.slane %v11056_v3, %v10870_v63  ;;  %v4231_v14 = vrot.slane %v11058_v59, %v10870_v63  ;;  %v4190_v16 = vrot.slane %v11056_v3, %v10876_v12 }
 0x564   :  { %9947 = vmatpush3.bf16.msra.mxu0 %v10174_v51  ;;  %9970 = vmatprep.subr.bf16.mxu1 %v10177_v35 }
 0x565   :  { %v4155_v21 = vadd.f32 %v4154_v28, %v4148_v56  ;;  %9948 = vmatprep.subr.bf16.mxu0 %v10176_v33  ;;  %v4178_v56 = vrot.slane %v11056_v3, %v10872_v0  ;;  %v4186_v28 = vrot.slane %v11056_v3, %v10878_v7 }
 0x567   :  { %v4156_v25 = vadd.f32 %v4155_v21, %v4149_v20  ;;  %9971 = vmatpush3.bf16.msra.mxu1 %v10179_v36  ;;  %v4198_v20 = vrot.slane %v11056_v3, %v10880_v9 }
 0x568   :  { %9949 = vmatpush3.bf16.msra.mxu0 %v10178_v49  ;;  %9972 = vmatprep.subr.bf16.mxu1 %v10181_v17 }
 0x569   :  { %v4157_v4 = vadd.f32 %v4156_v25, %v4150_v23  ;;  %9950 = vmatprep.subr.bf16.mxu0 %v10180_v37  ;;  %v4239_v23 = vrot.slane %v11058_v59, %v10876_v12  ;;  %v4227_v25 = vrot.slane %v11058_v59, %v10872_v0 }
 0x56b   :  { %v4158_v5 = vadd.f32 %v4157_v4, %v4151_v53  ;;  %9973 = vmatpush3.bf16.msra.mxu1 %v10183_v6  ;;  %v4235_v53 = vrot.slane %v11058_v59, %v10878_v7  ;;  %v4206_v4 = vrot.slane %v11056_v3, %v10904_v24 }
 0x56c   :  { %9951 = vmatpush3.bf16.msra.mxu0 %v10182_v48  ;;  %9974 = vmatprep.subr.bf16.mxu1 %v10185_v55 }
 0x56d   :  { %v4159_v57 = vadd.f32 %v4158_v5, %v4152_v2  ;;  %9952 = vmatprep.subr.bf16.mxu0 %v10184_v50 }
 0x56f   :  { %v4160_v58 = vadd.f32 %v4159_v57, %v4153_v1  ;;  %9975 = vmatpush3.bf16.msra.mxu1 %v10187_v41  ;;  %v10194_v41 = vld [vmem:[#allocation15 + $0x100] sm:$0xff]  }
 0x570   :  { %9953 = vmatpush3.bf16.msra.mxu0 %v10186_v11  ;;  %9976 = vmatprep.subr.bf16.mxu1 %v10189_v43  ;;  %v10196_v43 = vld [vmem:[#allocation15 + $0x148] sm:$0xff]  }
 0x571   :  { %4161 = vadd.xlane.f32.xlu1 %v4160_v58  ;;  %9954 = vmatprep.subr.bf16.mxu0 %v10188_v42  ;;  %v10195_v42 = vld [vmem:[#allocation15 + $0x180] sm:$0xff]  }
 0x573   :  { %9977 = vmatpush3.bf16.msra.mxu1 %v10191_v40 }
 0x574   :  { %9955 = vmatpush3.bf16.msra.mxu0 %v10190_v45  ;;  %10006 = vmatprep.subr.bf16.mxu1 %v10193_v47  ;;  %v10197_v45 = vld [vmem:[#allocation15 + $0x1c8] sm:$0xff]  }
 0x575   :  { %9984 = vmatprep.subr.bf16.mxu0 %v10192_v54  ;;  %v10198_v47 = vld [vmem:[#allocation15 + $0x108] sm:$0xff]  }
 0x5fe   :  { %v4162_v39 = vpop.xlane.xlu1 %4161 }
 0x5ff   :  { %v4163_v52 = vmul.f32 0.0009765625, %v4162_v39  ;;  %v10199_v39 = vld [vmem:[#allocation15 + $0x188] sm:$0xff]  }
 0x601   :  { %v4164_v44 = vadd.f32 1e-05, %v4163_v52  ;;  %v10200_v52 = vld [vmem:[#allocation15 + $0x150] sm:$0xff]  }
 0x603   :  { %10226 = vrsqrt.f32 %v4164_v44  ;;  %v10201_v44 = vld [vmem:[#allocation15 + $0x1d0] sm:$0xff]  }
 0x60d   :  { %v11072_v21 = vpop.eup %10226 }
 0x60e   :  { %v4167_v2 = vmul.f32 %v11072_v21, %v11026_v62  ;;  %v4169_v5 = vmul.f32 %v11072_v21, %v11030_v13  ;;  %v4166_v1 = vmul.f32 %v11072_v21, %v11024_v8  ;;  %v4168_v57 = vmul.f32 %v11072_v21, %v11028_v10 }
 0x60f   :  { %v4171_v58 = vmul.f32 %v11072_v21, %v11040_v46  ;;  %v4173_v19 = vmul.f32 %v11072_v21, %v11048_v34  ;;  %v4255_v62 = vrot.slane %v11058_v59, %v10904_v24 }
 0x610   :  { %v4216_v27 = vmul.f32 %v4182_v60, %v4167_v2  ;;  %v4218_v13 = vmul.f32 %v4190_v16, %v4169_v5  ;;  %v4215_v29 = vmul.f32 %v4178_v56, %v4166_v1  ;;  %v4217_v30 = vmul.f32 %v4186_v28, %v4168_v57  ;;  %v10202_v60 = vld [vmem:[#allocation15 + $0x110] sm:$0xff]   ;;  %v10204_v16 = vld [vmem:[#allocation15 + $0x158] sm:$0xff]   ;;  %v10212_v5 = vld [vmem:[#allocation15 + $0x168] sm:$0xff]  }
 0x611   :  { %v4220_v8 = vmul.f32 %v4198_v20, %v4171_v58  ;;  %v4222_v31 = vmul.f32 %v4206_v4, %v4173_v19  ;;  %v10205_v56 = vld [vmem:[#allocation15 + $0x1d8] sm:$0xff]   ;;  %v10211_v4 = vld [vmem:[#allocation15 + $0x1a0] sm:$0xff]   ;;  %v4194_v2 = vrot.slane %v11056_v3, %v10888_v15  ;;  %v10213_v1 = vld [vmem:[#allocation15 + $0x1e8] sm:$0xff]   ;;  %v4170_v57 = vmul.f32 %v11072_v21, %v11036_v18 }
 0x612   :  { %v4265_v51 = vadd.f32 %v4231_v14, %v4216_v27  ;;  %v4267_v10 = vadd.f32 %v4239_v23, %v4218_v13  ;;  %v4264_v38 = vadd.f32 %v4227_v25, %v4215_v29  ;;  %v4266_v33 = vadd.f32 %v4235_v53, %v4217_v30  ;;  %v10203_v14 = vld [vmem:[#allocation15 + $0x190] sm:$0xff]   ;;  %v10206_v28 = vld [vmem:[#allocation15 + $0x118] sm:$0xff]   ;;  %v10208_v23 = vld [vmem:[#allocation15 + $0x160] sm:$0xff]  }
 0x613   :  { %v4269_v46 = vadd.f32 %v4247_v26, %v4220_v8  ;;  %v4271_v35 = vadd.f32 %v4255_v62, %v4222_v31  ;;  %v10207_v20 = vld [vmem:[#allocation15 + $0x198] sm:$0xff]   ;;  %v10209_v25 = vld [vmem:[#allocation15 + $0x1e0] sm:$0xff]   ;;  %v4172_v58 = vmul.f32 %v11072_v21, %v11044_v22  ;;  %v4202_v26 = vrot.slane %v11056_v3, %v10915_v32  ;;  %v10214_v19 = vld [vmem:[#allocation15 + $0x128] sm:$0xff]  }
 0x614   :  { %v4273_v49 = vmax.f32 %v4265_v51, 0.0  ;;  %v4275_v36 = vmax.f32 %v4267_v10, 0.0  ;;  %v4272_v37 = vmax.f32 %v4264_v38, 0.0  ;;  %v4274_v17 = vmax.f32 %v4266_v33, 0.0  ;;  %v10210_v53 = vld [vmem:[#allocation15 + $0x120] sm:$0xff]   ;;  %v10215_v62 = vld [vmem:[#allocation15 + $0x1a8] sm:$0xff]  }
 0x615   :  { %v4277_v34 = vmax.f32 %v4269_v46, 0.0  ;;  %v4279_v48 = vmax.f32 %v4271_v35, 0.0  ;;  %v4243_v27 = vrot.slane %v11058_v59, %v10888_v15  ;;  %v10216_v13 = vld [vmem:[#allocation15 + $0x170] sm:$0xff]   ;;  %v4219_v30 = vmul.f32 %v4194_v2, %v4170_v57  ;;  %v10220_v21 = vld [vmem:[#allocation15 + $0x178] sm:$0xff]   ;;  %v4967_v38 = vld [vmem:[#allocation18] sm:$0xff] }
 0x616   :  { %v11098_v6 = vpack.c.bf16 %v4273_v49, %v4273_v49  ;;  %v11100_v50 = vpack.c.bf16 %v4275_v36, %v4275_v36  ;;  %v11102_v55 = vpack.c.bf16 %v4272_v37, %v4272_v37  ;;  %v11104_v11 = vpack.c.bf16 %v4274_v17, %v4274_v17  ;;  %v10217_v29 = vld [vmem:[#allocation15 + $0x1f0] sm:$0xff]   ;;  %v10221_v31 = vld [vmem:[#allocation15 + $0x1f8] sm:$0xff]   ;;  %v4971_v33 = vld [vmem:[#allocation18 + $0x20] sm:$0xff] }
 0x617   :  { %v11110_v40 = vpack.c.bf16 %v4277_v34, %v4277_v34  ;;  %v11112_v54 = vpack.c.bf16 %v4279_v48, %v4279_v48  ;;  %v4221_v8 = vmul.f32 %v4202_v26, %v4172_v58  ;;  %v4251_v18 = vrot.slane %v11058_v59, %v10915_v32  ;;  %v10218_v22 = vld [vmem:[#allocation15 + $0x130] sm:$0xff]   ;;  %v10222_v49 = vld [vmem:[#allocation15 + $0x138] sm:$0xff]   ;;  %v4975_v48 = vld [vmem:[#allocation18 + $0x40] sm:$0xff] }
 0x618   :  { %4839 = vmatprep.mubr.bf16.mxu0 %v11098_v6  ;;  %4879 = vmatprep.mubr.bf16.mxu1 %v11100_v50  ;;  %v10219_v3 = vld [vmem:[#allocation15 + $0x1b0] sm:$0xff]   ;;  %v4268_v51 = vadd.f32 %v4243_v27, %v4219_v30  ;;  %v10223_v36 = vld [vmem:[#allocation15 + $0x1b8] sm:$0xff]   ;;  %v9427_v17 = vcombine.high %v4967_v38, %v4971_v33  ;;  %v4995_v2 = vld [vmem:[#allocation18 + $0xe0] sm:$0xff] }
 0x619   :  { %4840 = vmatmul.mubr.bf16.vlgmr.msra.gmra.mrb[8].mxu0 %v11102_v55  ;;  %4880 = vmatmul.mubr.bf16.vlgmr.msra.gmra.mrb[8].mxu1 %v11104_v11  ;;  %v4270_v10 = vadd.f32 %v4251_v18, %v4221_v8  ;;  %v4968_v46 = vld [vmem:[#allocation18 + $0x8] sm:$0xff]  ;;  %v5003_v27 = vld [vmem:[#allocation18 + $0x120] sm:$0xff] }
 0x61a   :  { %9985 = vmatpush3.bf16.msra.mxu0 %v10194_v41  ;;  %10007 = vmatpush3.bf16.msra.mxu1 %v10195_v42  ;;  %v4972_v35 = vld [vmem:[#allocation18 + $0x28] sm:$0xff]  ;;  %v4276_v59 = vmax.f32 %v4268_v51, 0.0  ;;  %v4979_v41 = vld [vmem:[#allocation18 + $0x60] sm:$0xff] }
 0x61b   :  { %4919 = vmatprep.mubr.bf16.mxu0 %v11110_v40  ;;  %4959 = vmatprep.mubr.bf16.mxu1 %v11112_v54  ;;  %v4278_v37 = vmax.f32 %v4270_v10, 0.0  ;;  %v9429_v34 = vcombine.high %v4968_v46, %v4972_v35  ;;  %v4976_v42 = vld [vmem:[#allocation18 + $0x48] sm:$0xff] }
 0x61c   :  { %9986 = vmatprep.subr.bf16.mxu0 %v10196_v43  ;;  %10008 = vmatprep.subr.bf16.mxu1 %v10197_v45  ;;  %v4980_v43 = vld [vmem:[#allocation18 + $0x68] sm:$0xff]  ;;  %v9426_v45 = vcombine.low %v4967_v38, %v4971_v33 }
 0x61d   :  { %v5012_v51 = vld [vmem:[#allocation18 + $0x168] sm:$0xff] }
 0x61e   :  { %9987 = vmatpush3.bf16.msra.mxu0 %v10198_v47  ;;  %10009 = vmatpush3.bf16.msra.mxu1 %v10199_v39  ;;  %v11128_v47 = vpack.c.bf16 %v4276_v59, %v4276_v59  ;;  %v11130_v39 = vpack.c.bf16 %v4278_v37, %v4278_v37  ;;  %v5020_v59 = vld [vmem:[#allocation18 + $0x1a8] sm:$0xff] }
 0x61f   :  { %9988 = vmatprep.subr.bf16.mxu0 %v10200_v52  ;;  %10010 = vmatprep.subr.bf16.mxu1 %v10201_v44  ;;  %v9428_v52 = vcombine.low %v4968_v46, %v4972_v35  ;;  %v9435_v44 = vcombine.high %v4975_v48, %v4979_v41  ;;  %v5015_v35 = vld [vmem:[#allocation18 + $0x180] sm:$0xff] }
 0x622   :  { %9989 = vmatpush3.bf16.msra.mxu0 %v10202_v60  ;;  %10011 = vmatpush3.bf16.msra.mxu1 %v10203_v14  ;;  %v9437_v60 = vcombine.high %v4976_v42, %v4980_v43  ;;  %v4983_v14 = vld [vmem:[#allocation18 + $0x80] sm:$0xff] }
 0x623   :  { %9990 = vmatprep.subr.bf16.mxu0 %v10204_v16  ;;  %10012 = vmatprep.subr.bf16.mxu1 %v10205_v56  ;;  %v4987_v16 = vld [vmem:[#allocation18 + $0xa0] sm:$0xff]  ;;  %v4984_v56 = vld [vmem:[#allocation18 + $0x88] sm:$0xff] }
 0x624   :  { %v9442_v57 = vcombine.low %v4983_v14, %v4987_v16 }
 0x626   :  { %9991 = vmatpush3.bf16.msra.mxu0 %v10206_v28  ;;  %10013 = vmatpush3.bf16.msra.mxu1 %v10207_v20  ;;  %v4988_v28 = vld [vmem:[#allocation18 + $0xa8] sm:$0xff]  ;;  %v9434_v20 = vcombine.low %v4975_v48, %v4979_v41  ;;  %v5023_v41 = vld [vmem:[#allocation18 + $0x1c0] sm:$0xff] }
 0x627   :  { %9992 = vmatprep.subr.bf16.mxu0 %v10208_v23  ;;  %10014 = vmatprep.subr.bf16.mxu1 %v10209_v25  ;;  %v9436_v23 = vcombine.low %v4976_v42, %v4980_v43  ;;  %v9443_v25 = vcombine.high %v4983_v14, %v4987_v16  ;;  %v9444_v58 = vcombine.low %v4984_v56, %v4988_v28  ;;  %v5027_v42 = vld [vmem:[#allocation18 + $0x1e0] sm:$0xff]  ;;  %v5024_v43 = vld [vmem:[#allocation18 + $0x1c8] sm:$0xff] }
 0x628   :  { %v5031_v16 = vld [vmem:[#allocation18 + $0x200] sm:$0xff] }
 0x62a   :  { %9993 = vmatpush3.bf16.msra.mxu0 %v10210_v53  ;;  %10015 = vmatpush3.bf16.msra.mxu1 %v10211_v4  ;;  %v9445_v53 = vcombine.high %v4984_v56, %v4988_v28  ;;  %v4991_v4 = vld [vmem:[#allocation18 + $0xc0] sm:$0xff]  ;;  %v5032_v28 = vld [vmem:[#allocation18 + $0x208] sm:$0xff] }
 0x62b   :  { %9994 = vmatprep.subr.bf16.mxu0 %v10212_v5  ;;  %10016 = vmatprep.subr.bf16.mxu1 %v10213_v1  ;;  %v4992_v5 = vld [vmem:[#allocation18 + $0xc8] sm:$0xff]  ;;  %v9451_v26 = vcombine.high %v4991_v4, %v4995_v2  ;;  %v9450_v30 = vcombine.low %v4991_v4, %v4995_v2  ;;  %v5035_v56 = vld [vmem:[#allocation18 + $0x220] sm:$0xff] }
 0x62c   :  { %v4996_v1 = vld [vmem:[#allocation18 + $0xe8] sm:$0xff]  ;;  %v5039_v2 = vld [vmem:[#allocation18 + $0x240] sm:$0xff] }
 0x62d   :  { %v9452_v8 = vcombine.low %v4992_v5, %v4996_v1 }
 0x62e   :  { %9995 = vmatpush3.bf16.msra.mxu0 %v10214_v19  ;;  %10017 = vmatpush3.bf16.msra.mxu1 %v10215_v62  ;;  %v9453_v19 = vcombine.high %v4992_v5, %v4996_v1  ;;  %v4999_v62 = vld [vmem:[#allocation18 + $0x100] sm:$0xff]  ;;  %v5040_v1 = vld [vmem:[#allocation18 + $0x248] sm:$0xff] }
 0x62f   :  { %9996 = vmatprep.subr.bf16.mxu0 %v10216_v13  ;;  %10018 = vmatprep.subr.bf16.mxu1 %v10217_v29  ;;  %v5000_v13 = vld [vmem:[#allocation18 + $0x108] sm:$0xff]  ;;  %v9459_v18 = vcombine.high %v4999_v62, %v5003_v27  ;;  %v9458_v10 = vcombine.low %v4999_v62, %v5003_v27  ;;  %v5043_v5 = vld [vmem:[#allocation18 + $0x260] sm:$0xff] }
 0x630   :  { %v5004_v29 = vld [vmem:[#allocation18 + $0x128] sm:$0xff]  ;;  %v5047_v27 = vld [vmem:[#allocation18 + $0x280] sm:$0xff] }
 0x631   :  { %v9460_v38 = vcombine.low %v5000_v13, %v5004_v29 }
 0x632   :  { %9997 = vmatpush3.bf16.msra.mxu0 %v10218_v22  ;;  %10019 = vmatpush3.bf16.msra.mxu1 %v10219_v3  ;;  %v9461_v22 = vcombine.high %v5000_v13, %v5004_v29  ;;  %v5007_v3 = vld [vmem:[#allocation18 + $0x140] sm:$0xff]  ;;  %v5048_v29 = vld [vmem:[#allocation18 + $0x288] sm:$0xff] }
 0x633   :  { %9998 = vmatprep.subr.bf16.mxu0 %v10220_v21  ;;  %10020 = vmatprep.subr.bf16.mxu1 %v10221_v31  ;;  %v5011_v21 = vld [vmem:[#allocation18 + $0x160] sm:$0xff]  ;;  %v5008_v31 = vld [vmem:[#allocation18 + $0x148] sm:$0xff] }
 0x634   :  { %v9467_v33 = vcombine.high %v5007_v3, %v5011_v21  ;;  %v9469_v46 = vcombine.high %v5008_v31, %v5012_v51  ;;  %v9466_v37 = vcombine.low %v5007_v3, %v5011_v21  ;;  %v5051_v13 = vld [vmem:[#allocation18 + $0x2a0] sm:$0xff] }
 0x635   :  { %v5055_v21 = vld [vmem:[#allocation18 + $0x2c0] sm:$0xff] }
 0x636   :  { %9999 = vmatpush3.bf16.msra.mxu0 %v10222_v49  ;;  %10021 = vmatpush3.bf16.msra.mxu1 %v10223_v36  ;;  %v5019_v49 = vld [vmem:[#allocation18 + $0x1a0] sm:$0xff]  ;;  %v5016_v36 = vld [vmem:[#allocation18 + $0x188] sm:$0xff] }
 0x637   :  { %8081 = vmatprep.subr.bf16.mxu0 %v9427_v17  ;;  %8245 = vmatprep.subr.bf16.mxu1 %v9429_v34  ;;  %v9468_v17 = vcombine.low %v5008_v31, %v5012_v51  ;;  %v9475_v34 = vcombine.high %v5015_v35, %v5019_v49  ;;  %v9477_v48 = vcombine.high %v5016_v36, %v5020_v59  ;;  %v5059_v31 = vld [vmem:[#allocation18 + $0x2e0] sm:$0xff]  ;;  %v5056_v51 = vld [vmem:[#allocation18 + $0x2c8] sm:$0xff] }
 0x639   :  { %4920 = vmatmul.mubr.bf16.vlgmr.msra.gmra.mrb[12].mxu0 %v11128_v47  ;;  %4960 = vmatmul.mubr.bf16.vlgmr.msra.gmra.mrb[12].mxu1 %v11130_v39 }
 0x63a   :  { %8082 = vmatpush1.bf16.msra.mxu0 %v9426_v45  ;;  %8113 = vmatprep.mubr.bf16.mxu0 %v11098_v6  ;;  %v5028_v45 = vld [vmem:[#allocation18 + $0x1e8] sm:$0xff] }
 0x63b   :  { %8246 = vmatpush1.bf16.msra.mxu1 %v9428_v52  ;;  %8277 = vmatprep.mubr.bf16.mxu1 %v11098_v6  ;;  %v9474_v52 = vcombine.low %v5015_v35, %v5019_v49  ;;  %v9485_v14 = vcombine.high %v5024_v43, %v5028_v45  ;;  %v5063_v49 = vld [vmem:[#allocation18 + $0x300] sm:$0xff] }
 0x63c   :  { %8083 = vmatprep.subr.bf16.mxu0 %v9435_v44  ;;  %8247 = vmatprep.subr.bf16.mxu1 %v9437_v60  ;;  %v9476_v44 = vcombine.low %v5016_v36, %v5020_v59  ;;  %v9483_v60 = vcombine.high %v5023_v41, %v5027_v42  ;;  %v5067_v36 = vld [vmem:[#allocation18 + $0x320] sm:$0xff]  ;;  %v5064_v59 = vld [vmem:[#allocation18 + $0x308] sm:$0xff] }
 0x63e   :  { %8084 = vmatpush1.bf16.msra.mxu0 %v9434_v20  ;;  %v5036_v20 = vld [vmem:[#allocation18 + $0x228] sm:$0xff] }
 0x63f   :  { %8248 = vmatpush1.bf16.msra.mxu1 %v9436_v23  ;;  %8085 = vmatprep.subr.bf16.mxu0 %v9443_v25  ;;  %v9482_v23 = vcombine.low %v5023_v41, %v5027_v42  ;;  %v9484_v25 = vcombine.low %v5024_v43, %v5028_v45  ;;  %v9493_v4 = vcombine.high %v5032_v28, %v5036_v20  ;;  %v5071_v42 = vld [vmem:[#allocation18 + $0x340] sm:$0xff]  ;;  %v5072_v45 = vld [vmem:[#allocation18 + $0x348] sm:$0xff] }
 0x640   :  { %8249 = vmatprep.subr.bf16.mxu1 %v9445_v53  ;;  %v9491_v53 = vcombine.high %v5031_v16, %v5035_v56  ;;  %v5075_v43 = vld [vmem:[#allocation18 + $0x360] sm:$0xff] }
 0x642   :  { %8086 = vmatpush1.bf16.msra.mxu0 %v9442_v57  ;;  %v5044_v57 = vld [vmem:[#allocation18 + $0x268] sm:$0xff] }
 0x643   :  { %8250 = vmatpush1.bf16.msra.mxu1 %v9444_v58  ;;  %8087 = vmatprep.subr.bf16.mxu0 %v9451_v26  ;;  %v9490_v58 = vcombine.low %v5031_v16, %v5035_v56  ;;  %v9492_v26 = vcombine.low %v5032_v28, %v5036_v20  ;;  %v9501_v62 = vcombine.high %v5040_v1, %v5044_v57  ;;  %v5079_v56 = vld [vmem:[#allocation18 + $0x380] sm:$0xff]  ;;  %v5080_v20 = vld [vmem:[#allocation18 + $0x388] sm:$0xff] }
 0x644   :  { %8251 = vmatprep.subr.bf16.mxu1 %v9453_v19  ;;  %v9499_v19 = vcombine.high %v5039_v2, %v5043_v5  ;;  %v5083_v28 = vld [vmem:[#allocation18 + $0x3a0] sm:$0xff] }
 0x646   :  { %8088 = vmatpush1.bf16.msra.mxu0 %v9450_v30  ;;  %v5052_v30 = vld [vmem:[#allocation18 + $0x2a8] sm:$0xff] }
 0x647   :  { %8252 = vmatpush1.bf16.msra.mxu1 %v9452_v8  ;;  %8089 = vmatprep.subr.bf16.mxu0 %v9459_v18  ;;  %v9498_v8 = vcombine.low %v5039_v2, %v5043_v5  ;;  %v9500_v18 = vcombine.low %v5040_v1, %v5044_v57  ;;  %v9509_v3 = vcombine.high %v5048_v29, %v5052_v30  ;;  %v5087_v5 = vld [vmem:[#allocation18 + $0x3c0] sm:$0xff]  ;;  %v5088_v57 = vld [vmem:[#allocation18 + $0x3c8] sm:$0xff] }
 0x648   :  { %8253 = vmatprep.subr.bf16.mxu1 %v9461_v22  ;;  %v9507_v22 = vcombine.high %v5047_v27, %v5051_v13  ;;  %v5091_v1 = vld [vmem:[#allocation18 + $0x3e0] sm:$0xff] }
 0x64a   :  { %8090 = vmatpush1.bf16.msra.mxu0 %v9458_v10  ;;  %v5060_v10 = vld [vmem:[#allocation18 + $0x2e8] sm:$0xff] }
 0x64b   :  { %8254 = vmatpush1.bf16.msra.mxu1 %v9460_v38  ;;  %8091 = vmatprep.subr.bf16.mxu0 %v9467_v33  ;;  %v9506_v38 = vcombine.low %v5047_v27, %v5051_v13  ;;  %v9508_v33 = vcombine.low %v5048_v29, %v5052_v30  ;;  %v9517_v35 = vcombine.high %v5056_v51, %v5060_v10  ;;  %v5095_v13 = vld [vmem:[#allocation18 + $0x400] sm:$0xff]  ;;  %v5096_v30 = vld [vmem:[#allocation18 + $0x408] sm:$0xff] }
 0x64c   :  { %8255 = vmatprep.subr.bf16.mxu1 %v9469_v46  ;;  %v9515_v46 = vcombine.high %v5055_v21, %v5059_v31  ;;  %v5099_v29 = vld [vmem:[#allocation18 + $0x420] sm:$0xff] }
 0x64e   :  { %8092 = vmatpush1.bf16.msra.mxu0 %v9466_v37  ;;  %v5068_v37 = vld [vmem:[#allocation18 + $0x328] sm:$0xff] }
 0x64f   :  { %8256 = vmatpush1.bf16.msra.mxu1 %v9468_v17  ;;  %8093 = vmatprep.subr.bf16.mxu0 %v9475_v34  ;;  %v9514_v17 = vcombine.low %v5055_v21, %v5059_v31  ;;  %v9516_v34 = vcombine.low %v5056_v51, %v5060_v10  ;;  %v9525_v41 = vcombine.high %v5064_v59, %v5068_v37  ;;  %v5103_v31 = vld [vmem:[#allocation18 + $0x440] sm:$0xff] }
 0x650   :  { %8257 = vmatprep.subr.bf16.mxu1 %v9477_v48  ;;  %v9523_v48 = vcombine.high %v5063_v49, %v5067_v36  ;;  %v5107_v51 = vld [vmem:[#allocation18 + $0x460] sm:$0xff]  ;;  %v9554_v10 = vcombine.low %v5095_v13, %v5099_v29 }
 0x652   :  { %8094 = vmatpush1.bf16.msra.mxu0 %v9474_v52  ;;  %v5076_v52 = vld [vmem:[#allocation18 + $0x368] sm:$0xff] }
 0x653   :  { %8258 = vmatpush1.bf16.msra.mxu1 %v9476_v44  ;;  %8095 = vmatprep.subr.bf16.mxu0 %v9483_v60  ;;  %v9522_v44 = vcombine.low %v5063_v49, %v5067_v36  ;;  %v9524_v60 = vcombine.low %v5064_v59, %v5068_v37  ;;  %v9533_v16 = vcombine.high %v5072_v45, %v5076_v52  ;;  %v5111_v49 = vld [vmem:[#allocation18 + $0x480] sm:$0xff]  ;;  %v5112_v37 = vld [vmem:[#allocation18 + $0x488] sm:$0xff] }
 0x654   :  { %8259 = vmatprep.subr.bf16.mxu1 %v9485_v14  ;;  %v9531_v14 = vcombine.high %v5071_v42, %v5075_v43  ;;  %v5115_v36 = vld [vmem:[#allocation18 + $0x4a0] sm:$0xff] }
 0x656   :  { %8096 = vmatpush1.bf16.msra.mxu0 %v9482_v23  ;;  %v5084_v23 = vld [vmem:[#allocation18 + $0x3a8] sm:$0xff] }
 0x657   :  { %8260 = vmatpush1.bf16.msra.mxu1 %v9484_v25  ;;  %8097 = vmatprep.subr.bf16.mxu0 %v9491_v53  ;;  %v9530_v25 = vcombine.low %v5071_v42, %v5075_v43  ;;  %v9532_v53 = vcombine.low %v5072_v45, %v5076_v52  ;;  %v9541_v2 = vcombine.high %v5080_v20, %v5084_v23  ;;  %v5119_v43 = vld [vmem:[#allocation18 + $0x4c0] sm:$0xff]  ;;  %v5120_v52 = vld [vmem:[#allocation18 + $0x4c8] sm:$0xff] }
 0x658   :  { %8261 = vmatprep.subr.bf16.mxu1 %v9493_v4  ;;  %v9539_v4 = vcombine.high %v5079_v56, %v5083_v28  ;;  %v5123_v45 = vld [vmem:[#allocation18 + $0x4e0] sm:$0xff] }
 0x65a   :  { %8098 = vmatpush1.bf16.msra.mxu0 %v9490_v58  ;;  %v5092_v58 = vld [vmem:[#allocation18 + $0x3e8] sm:$0xff] }
 0x65b   :  { %8262 = vmatpush1.bf16.msra.mxu1 %v9492_v26  ;;  %8099 = vmatprep.subr.bf16.mxu0 %v9499_v19  ;;  %v9538_v26 = vcombine.low %v5079_v56, %v5083_v28  ;;  %v9540_v19 = vcombine.low %v5080_v20, %v5084_v23  ;;  %v9549_v27 = vcombine.high %v5088_v57, %v5092_v58  ;;  %v5127_v28 = vld [vmem:[#allocation18 + $0x500] sm:$0xff]  ;;  %v5128_v23 = vld [vmem:[#allocation18 + $0x508] sm:$0xff] }
 0x65c   :  { %8263 = vmatprep.subr.bf16.mxu1 %v9501_v62  ;;  %v9547_v62 = vcombine.high %v5087_v5, %v5091_v1  ;;  %v5131_v20 = vld [vmem:[#allocation18 + $0x520] sm:$0xff] }
 0x65e   :  { %8100 = vmatpush1.bf16.msra.mxu0 %v9498_v8  ;;  %v5100_v8 = vld [vmem:[#allocation18 + $0x428] sm:$0xff] }
 0x65f   :  { %8264 = vmatpush1.bf16.msra.mxu1 %v9500_v18  ;;  %8101 = vmatprep.subr.bf16.mxu0 %v9507_v22  ;;  %v9546_v18 = vcombine.low %v5087_v5, %v5091_v1  ;;  %v9548_v22 = vcombine.low %v5088_v57, %v5092_v58  ;;  %v9557_v21 = vcombine.high %v5096_v30, %v5100_v8  ;;  %v5135_v1 = vld [vmem:[#allocation18 + $0x540] sm:$0xff]  ;;  %v5136_v58 = vld [vmem:[#allocation18 + $0x548] sm:$0xff] }
 0x660   :  { %8265 = vmatprep.subr.bf16.mxu1 %v9509_v3  ;;  %v9555_v3 = vcombine.high %v5095_v13, %v5099_v29  ;;  %v5139_v57 = vld [vmem:[#allocation18 + $0x560] sm:$0xff] }
 0x661   :  { %v5143_v29 = vld [vmem:[#allocation18 + $0x580] sm:$0xff] }
 0x662   :  { %8102 = vmatpush1.bf16.msra.mxu0 %v9506_v38  ;;  %v5104_v38 = vld [vmem:[#allocation18 + $0x448] sm:$0xff] }
 0x663   :  { %8266 = vmatpush1.bf16.msra.mxu1 %v9508_v33  ;;  %8103 = vmatprep.subr.bf16.mxu0 %v9515_v46  ;;  %v5108_v33 = vld [vmem:[#allocation18 + $0x468] sm:$0xff]  ;;  %v9556_v46 = vcombine.low %v5096_v30, %v5100_v8  ;;  %v5147_v30 = vld [vmem:[#allocation18 + $0x5a0] sm:$0xff] }
 0x664   :  { %8267 = vmatprep.subr.bf16.mxu1 %v9517_v35  ;;  %v9563_v35 = vcombine.high %v5103_v31, %v5107_v51  ;;  %v9565_v59 = vcombine.high %v5104_v38, %v5108_v33  ;;  %v5144_v8 = vld [vmem:[#allocation18 + $0x588] sm:$0xff] }
 0x666   :  { %8104 = vmatpush1.bf16.msra.mxu0 %v9514_v17  ;;  %v5116_v17 = vld [vmem:[#allocation18 + $0x4a8] sm:$0xff] }
 0x667   :  { %8268 = vmatpush1.bf16.msra.mxu1 %v9516_v34  ;;  %8105 = vmatprep.subr.bf16.mxu0 %v9523_v48  ;;  %v9562_v34 = vcombine.low %v5103_v31, %v5107_v51  ;;  %v9564_v48 = vcombine.low %v5104_v38, %v5108_v33  ;;  %v9573_v42 = vcombine.high %v5112_v37, %v5116_v17  ;;  %v5151_v51 = vld [vmem:[#allocation18 + $0x5c0] sm:$0xff]  ;;  %v5152_v38 = vld [vmem:[#allocation18 + $0x5c8] sm:$0xff] }
 0x668   :  { %8269 = vmatprep.subr.bf16.mxu1 %v9525_v41  ;;  %v9571_v41 = vcombine.high %v5111_v49, %v5115_v36  ;;  %v5156_v33 = vld [vmem:[#allocation18 + $0x5e8] sm:$0xff] }
 0x66a   :  { %8106 = vmatpush1.bf16.msra.mxu0 %v9522_v44  ;;  %v5124_v44 = vld [vmem:[#allocation18 + $0x4e8] sm:$0xff] }
 0x66b   :  { %8270 = vmatpush1.bf16.msra.mxu1 %v9524_v60  ;;  %8107 = vmatprep.subr.bf16.mxu0 %v9531_v14  ;;  %v9570_v60 = vcombine.low %v5111_v49, %v5115_v36  ;;  %v9572_v14 = vcombine.low %v5112_v37, %v5116_v17  ;;  %v9581_v56 = vcombine.high %v5120_v52, %v5124_v44  ;;  %v5163_v37 = vld [vmem:[#allocation18 + $0x620] sm:$0xff]  ;;  %v5160_v17 = vld [vmem:[#allocation18 + $0x608] sm:$0xff] }
 0x66c   :  { %8271 = vmatprep.subr.bf16.mxu1 %v9533_v16  ;;  %v9579_v16 = vcombine.high %v5119_v43, %v5123_v45  ;;  %v9613_v36 = vcombine.high %v5152_v38, %v5156_v33 }
 0x66e   :  { %8108 = vmatpush1.bf16.msra.mxu0 %v9530_v25  ;;  %v5132_v25 = vld [vmem:[#allocation18 + $0x528] sm:$0xff] }
 0x66f   :  { %8272 = vmatpush1.bf16.msra.mxu1 %v9532_v53  ;;  %8109 = vmatprep.subr.bf16.mxu0 %v9539_v4  ;;  %v9578_v53 = vcombine.low %v5119_v43, %v5123_v45  ;;  %v9580_v4 = vcombine.low %v5120_v52, %v5124_v44  ;;  %v9589_v5 = vcombine.high %v5128_v23, %v5132_v25  ;;  %v5167_v45 = vld [vmem:[#allocation18 + $0x640] sm:$0xff]  ;;  %v5168_v44 = vld [vmem:[#allocation18 + $0x648] sm:$0xff] }
 0x670   :  { %8273 = vmatprep.subr.bf16.mxu1 %v9541_v2  ;;  %v9587_v2 = vcombine.high %v5127_v28, %v5131_v20  ;;  %v5171_v52 = vld [vmem:[#allocation18 + $0x660] sm:$0xff] }
 0x672   :  { %8110 = vmatpush1.bf16.msra.mxu0 %v9538_v26  ;;  %v5140_v26 = vld [vmem:[#allocation18 + $0x568] sm:$0xff] }
 0x673   :  { %8274 = vmatpush1.bf16.msra.mxu1 %v9540_v19  ;;  %8111 = vmatprep.subr.bf16.mxu0 %v9547_v62  ;;  %v9586_v19 = vcombine.low %v5127_v28, %v5131_v20  ;;  %v9588_v62 = vcombine.low %v5128_v23, %v5132_v25  ;;  %v9597_v13 = vcombine.high %v5136_v58, %v5140_v26  ;;  %v5175_v20 = vld [vmem:[#allocation18 + $0x680] sm:$0xff]  ;;  %v5176_v25 = vld [vmem:[#allocation18 + $0x688] sm:$0xff] }
 0x674   :  { %8275 = vmatprep.subr.bf16.mxu1 %v9549_v27  ;;  %v9595_v27 = vcombine.high %v5135_v1, %v5139_v57  ;;  %v5179_v23 = vld [vmem:[#allocation18 + $0x6a0] sm:$0xff] }
 0x676   :  { %8112 = vmatpush1.bf16.msra.mxu0 %v9546_v18  ;;  %v5148_v18 = vld [vmem:[#allocation18 + $0x5a8] sm:$0xff] }
 0x677   :  { %8276 = vmatpush1.bf16.msra.mxu1 %v9548_v22  ;;  %8122 = vmatprep.subr.bf16.mxu0 %v9555_v3  ;;  %v9594_v22 = vcombine.low %v5135_v1, %v5139_v57  ;;  %v9596_v3 = vcombine.low %v5136_v58, %v5140_v26  ;;  %v9605_v31 = vcombine.high %v5144_v8, %v5148_v18  ;;  %v5183_v57 = vld [vmem:[#allocation18 + $0x6c0] sm:$0xff]  ;;  %v5184_v26 = vld [vmem:[#allocation18 + $0x6c8] sm:$0xff] }
 0x678   :  { %8286 = vmatprep.subr.bf16.mxu1 %v9557_v21  ;;  %v9603_v21 = vcombine.high %v5143_v29, %v5147_v30  ;;  %v5187_v58 = vld [vmem:[#allocation18 + $0x6e0] sm:$0xff] }
 0x679   :  { %8114 = vmatmul.mubr.bf16.vlgmr.msra.gmra.mrb[16].mxu0 %v11102_v55 }
 0x67a   :  { %8278 = vmatmul.mubr.bf16.vlgmr.msra.gmra.mrb[16].mxu1 %v11102_v55  ;;  %8123 = vmatpush1.bf16.msra.mxu0 %v9554_v10  ;;  %v5155_v10 = vld [vmem:[#allocation18 + $0x5e0] sm:$0xff] }
 0x67b   :  { %8154 = vmatprep.mubr.bf16.mxu0 %v11100_v50  ;;  %8287 = vmatpush1.bf16.msra.mxu1 %v9556_v46  ;;  %v9602_v46 = vcombine.low %v5143_v29, %v5147_v30  ;;  %v9611_v49 = vcombine.high %v5151_v51, %v5155_v10  ;;  %v5191_v30 = vld [vmem:[#allocation18 + $0x700] sm:$0xff] }
 0x67c   :  { %8318 = vmatprep.mubr.bf16.mxu1 %v11100_v50  ;;  %8124 = vmatprep.subr.bf16.mxu0 %v9563_v35  ;;  %v9604_v35 = vcombine.low %v5144_v8, %v5148_v18  ;;  %v5195_v8 = vld [vmem:[#allocation18 + $0x720] sm:$0xff]  ;;  %v5192_v18 = vld [vmem:[#allocation18 + $0x708] sm:$0xff] }
 0x67d   :  { %8288 = vmatprep.subr.bf16.mxu1 %v9565_v59  ;;  %v5159_v59 = vld [vmem:[#allocation18 + $0x600] sm:$0xff] }
 0x67e   :  { %8125 = vmatpush1.bf16.msra.mxu0 %v9562_v34  ;;  %v5164_v34 = vld [vmem:[#allocation18 + $0x628] sm:$0xff] }
 0x67f   :  { %8289 = vmatpush1.bf16.msra.mxu1 %v9564_v48  ;;  %8126 = vmatprep.subr.bf16.mxu0 %v9571_v41  ;;  %v9610_v48 = vcombine.low %v5151_v51, %v5155_v10  ;;  %v9612_v41 = vcombine.low %v5152_v38, %v5156_v33  ;;  %v9621_v43 = vcombine.high %v5160_v17, %v5164_v34  ;;  %v5199_v10 = vld [vmem:[#allocation18 + $0x740] sm:$0xff]  ;;  %v5200_v33 = vld [vmem:[#allocation18 + $0x748] sm:$0xff] }
 0x680   :  { %8290 = vmatprep.subr.bf16.mxu1 %v9573_v42  ;;  %v9619_v42 = vcombine.high %v5159_v59, %v5163_v37  ;;  %v5203_v38 = vld [vmem:[#allocation18 + $0x760] sm:$0xff] }
 0x682   :  { %8127 = vmatpush1.bf16.msra.mxu0 %v9570_v60  ;;  %v5172_v60 = vld [vmem:[#allocation18 + $0x668] sm:$0xff] }
 0x683   :  { %8291 = vmatpush1.bf16.msra.mxu1 %v9572_v14  ;;  %8128 = vmatprep.subr.bf16.mxu0 %v9579_v16  ;;  %v9618_v14 = vcombine.low %v5159_v59, %v5163_v37  ;;  %v9620_v16 = vcombine.low %v5160_v17, %v5164_v34  ;;  %v9629_v28 = vcombine.high %v5168_v44, %v5172_v60  ;;  %v5207_v37 = vld [vmem:[#allocation18 + $0x780] sm:$0xff]  ;;  %v5208_v34 = vld [vmem:[#allocation18 + $0x788] sm:$0xff] }
 0x684   :  { %8292 = vmatprep.subr.bf16.mxu1 %v9581_v56  ;;  %v9627_v56 = vcombine.high %v5167_v45, %v5171_v52  ;;  %v5211_v17 = vld [vmem:[#allocation18 + $0x7a0] sm:$0xff] }
 0x686   :  { %8129 = vmatpush1.bf16.msra.mxu0 %v9578_v53  ;;  %v5180_v53 = vld [vmem:[#allocation18 + $0x6a8] sm:$0xff] }
 0x687   :  { %8293 = vmatpush1.bf16.msra.mxu1 %v9580_v4  ;;  %8130 = vmatprep.subr.bf16.mxu0 %v9587_v2  ;;  %v9626_v4 = vcombine.low %v5167_v45, %v5171_v52  ;;  %v9628_v2 = vcombine.low %v5168_v44, %v5172_v60  ;;  %v9637_v1 = vcombine.high %v5176_v25, %v5180_v53  ;;  %v5215_v52 = vld [vmem:[#allocation18 + $0x7c0] sm:$0xff]  ;;  %v5216_v60 = vld [vmem:[#allocation18 + $0x7c8] sm:$0xff] }
 0x688   :  { %8294 = vmatprep.subr.bf16.mxu1 %v9589_v5  ;;  %v9635_v5 = vcombine.high %v5175_v20, %v5179_v23  ;;  %v5219_v44 = vld [vmem:[#allocation18 + $0x7e0] sm:$0xff] }
 0x68a   :  { %8131 = vmatpush1.bf16.msra.mxu0 %v9586_v19  ;;  %v5188_v19 = vld [vmem:[#allocation18 + $0x6e8] sm:$0xff] }
 0x68b   :  { %8295 = vmatpush1.bf16.msra.mxu1 %v9588_v62  ;;  %8132 = vmatprep.subr.bf16.mxu0 %v9595_v27  ;;  %v9634_v62 = vcombine.low %v5175_v20, %v5179_v23  ;;  %v9636_v27 = vcombine.low %v5176_v25, %v5180_v53  ;;  %v9645_v29 = vcombine.high %v5184_v26, %v5188_v19  ;;  %v5223_v23 = vld [vmem:[#allocation18 + $0x800] sm:$0xff]  ;;  %v5224_v53 = vld [vmem:[#allocation18 + $0x808] sm:$0xff] }
 0x68c   :  { %8296 = vmatprep.subr.bf16.mxu1 %v9597_v13  ;;  %v9643_v13 = vcombine.high %v5183_v57, %v5187_v58  ;;  %v5227_v25 = vld [vmem:[#allocation18 + $0x820] sm:$0xff] }
 0x68e   :  { %8133 = vmatpush1.bf16.msra.mxu0 %v9594_v22  ;;  %v5196_v22 = vld [vmem:[#allocation18 + $0x728] sm:$0xff] }
 0x68f   :  { %8297 = vmatpush1.bf16.msra.mxu1 %v9596_v3  ;;  %8134 = vmatprep.subr.bf16.mxu0 %v9603_v21  ;;  %v9642_v3 = vcombine.low %v5183_v57, %v5187_v58  ;;  %v9644_v21 = vcombine.low %v5184_v26, %v5188_v19  ;;  %v9653_v51 = vcombine.high %v5192_v18, %v5196_v22  ;;  %v5231_v58 = vld [vmem:[#allocation18 + $0x840] sm:$0xff] }
 0x690   :  { %8298 = vmatprep.subr.bf16.mxu1 %v9605_v31  ;;  %v9651_v31 = vcombine.high %v5191_v30, %v5195_v8  ;;  %v5235_v26 = vld [vmem:[#allocation18 + $0x860] sm:$0xff]  ;;  %v9682_v19 = vcombine.low %v5223_v23, %v5227_v25 }
 0x692   :  { %8135 = vmatpush1.bf16.msra.mxu0 %v9602_v46  ;;  %v5204_v46 = vld [vmem:[#allocation18 + $0x768] sm:$0xff] }
 0x693   :  { %8299 = vmatpush1.bf16.msra.mxu1 %v9604_v35  ;;  %8136 = vmatprep.subr.bf16.mxu0 %v9611_v49  ;;  %v9650_v35 = vcombine.low %v5191_v30, %v5195_v8  ;;  %v9652_v49 = vcombine.low %v5192_v18, %v5196_v22  ;;  %v9661_v59 = vcombine.high %v5200_v33, %v5204_v46  ;;  %v5239_v30 = vld [vmem:[#allocation18 + $0x880] sm:$0xff]  ;;  %v5240_v22 = vld [vmem:[#allocation18 + $0x888] sm:$0xff] }
 0x694   :  { %8300 = vmatprep.subr.bf16.mxu1 %v9613_v36  ;;  %v9659_v36 = vcombine.high %v5199_v10, %v5203_v38  ;;  %v5243_v8 = vld [vmem:[#allocation18 + $0x8a0] sm:$0xff] }
 0x696   :  { %8137 = vmatpush1.bf16.msra.mxu0 %v9610_v48  ;;  %v5212_v48 = vld [vmem:[#allocation18 + $0x7a8] sm:$0xff] }
 0x697   :  { %8301 = vmatpush1.bf16.msra.mxu1 %v9612_v41  ;;  %8138 = vmatprep.subr.bf16.mxu0 %v9619_v42  ;;  %v9658_v41 = vcombine.low %v5199_v10, %v5203_v38  ;;  %v9660_v42 = vcombine.low %v5200_v33, %v5204_v46  ;;  %v9669_v45 = vcombine.high %v5208_v34, %v5212_v48  ;;  %v5247_v38 = vld [vmem:[#allocation18 + $0x8c0] sm:$0xff]  ;;  %v5248_v46 = vld [vmem:[#allocation18 + $0x8c8] sm:$0xff] }
 0x698   :  { %8302 = vmatprep.subr.bf16.mxu1 %v9621_v43  ;;  %v9667_v43 = vcombine.high %v5207_v37, %v5211_v17  ;;  %v5251_v33 = vld [vmem:[#allocation18 + $0x8e0] sm:$0xff] }
 0x69a   :  { %8139 = vmatpush1.bf16.msra.mxu0 %v9618_v14  ;;  %v5220_v14 = vld [vmem:[#allocation18 + $0x7e8] sm:$0xff] }
 0x69b   :  { %8303 = vmatpush1.bf16.msra.mxu1 %v9620_v16  ;;  %8140 = vmatprep.subr.bf16.mxu0 %v9627_v56  ;;  %v9666_v16 = vcombine.low %v5207_v37, %v5211_v17  ;;  %v9668_v56 = vcombine.low %v5208_v34, %v5212_v48  ;;  %v9677_v20 = vcombine.high %v5216_v60, %v5220_v14  ;;  %v5255_v17 = vld [vmem:[#allocation18 + $0x900] sm:$0xff]  ;;  %v5256_v48 = vld [vmem:[#allocation18 + $0x908] sm:$0xff] }
 0x69c   :  { %8304 = vmatprep.subr.bf16.mxu1 %v9629_v28  ;;  %v9675_v28 = vcombine.high %v5215_v52, %v5219_v44  ;;  %v5259_v34 = vld [vmem:[#allocation18 + $0x920] sm:$0xff] }
 0x69e   :  { %8141 = vmatpush1.bf16.msra.mxu0 %v9626_v4  ;;  %v5228_v4 = vld [vmem:[#allocation18 + $0x828] sm:$0xff] }
 0x69f   :  { %8305 = vmatpush1.bf16.msra.mxu1 %v9628_v2  ;;  %8142 = vmatprep.subr.bf16.mxu0 %v9635_v5  ;;  %v9674_v2 = vcombine.low %v5215_v52, %v5219_v44  ;;  %v9676_v5 = vcombine.low %v5216_v60, %v5220_v14  ;;  %v9685_v57 = vcombine.high %v5224_v53, %v5228_v4  ;;  %v5263_v44 = vld [vmem:[#allocation18 + $0x940] sm:$0xff]  ;;  %v5264_v14 = vld [vmem:[#allocation18 + $0x948] sm:$0xff] }
 0x6a0   :  { %8306 = vmatprep.subr.bf16.mxu1 %v9637_v1  ;;  %v9683_v1 = vcombine.high %v5223_v23, %v5227_v25  ;;  %v5267_v60 = vld [vmem:[#allocation18 + $0x960] sm:$0xff] }
 0x6a1   :  { %v5271_v25 = vld [vmem:[#allocation18 + $0x980] sm:$0xff] }
 0x6a2   :  { %8143 = vmatpush1.bf16.msra.mxu0 %v9634_v62  ;;  %v5232_v62 = vld [vmem:[#allocation18 + $0x848] sm:$0xff] }
 0x6a3   :  { %8307 = vmatpush1.bf16.msra.mxu1 %v9636_v27  ;;  %8144 = vmatprep.subr.bf16.mxu0 %v9643_v13  ;;  %v5236_v27 = vld [vmem:[#allocation18 + $0x868] sm:$0xff]  ;;  %v9684_v13 = vcombine.low %v5224_v53, %v5228_v4  ;;  %v5275_v53 = vld [vmem:[#allocation18 + $0x9a0] sm:$0xff] }
 0x6a4   :  { %8308 = vmatprep.subr.bf16.mxu1 %v9645_v29  ;;  %v9691_v29 = vcombine.high %v5231_v58, %v5235_v26  ;;  %v9693_v18 = vcombine.high %v5232_v62, %v5236_v27  ;;  %v5272_v4 = vld [vmem:[#allocation18 + $0x988] sm:$0xff] }
 0x6a6   :  { %8145 = vmatpush1.bf16.msra.mxu0 %v9642_v3  ;;  %v5244_v3 = vld [vmem:[#allocation18 + $0x8a8] sm:$0xff] }
 0x6a7   :  { %8309 = vmatpush1.bf16.msra.mxu1 %v9644_v21  ;;  %8146 = vmatprep.subr.bf16.mxu0 %v9651_v31  ;;  %v9690_v21 = vcombine.low %v5231_v58, %v5235_v26  ;;  %v9692_v31 = vcombine.low %v5232_v62, %v5236_v27  ;;  %v9701_v10 = vcombine.high %v5240_v22, %v5244_v3  ;;  %v5279_v26 = vld [vmem:[#allocation18 + $0x9c0] sm:$0xff]  ;;  %v5280_v62 = vld [vmem:[#allocation18 + $0x9c8] sm:$0xff] }
 0x6a8   :  { %8310 = vmatprep.subr.bf16.mxu1 %v9653_v51  ;;  %v9699_v51 = vcombine.high %v5239_v30, %v5243_v8  ;;  %v5284_v27 = vld [vmem:[#allocation18 + $0x9e8] sm:$0xff] }
 0x6aa   :  { %8147 = vmatpush1.bf16.msra.mxu0 %v9650_v35  ;;  %v5252_v35 = vld [vmem:[#allocation18 + $0x8e8] sm:$0xff] }
 0x6ab   :  { %8311 = vmatpush1.bf16.msra.mxu1 %v9652_v49  ;;  %8148 = vmatprep.subr.bf16.mxu0 %v9659_v36  ;;  %v9698_v49 = vcombine.low %v5239_v30, %v5243_v8  ;;  %v9700_v36 = vcombine.low %v5240_v22, %v5244_v3  ;;  %v9709_v37 = vcombine.high %v5248_v46, %v5252_v35  ;;  %v5291_v22 = vld [vmem:[#allocation18 + $0xa20] sm:$0xff]  ;;  %v5288_v3 = vld [vmem:[#allocation18 + $0xa08] sm:$0xff] }
 0x6ac   :  { %8312 = vmatprep.subr.bf16.mxu1 %v9661_v59  ;;  %v9707_v59 = vcombine.high %v5247_v38, %v5251_v33  ;;  %v9741_v8 = vcombine.high %v5280_v62, %v5284_v27 }
 0x6ae   :  { %8149 = vmatpush1.bf16.msra.mxu0 %v9658_v41  ;;  %v5260_v41 = vld [vmem:[#allocation18 + $0x928] sm:$0xff] }
 0x6af   :  { %8313 = vmatpush1.bf16.msra.mxu1 %v9660_v42  ;;  %8150 = vmatprep.subr.bf16.mxu0 %v9667_v43  ;;  %v9706_v42 = vcombine.low %v5247_v38, %v5251_v33  ;;  %v9708_v43 = vcombine.low %v5248_v46, %v5252_v35  ;;  %v9717_v52 = vcombine.high %v5256_v48, %v5260_v41  ;;  %v5295_v33 = vld [vmem:[#allocation18 + $0xa40] sm:$0xff]  ;;  %v5296_v35 = vld [vmem:[#allocation18 + $0xa48] sm:$0xff] }
 0x6b0   :  { %8314 = vmatprep.subr.bf16.mxu1 %v9669_v45  ;;  %v9715_v45 = vcombine.high %v5255_v17, %v5259_v34  ;;  %v5299_v46 = vld [vmem:[#allocation18 + $0xa60] sm:$0xff] }
 0x6b2   :  { %8151 = vmatpush1.bf16.msra.mxu0 %v9666_v16  ;;  %v5268_v16 = vld [vmem:[#allocation18 + $0x968] sm:$0xff] }
 0x6b3   :  { %8315 = vmatpush1.bf16.msra.mxu1 %v9668_v56  ;;  %8152 = vmatprep.subr.bf16.mxu0 %v9675_v28  ;;  %v9714_v56 = vcombine.low %v5255_v17, %v5259_v34  ;;  %v9716_v28 = vcombine.low %v5256_v48, %v5260_v41  ;;  %v9725_v23 = vcombine.high %v5264_v14, %v5268_v16  ;;  %v5303_v34 = vld [vmem:[#allocation18 + $0xa80] sm:$0xff]  ;;  %v5304_v41 = vld [vmem:[#allocation18 + $0xa88] sm:$0xff] }
 0x6b4   :  { %8316 = vmatprep.subr.bf16.mxu1 %v9677_v20  ;;  %v9723_v20 = vcombine.high %v5263_v44, %v5267_v60  ;;  %v5307_v48 = vld [vmem:[#allocation18 + $0xaa0] sm:$0xff] }
 0x6b6   :  { %8153 = vmatpush1.bf16.msra.mxu0 %v9674_v2  ;;  %v5276_v2 = vld [vmem:[#allocation18 + $0x9a8] sm:$0xff] }
 0x6b7   :  { %8317 = vmatpush1.bf16.msra.mxu1 %v9676_v5  ;;  %8163 = vmatprep.subr.bf16.mxu0 %v9683_v1  ;;  %v9722_v5 = vcombine.low %v5263_v44, %v5267_v60  ;;  %v9724_v1 = vcombine.low %v5264_v14, %v5268_v16  ;;  %v9733_v58 = vcombine.high %v5272_v4, %v5276_v2  ;;  %v5311_v60 = vld [vmem:[#allocation18 + $0xac0] sm:$0xff]  ;;  %v5312_v16 = vld [vmem:[#allocation18 + $0xac8] sm:$0xff] }
 0x6b8   :  { %8327 = vmatprep.subr.bf16.mxu1 %v9685_v57  ;;  %v9731_v57 = vcombine.high %v5271_v25, %v5275_v53  ;;  %v5315_v14 = vld [vmem:[#allocation18 + $0xae0] sm:$0xff] }
 0x6b9   :  { %8155 = vmatmul.mubr.bf16.vlgmr.msra.gmra.mrb[16].mxu0 %v11104_v11 }
 0x6ba   :  { %8319 = vmatmul.mubr.bf16.vlgmr.msra.gmra.mrb[16].mxu1 %v11104_v11  ;;  %8164 = vmatpush1.bf16.msra.mxu0 %v9682_v19  ;;  %v5283_v19 = vld [vmem:[#allocation18 + $0x9e0] sm:$0xff] }
 0x6bb   :  { %8195 = vmatprep.mubr.bf16.mxu0 %v11110_v40  ;;  %8328 = vmatpush1.bf16.msra.mxu1 %v9684_v13  ;;  %v9730_v13 = vcombine.low %v5271_v25, %v5275_v53  ;;  %v9739_v30 = vcombine.high %v5279_v26, %v5283_v19  ;;  %v5319_v53 = vld [vmem:[#allocation18 + $0xb00] sm:$0xff] }
 0x6bc   :  { %8359 = vmatprep.mubr.bf16.mxu1 %v11110_v40  ;;  %8165 = vmatprep.subr.bf16.mxu0 %v9691_v29  ;;  %v9732_v29 = vcombine.low %v5272_v4, %v5276_v2  ;;  %v5323_v4 = vld [vmem:[#allocation18 + $0xb20] sm:$0xff]  ;;  %v5320_v2 = vld [vmem:[#allocation18 + $0xb08] sm:$0xff] }
 0x6bd   :  { %8329 = vmatprep.subr.bf16.mxu1 %v9693_v18  ;;  %v5287_v18 = vld [vmem:[#allocation18 + $0xa00] sm:$0xff] }
 0x6be   :  { %8166 = vmatpush1.bf16.msra.mxu0 %v9690_v21  ;;  %v5292_v21 = vld [vmem:[#allocation18 + $0xa28] sm:$0xff] }
 0x6bf   :  { %8330 = vmatpush1.bf16.msra.mxu1 %v9692_v31  ;;  %8167 = vmatprep.subr.bf16.mxu0 %v9699_v51  ;;  %v9738_v31 = vcombine.low %v5279_v26, %v5283_v19  ;;  %v9740_v51 = vcombine.low %v5280_v62, %v5284_v27  ;;  %v9749_v38 = vcombine.high %v5288_v3, %v5292_v21  ;;  %v5327_v19 = vld [vmem:[#allocation18 + $0xb40] sm:$0xff]  ;;  %v5328_v27 = vld [vmem:[#allocation18 + $0xb48] sm:$0xff] }
 0x6c0   :  { %8331 = vmatprep.subr.bf16.mxu1 %v9701_v10  ;;  %v9747_v10 = vcombine.high %v5287_v18, %v5291_v22  ;;  %v5331_v62 = vld [vmem:[#allocation18 + $0xb60] sm:$0xff] }
 0x6c2   :  { %8168 = vmatpush1.bf16.msra.mxu0 %v9698_v49  ;;  %v5300_v49 = vld [vmem:[#allocation18 + $0xa68] sm:$0xff] }
 0x6c3   :  { %8332 = vmatpush1.bf16.msra.mxu1 %v9700_v36  ;;  %8169 = vmatprep.subr.bf16.mxu0 %v9707_v59  ;;  %v9746_v36 = vcombine.low %v5287_v18, %v5291_v22  ;;  %v9748_v59 = vcombine.low %v5288_v3, %v5292_v21  ;;  %v9757_v17 = vcombine.high %v5296_v35, %v5300_v49  ;;  %v5335_v22 = vld [vmem:[#allocation18 + $0xb80] sm:$0xff]  ;;  %v5336_v21 = vld [vmem:[#allocation18 + $0xb88] sm:$0xff] }
 0x6c4   :  { %8333 = vmatprep.subr.bf16.mxu1 %v9709_v37  ;;  %v9755_v37 = vcombine.high %v5295_v33, %v5299_v46  ;;  %v5339_v3 = vld [vmem:[#allocation18 + $0xba0] sm:$0xff] }
 0x6c6   :  { %8170 = vmatpush1.bf16.msra.mxu0 %v9706_v42  ;;  %v5308_v42 = vld [vmem:[#allocation18 + $0xaa8] sm:$0xff] }
 0x6c7   :  { %8334 = vmatpush1.bf16.msra.mxu1 %v9708_v43  ;;  %8171 = vmatprep.subr.bf16.mxu0 %v9715_v45  ;;  %v9754_v43 = vcombine.low %v5295_v33, %v5299_v46  ;;  %v9756_v45 = vcombine.low %v5296_v35, %v5300_v49  ;;  %v9765_v44 = vcombine.high %v5304_v41, %v5308_v42  ;;  %v5343_v49 = vld [vmem:[#allocation18 + $0xbc0] sm:$0xff] }
 0x6c8   :  { %8335 = vmatprep.subr.bf16.mxu1 %v9717_v52  ;;  %v9763_v52 = vcombine.high %v5303_v34, %v5307_v48 }
 0x6ca   :  { %8172 = vmatpush1.bf16.msra.mxu0 %v9714_v56  ;;  %v5316_v56 = vld [vmem:[#allocation18 + $0xae8] sm:$0xff] }
 0x6cb   :  { %8336 = vmatpush1.bf16.msra.mxu1 %v9716_v28  ;;  %8173 = vmatprep.subr.bf16.mxu0 %v9723_v20  ;;  %v9762_v28 = vcombine.low %v5303_v34, %v5307_v48  ;;  %v9764_v20 = vcombine.low %v5304_v41, %v5308_v42  ;;  %v9773_v25 = vcombine.high %v5312_v16, %v5316_v56  ;;  %v5344_v34 = vld [vmem:[#allocation18 + $0xbc8] sm:$0xff] }
 0x6cc   :  { %8337 = vmatprep.subr.bf16.mxu1 %v9725_v23  ;;  %v9771_v23 = vcombine.high %v5311_v60, %v5315_v14  ;;  %v5348_v48 = vld [vmem:[#allocation18 + $0xbe8] sm:$0xff] }
 0x6ce   :  { %8174 = vmatpush1.bf16.msra.mxu0 %v9722_v5  ;;  %v5324_v5 = vld [vmem:[#allocation18 + $0xb28] sm:$0xff] }
 0x6cf   :  { %8338 = vmatpush1.bf16.msra.mxu1 %v9724_v1  ;;  %8175 = vmatprep.subr.bf16.mxu0 %v9731_v57  ;;  %v9770_v1 = vcombine.low %v5311_v60, %v5315_v14  ;;  %v9772_v57 = vcombine.low %v5312_v16, %v5316_v56  ;;  %v9781_v26 = vcombine.high %v5320_v2, %v5324_v5 }
 0x6d0   :  { %8339 = vmatprep.subr.bf16.mxu1 %v9733_v58  ;;  %v9779_v58 = vcombine.high %v5319_v53, %v5323_v4 }
 0x6d2   :  { %8176 = vmatpush1.bf16.msra.mxu0 %v9730_v13  ;;  %v5332_v13 = vld [vmem:[#allocation18 + $0xb68] sm:$0xff] }
 0x6d3   :  { %8340 = vmatpush1.bf16.msra.mxu1 %v9732_v29  ;;  %8177 = vmatprep.subr.bf16.mxu0 %v9739_v30  ;;  %v9778_v29 = vcombine.low %v5319_v53, %v5323_v4  ;;  %v9780_v30 = vcombine.low %v5320_v2, %v5324_v5  ;;  %v9789_v18 = vcombine.high %v5328_v27, %v5332_v13  ;;  %v5356_v53 = vld [vmem:[#allocation18 + $0xc28] sm:$0xff] }
 0x6d4   :  { %8341 = vmatprep.subr.bf16.mxu1 %v9741_v8  ;;  %v9787_v8 = vcombine.high %v5327_v19, %v5331_v62  ;;  %v9804_v5 = vcombine.low %v5344_v34, %v5348_v48 }
 0x6d6   :  { %8178 = vmatpush1.bf16.msra.mxu0 %v9738_v31  ;;  %v5340_v31 = vld [vmem:[#allocation18 + $0xba8] sm:$0xff] }
 0x6d7   :  { %8342 = vmatpush1.bf16.msra.mxu1 %v9740_v51  ;;  %8179 = vmatprep.subr.bf16.mxu0 %v9747_v10  ;;  %v9786_v51 = vcombine.low %v5327_v19, %v5331_v62  ;;  %v9788_v10 = vcombine.low %v5328_v27, %v5332_v13  ;;  %v9797_v35 = vcombine.high %v5336_v21, %v5340_v31  ;;  %v5360_v62 = vld [vmem:[#allocation18 + $0xc48] sm:$0xff] }
 0x6d8   :  { %8343 = vmatprep.subr.bf16.mxu1 %v9749_v38  ;;  %v9795_v38 = vcombine.high %v5335_v22, %v5339_v3  ;;  %v9796_v14 = vcombine.low %v5336_v21, %v5340_v31  ;;  %v5364_v27 = vld [vmem:[#allocation18 + $0xc68] sm:$0xff] }
 0x6d9   :  { %v9820_v31 = vcombine.low %v5360_v62, %v5364_v27 }
 0x6da   :  { %8180 = vmatpush1.bf16.msra.mxu0 %v9746_v36  ;;  %v5347_v36 = vld [vmem:[#allocation18 + $0xbe0] sm:$0xff] }
 0x6db   :  { %8344 = vmatpush1.bf16.msra.mxu1 %v9748_v59  ;;  %8181 = vmatprep.subr.bf16.mxu0 %v9755_v37  ;;  %v9361_v59 = vld [vmem:[#allocation17] ss:$0 sm:$0xff]  ;;  %v9803_v16 = vcombine.high %v5343_v49, %v5347_v36  ;;  %v9802_v2 = vcombine.low %v5343_v49, %v5347_v36 }
 0x6dc   :  { %8345 = vmatprep.subr.bf16.mxu1 %v9757_v17 }
 0x6de   :  { %8182 = vmatpush1.bf16.msra.mxu0 %v9754_v43 }
 0x6df   :  { %8346 = vmatpush1.bf16.msra.mxu1 %v9756_v45  ;;  %8183 = vmatprep.subr.bf16.mxu0 %v9763_v52  ;;  %v9794_v52 = vcombine.low %v5335_v22, %v5339_v3  ;;  %v5368_v22 = vld [vmem:[#allocation18 + $0xc88] sm:$0xff] }
 0x6e0   :  { %8347 = vmatprep.subr.bf16.mxu1 %v9765_v44  ;;  %v5372_v3 = vld [vmem:[#allocation18 + $0xca8] sm:$0xff] }
 0x6e1   :  { %v9828_v36 = vcombine.low %v5368_v22, %v5372_v3 }
 0x6e2   :  { %8184 = vmatpush1.bf16.msra.mxu0 %v9762_v28  ;;  %v9805_v28 = vcombine.high %v5344_v34, %v5348_v48  ;;  %v5387_v34 = vld [vmem:[#allocation18 + $0xd20] sm:$0xff]  ;;  %v5384_v48 = vld [vmem:[#allocation18 + $0xd08] sm:$0xff] }
 0x6e3   :  { %8348 = vmatpush1.bf16.msra.mxu1 %v9764_v20  ;;  %8185 = vmatprep.subr.bf16.mxu0 %v9771_v23  ;;  %v5351_v20 = vld [vmem:[#allocation18 + $0xc00] sm:$0xff] }
 0x6e4   :  { %8349 = vmatprep.subr.bf16.mxu1 %v9773_v25  ;;  %v5355_v23 = vld [vmem:[#allocation18 + $0xc20] sm:$0xff]  ;;  %v5352_v25 = vld [vmem:[#allocation18 + $0xc08] sm:$0xff] }
 0x6e5   :  { %v9810_v19 = vcombine.low %v5351_v20, %v5355_v23  ;;  %v9812_v13 = vcombine.low %v5352_v25, %v5356_v53 }
 0x6e6   :  { %8186 = vmatpush1.bf16.msra.mxu0 %v9770_v1  ;;  %v9811_v1 = vcombine.high %v5351_v20, %v5355_v23 }
 0x6e7   :  { %8350 = vmatpush1.bf16.msra.mxu1 %v9772_v57  ;;  %8187 = vmatprep.subr.bf16.mxu0 %v9779_v58  ;;  %v9813_v57 = vcombine.high %v5352_v25, %v5356_v53  ;;  %v5359_v58 = vld [vmem:[#allocation18 + $0xc40] sm:$0xff] }
 0x6e8   :  { %8351 = vmatprep.subr.bf16.mxu1 %v9781_v26  ;;  %v5363_v26 = vld [vmem:[#allocation18 + $0xc60] sm:$0xff] }
 0x6e9   :  { %v9818_v21 = vcombine.low %v5359_v58, %v5363_v26  ;;  %v5399_v25 = vld [vmem:[#allocation18 + $0xd80] sm:$0xff] }
 0x6ea   :  { %8188 = vmatpush1.bf16.msra.mxu0 %v9778_v29  ;;  %v9819_v29 = vcombine.high %v5359_v58, %v5363_v26  ;;  %v5403_v53 = vld [vmem:[#allocation18 + $0xda0] sm:$0xff] }
 0x6eb   :  { %8352 = vmatpush1.bf16.msra.mxu1 %v9780_v30  ;;  %8189 = vmatprep.subr.bf16.mxu0 %v9787_v8  ;;  %v5367_v30 = vld [vmem:[#allocation18 + $0xc80] sm:$0xff]  ;;  %v9859_v58 = vcombine.high %v5399_v25, %v5403_v53 }
 0x6ec   :  { %v9956_v33 = vpop.f32.mrb[8].mxu0  ;;  %v9978_v46 = vpop.f32.mrb[8].mxu1  ;;  %8353 = vmatprep.subr.bf16.mxu1 %v9789_v18  ;;  %v5371_v8 = vld [vmem:[#allocation18 + $0xca0] sm:$0xff]  ;;  %v9821_v18 = vcombine.high %v5360_v62, %v5364_v27 }
 0x6ed   :  { %v9957_v37 = vpop.f32.mrb[9].mxu0  ;;  %v9979_v17 = vpop.f32.mrb[9].mxu1  ;;  %v9826_v49 = vcombine.low %v5367_v30, %v5371_v8  ;;  %v5407_v27 = vld [vmem:[#allocation18 + $0xdc0] sm:$0xff] }
 0x6ee   :  { %v9958_v41 = vadd.f32 %v9957_v37, %v9956_v33  ;;  %v9980_v42 = vadd.f32 %v9979_v17, %v9978_v46  ;;  %8190 = vmatpush1.bf16.msra.mxu0 %v9786_v51  ;;  %v9959_v43 = vpop.f32.mrb[10].mxu0  ;;  %v9981_v45 = vpop.f32.mrb[10].mxu1  ;;  %v9827_v51 = vcombine.high %v5367_v30, %v5371_v8  ;;  %v5379_v33 = vld [vmem:[#allocation18 + $0xce0] sm:$0xff]  ;;  %v5376_v46 = vld [vmem:[#allocation18 + $0xcc8] sm:$0xff] }
 0x6ef   :  { %8354 = vmatpush1.bf16.msra.mxu1 %v9788_v10  ;;  %v9960_v44 = vpop.f32.mrb[11].mxu0  ;;  %v9982_v60 = vpop.f32.mrb[11].mxu1  ;;  %8191 = vmatprep.subr.bf16.mxu0 %v9795_v38  ;;  %v9829_v10 = vcombine.high %v5368_v22, %v5372_v3  ;;  %v5375_v38 = vld [vmem:[#allocation18 + $0xcc0] sm:$0xff]  ;;  %v5408_v8 = vld [vmem:[#allocation18 + $0xdc8] sm:$0xff] }
 0x6f0   :  { %v4842_v56 = vadd.f32 %v9958_v41, %v9361_v59  ;;  %8355 = vmatprep.subr.bf16.mxu1 %v9797_v35  ;;  %v5380_v35 = vld [vmem:[#allocation18 + $0xce8] sm:$0xff]  ;;  %v9835_v59 = vcombine.high %v5375_v38, %v5379_v33  ;;  %v5383_v17 = vld [vmem:[#allocation18 + $0xd00] sm:$0xff] }
 0x6f1   :  { %v9837_v37 = vcombine.high %v5376_v46, %v5380_v35  ;;  %v5388_v41 = vld [vmem:[#allocation18 + $0xd28] sm:$0xff]  ;;  %v9836_v43 = vcombine.low %v5376_v46, %v5380_v35  ;;  %v9843_v45 = vcombine.high %v5383_v17, %v5387_v34  ;;  %v5391_v44 = vld [vmem:[#allocation18 + $0xd40] sm:$0xff] }
 0x6f2   :  { %v11144_v4 = vadd.f32 %v9980_v42, %v4842_v56  ;;  %8192 = vmatpush1.bf16.msra.mxu0 %v9794_v52  ;;  %v9834_v42 = vcombine.low %v5375_v38, %v5379_v33  ;;  %v9845_v52 = vcombine.high %v5384_v48, %v5388_v41  ;;  %v5395_v60 = vld [vmem:[#allocation18 + $0xd60] sm:$0xff]  ;;  %v9842_v56 = vcombine.low %v5383_v17, %v5387_v34  ;;  %v5420_v17 = vld [vmem:[#allocation18 + $0xe28] sm:$0xff] }
 0x6f3   :  { %8356 = vmatpush1.bf16.msra.mxu1 %v9796_v14  ;;  %8193 = vmatprep.subr.bf16.mxu0 %v9803_v16  ;;  %v5392_v14 = vld [vmem:[#allocation18 + $0xd48] sm:$0xff]  ;;  %v9851_v20 = vcombine.high %v5391_v44, %v5395_v60 }
 0x6f4   :  { %8357 = vmatprep.subr.bf16.mxu1 %v9805_v28  ;;  %v5396_v16 = vld [vmem:[#allocation18 + $0xd68] sm:$0xff]  ;;  %v9844_v28 = vcombine.low %v5384_v48, %v5388_v41 }
 0x6f5   :  { %v9853_v23 = vcombine.high %v5392_v14, %v5396_v16 }
 0x6f6   :  { %8194 = vmatpush1.bf16.msra.mxu0 %v9802_v2  ;;  %v5400_v2 = vld [vmem:[#allocation18 + $0xd88] sm:$0xff] }
 0x6f7   :  { %8358 = vmatpush1.bf16.msra.mxu1 %v9804_v5  ;;  %8204 = vmatprep.subr.bf16.mxu0 %v9811_v1  ;;  %v5404_v5 = vld [vmem:[#allocation18 + $0xda8] sm:$0xff]  ;;  %v9850_v1 = vcombine.low %v5391_v44, %v5395_v60 }
 0x6f8   :  { %8368 = vmatprep.subr.bf16.mxu1 %v9813_v57  ;;  %v9852_v57 = vcombine.low %v5392_v14, %v5396_v16  ;;  %v9861_v62 = vcombine.high %v5400_v2, %v5404_v5  ;;  %v9860_v33 = vcombine.low %v5400_v2, %v5404_v5  ;;  %v5424_v44 = vld [vmem:[#allocation18 + $0xe48] sm:$0xff] }
 0x6f9   :  { %8196 = vmatmul.mubr.bf16.vlgmr.msra.gmra.mrb[16].mxu0 %v11128_v47 }
 0x6fa   :  { %8360 = vmatmul.mubr.bf16.vlgmr.msra.gmra.mrb[16].mxu1 %v11128_v47  ;;  %8205 = vmatpush1.bf16.msra.mxu0 %v9810_v19 }
 0x6fb   :  { %8236 = vmatprep.mubr.bf16.mxu0 %v11112_v54  ;;  %8369 = vmatpush1.bf16.msra.mxu1 %v9812_v13  ;;  %v5411_v13 = vld [vmem:[#allocation18 + $0xde0] sm:$0xff] }
 0x6fc   :  { %8400 = vmatprep.mubr.bf16.mxu1 %v11112_v54  ;;  %8206 = vmatprep.subr.bf16.mxu0 %v9819_v29  ;;  %v9867_v46 = vcombine.high %v5407_v27, %v5411_v13  ;;  %v9866_v48 = vcombine.low %v5407_v27, %v5411_v13 }
 0x6fd   :  { %8370 = vmatprep.subr.bf16.mxu1 %v9821_v18  ;;  %v5412_v18 = vld [vmem:[#allocation18 + $0xde8] sm:$0xff] }
 0x6fe   :  { %8207 = vmatpush1.bf16.msra.mxu0 %v9818_v21  ;;  %v9868_v41 = vcombine.low %v5408_v8, %v5412_v18 }
 0x6ff   :  { %8371 = vmatpush1.bf16.msra.mxu1 %v9820_v31  ;;  %8208 = vmatprep.subr.bf16.mxu0 %v9827_v51  ;;  %v9858_v51 = vcombine.low %v5399_v25, %v5403_v53  ;;  %v5436_v25 = vld [vmem:[#allocation18 + $0xea8] sm:$0xff] }
 0x700   :  { %8372 = vmatprep.subr.bf16.mxu1 %v9829_v10 }
 0x702   :  { %8209 = vmatpush1.bf16.msra.mxu0 %v9826_v49  ;;  %v9869_v49 = vcombine.high %v5408_v8, %v5412_v18  ;;  %v5451_v8 = vld [vmem:[#allocation18 + $0xf20] sm:$0xff]  ;;  %v5448_v18 = vld [vmem:[#allocation18 + $0xf08] sm:$0xff] }
 0x703   :  { %8373 = vmatpush1.bf16.msra.mxu1 %v9828_v36  ;;  %8210 = vmatprep.subr.bf16.mxu0 %v9835_v59  ;;  %v5415_v36 = vld [vmem:[#allocation18 + $0xe00] sm:$0xff] }
 0x704   :  { %8374 = vmatprep.subr.bf16.mxu1 %v9837_v37  ;;  %v5419_v59 = vld [vmem:[#allocation18 + $0xe20] sm:$0xff]  ;;  %v5416_v37 = vld [vmem:[#allocation18 + $0xe08] sm:$0xff] }
 0x705   :  { %v9874_v60 = vcombine.low %v5415_v36, %v5419_v59  ;;  %v9876_v14 = vcombine.low %v5416_v37, %v5420_v17 }
 0x706   :  { %8211 = vmatpush1.bf16.msra.mxu0 %v9834_v42  ;;  %v9875_v42 = vcombine.high %v5415_v36, %v5419_v59 }
 0x707   :  { %8375 = vmatpush1.bf16.msra.mxu1 %v9836_v43  ;;  %8212 = vmatprep.subr.bf16.mxu0 %v9843_v45  ;;  %v9877_v43 = vcombine.high %v5416_v37, %v5420_v17  ;;  %v5423_v45 = vld [vmem:[#allocation18 + $0xe40] sm:$0xff] }
 0x708   :  { %8376 = vmatprep.subr.bf16.mxu1 %v9845_v52  ;;  %v5427_v52 = vld [vmem:[#allocation18 + $0xe60] sm:$0xff] }
 0x709   :  { %v9883_v16 = vcombine.high %v5423_v45, %v5427_v52  ;;  %v9882_v53 = vcombine.low %v5423_v45, %v5427_v52  ;;  %v5463_v37 = vld [vmem:[#allocation18 + $0xf80] sm:$0xff] }
 0x70a   :  { %8213 = vmatpush1.bf16.msra.mxu0 %v9842_v56  ;;  %v5467_v17 = vld [vmem:[#allocation18 + $0xfa0] sm:$0xff] }
 0x70b   :  { %8377 = vmatpush1.bf16.msra.mxu1 %v9844_v28  ;;  %8214 = vmatprep.subr.bf16.mxu0 %v9851_v20  ;;  %v5431_v28 = vld [vmem:[#allocation18 + $0xe80] sm:$0xff]  ;;  %v9923_v45 = vcombine.high %v5463_v37, %v5467_v17 }
 0x70c   :  { %v10000_v26 = vpop.f32.mrb[12].mxu0  ;;  %v10022_v19 = vpop.f32.mrb[12].mxu1  ;;  %8378 = vmatprep.subr.bf16.mxu1 %v9853_v23  ;;  %v5435_v20 = vld [vmem:[#allocation18 + $0xea0] sm:$0xff]  ;;  %v5432_v23 = vld [vmem:[#allocation18 + $0xe88] sm:$0xff] }
 0x70d   :  { %v10001_v29 = vpop.f32.mrb[13].mxu0  ;;  %v10023_v30 = vpop.f32.mrb[13].mxu1  ;;  %v9891_v5 = vcombine.high %v5431_v28, %v5435_v20  ;;  %v9892_v27 = vcombine.low %v5432_v23, %v5436_v25 }
 0x70e   :  { %v10002_v22 = vadd.f32 %v10001_v29, %v10000_v26  ;;  %v10024_v3 = vadd.f32 %v10023_v30, %v10022_v19  ;;  %v10003_v21 = vpop.f32.mrb[14].mxu0  ;;  %v10025_v31 = vpop.f32.mrb[14].mxu1  ;;  %8215 = vmatpush1.bf16.msra.mxu0 %v9850_v1  ;;  %v9893_v1 = vcombine.high %v5432_v23, %v5436_v25  ;;  %v5440_v26 = vld [vmem:[#allocation18 + $0xec8] sm:$0xff]  ;;  %v5447_v30 = vld [vmem:[#allocation18 + $0xf00] sm:$0xff]  ;;  %v4969_v23 = vld [vmem:[#allocation18 + $0x10] sm:$0xff] }
 0x70f   :  { %8379 = vmatpush1.bf16.msra.mxu1 %v9852_v57  ;;  %v10004_v10 = vpop.f32.mrb[15].mxu0  ;;  %v10026_v38 = vpop.f32.mrb[15].mxu1  ;;  %8216 = vmatprep.subr.bf16.mxu0 %v9859_v58  ;;  %v5439_v57 = vld [vmem:[#allocation18 + $0xec0] sm:$0xff]  ;;  %v5444_v19 = vld [vmem:[#allocation18 + $0xee8] sm:$0xff]  ;;  %v9907_v31 = vcombine.high %v5447_v30, %v5451_v8  ;;  %v4973_v25 = vld [vmem:[#allocation18 + $0x30] sm:$0xff] }
 0x710   :  { %v4922_v35 = vadd.f32 %v10002_v22, %v11144_v4  ;;  %8380 = vmatprep.subr.bf16.mxu1 %v9861_v62  ;;  %v5428_v4 = vld [vmem:[#allocation18 + $0xe68] sm:$0xff]  ;;  %v5443_v58 = vld [vmem:[#allocation18 + $0xee0] sm:$0xff]  ;;  %v9890_v62 = vcombine.low %v5431_v28, %v5435_v20  ;;  %v9901_v29 = vcombine.high %v5440_v26, %v5444_v19  ;;  %v9900_v21 = vcombine.low %v5440_v26, %v5444_v19  ;;  %v4977_v26 = vld [vmem:[#allocation18 + $0x50] sm:$0xff] }
 0x711   :  { %v9885_v56 = vcombine.high %v5424_v44, %v5428_v4  ;;  %v9884_v2 = vcombine.low %v5424_v44, %v5428_v4  ;;  %v9899_v13 = vcombine.high %v5439_v57, %v5443_v58  ;;  %v5452_v22 = vld [vmem:[#allocation18 + $0xf28] sm:$0xff]  ;;  %v5455_v10 = vld [vmem:[#allocation18 + $0xf40] sm:$0xff]  ;;  %v4981_v19 = vld [vmem:[#allocation18 + $0x70] sm:$0xff] }
 0x712   :  { %v11151_v34 = vadd.f32 %v10024_v3, %v4922_v35  ;;  %8217 = vmatpush1.bf16.msra.mxu0 %v9858_v51  ;;  %v9898_v3 = vcombine.low %v5439_v57, %v5443_v58  ;;  %v9909_v51 = vcombine.high %v5448_v18, %v5452_v22  ;;  %v5459_v38 = vld [vmem:[#allocation18 + $0xf60] sm:$0xff]  ;;  %v9906_v35 = vcombine.low %v5447_v30, %v5451_v8  ;;  %v4985_v8 = vld [vmem:[#allocation18 + $0x90] sm:$0xff] }
 0x713   :  { %8381 = vmatpush1.bf16.msra.mxu1 %v9860_v33  ;;  %8218 = vmatprep.subr.bf16.mxu0 %v9867_v46  ;;  %v5456_v33 = vld [vmem:[#allocation18 + $0xf48] sm:$0xff]  ;;  %v9915_v36 = vcombine.high %v5455_v10, %v5459_v38  ;;  %v5471_v44 = vld [vmem:[#allocation18 + $0xfc0] sm:$0xff]  ;;  %v9431_v57 = vcombine.high %v4969_v23, %v4973_v25  ;;  %v9439_v30 = vcombine.high %v4977_v26, %v4981_v19 }
 0x714   :  { %8382 = vmatprep.subr.bf16.mxu1 %v9869_v49  ;;  %v5460_v46 = vld [vmem:[#allocation18 + $0xf68] sm:$0xff]  ;;  %v9908_v49 = vcombine.low %v5448_v18, %v5452_v22  ;;  %v5475_v4 = vld [vmem:[#allocation18 + $0xfe0] sm:$0xff]  ;;  %v4989_v18 = vld [vmem:[#allocation18 + $0xb0] sm:$0xff] }
 0x715   :  { %v9917_v59 = vcombine.high %v5456_v33, %v5460_v46  ;;  %v9931_v28 = vcombine.high %v5471_v44, %v5475_v4 }
 0x716   :  { %8219 = vmatpush1.bf16.msra.mxu0 %v9866_v48  ;;  %v5464_v48 = vld [vmem:[#allocation18 + $0xf88] sm:$0xff] }
 0x717   :  { %8383 = vmatpush1.bf16.msra.mxu1 %v9868_v41  ;;  %8220 = vmatprep.subr.bf16.mxu0 %v9875_v42  ;;  %v5468_v41 = vld [vmem:[#allocation18 + $0xfa8] sm:$0xff]  ;;  %v9914_v42 = vcombine.low %v5455_v10, %v5459_v38  ;;  %v9447_v10 = vcombine.high %v4985_v8, %v4989_v18 }
 0x718   :  { %8384 = vmatprep.subr.bf16.mxu1 %v9877_v43  ;;  %v9916_v43 = vcombine.low %v5456_v33, %v5460_v46  ;;  %v9925_v52 = vcombine.high %v5464_v48, %v5468_v41  ;;  %v4993_v33 = vld [vmem:[#allocation18 + $0xd0] sm:$0xff] }
 0x719   :  { %v4997_v46 = vld [vmem:[#allocation18 + $0xf0] sm:$0xff] }
 0x71a   :  { %8221 = vmatpush1.bf16.msra.mxu0 %v9874_v60  ;;  %v5472_v60 = vld [vmem:[#allocation18 + $0xfc8] sm:$0xff] }
 0x71b   :  { %8385 = vmatpush1.bf16.msra.mxu1 %v9876_v14  ;;  %8222 = vmatprep.subr.bf16.mxu0 %v9883_v16  ;;  %v5476_v14 = vld [vmem:[#allocation18 + $0xfe8] sm:$0xff]  ;;  %v9922_v16 = vcombine.low %v5463_v37, %v5467_v17  ;;  %v9455_v37 = vcombine.high %v4993_v33, %v4997_v46 }
 0x71c   :  { %8386 = vmatprep.subr.bf16.mxu1 %v9885_v56  ;;  %v9924_v56 = vcombine.low %v5464_v48, %v5468_v41  ;;  %v9933_v20 = vcombine.high %v5472_v60, %v5476_v14  ;;  %v5001_v48 = vld [vmem:[#allocation18 + $0x110] sm:$0xff] }
 0x71d   :  { %v5005_v41 = vld [vmem:[#allocation18 + $0x130] sm:$0xff] }
 0x71e   :  { %8223 = vmatpush1.bf16.msra.mxu0 %v9882_v53  ;;  %v4970_v53 = vld [vmem:[#allocation18 + $0x18] sm:$0xff] }
 0x71f   :  { %8387 = vmatpush1.bf16.msra.mxu1 %v9884_v2  ;;  %8224 = vmatprep.subr.bf16.mxu0 %v9891_v5  ;;  %v4974_v2 = vld [vmem:[#allocation18 + $0x38] sm:$0xff]  ;;  %v9930_v5 = vcombine.low %v5471_v44, %v5475_v4  ;;  %v5009_v4 = vld [vmem:[#allocation18 + $0x150] sm:$0xff] }
 0x720   :  { %8388 = vmatprep.subr.bf16.mxu1 %v9893_v1  ;;  %v9932_v1 = vcombine.low %v5472_v60, %v5476_v14  ;;  %v9433_v58 = vcombine.high %v4970_v53, %v4974_v2  ;;  %v5013_v60 = vld [vmem:[#allocation18 + $0x170] sm:$0xff]  ;;  %v5010_v14 = vld [vmem:[#allocation18 + $0x158] sm:$0xff] }
 0x722   :  { %8225 = vmatpush1.bf16.msra.mxu0 %v9890_v62  ;;  %v9430_v62 = vcombine.low %v4969_v23, %v4973_v25  ;;  %v5017_v25 = vld [vmem:[#allocation18 + $0x190] sm:$0xff] }
 0x723   :  { %8389 = vmatpush1.bf16.msra.mxu1 %v9892_v27  ;;  %8226 = vmatprep.subr.bf16.mxu0 %v9899_v13  ;;  %v4978_v27 = vld [vmem:[#allocation18 + $0x58] sm:$0xff] }
 0x724   :  { %8390 = vmatprep.subr.bf16.mxu1 %v9901_v29  ;;  %v4982_v13 = vld [vmem:[#allocation18 + $0x78] sm:$0xff]  ;;  %v9432_v29 = vcombine.low %v4970_v53, %v4974_v2  ;;  %v5021_v53 = vld [vmem:[#allocation18 + $0x1b0] sm:$0xff] }
 0x725   :  { %v9441_v22 = vcombine.high %v4978_v27, %v4982_v13  ;;  %v5018_v2 = vld [vmem:[#allocation18 + $0x198] sm:$0xff] }
 0x726   :  { %8227 = vmatpush1.bf16.msra.mxu0 %v9898_v3  ;;  %v4986_v3 = vld [vmem:[#allocation18 + $0x98] sm:$0xff] }
 0x727   :  { %8391 = vmatpush1.bf16.msra.mxu1 %v9900_v21  ;;  %8228 = vmatprep.subr.bf16.mxu0 %v9907_v31  ;;  %v4990_v21 = vld [vmem:[#allocation18 + $0xb8] sm:$0xff]  ;;  %v9438_v31 = vcombine.low %v4977_v26, %v4981_v19  ;;  %v5025_v19 = vld [vmem:[#allocation18 + $0x1d0] sm:$0xff] }
 0x728   :  { %8392 = vmatprep.subr.bf16.mxu1 %v9909_v51  ;;  %v9440_v51 = vcombine.low %v4978_v27, %v4982_v13  ;;  %v9449_v38 = vcombine.high %v4986_v3, %v4990_v21  ;;  %v5026_v27 = vld [vmem:[#allocation18 + $0x1d8] sm:$0xff] }
 0x729   :  { %v5030_v13 = vld [vmem:[#allocation18 + $0x1f8] sm:$0xff] }
 0x72a   :  { %8229 = vmatpush1.bf16.msra.mxu0 %v9906_v35  ;;  %v4994_v35 = vld [vmem:[#allocation18 + $0xd8] sm:$0xff] }
 0x72b   :  { %8393 = vmatpush1.bf16.msra.mxu1 %v9908_v49  ;;  %8230 = vmatprep.subr.bf16.mxu0 %v9915_v36  ;;  %v4998_v49 = vld [vmem:[#allocation18 + $0xf8] sm:$0xff]  ;;  %v9446_v36 = vcombine.low %v4985_v8, %v4989_v18  ;;  %v9489_v18 = vcombine.high %v5026_v27, %v5030_v13 }
 0x72c   :  { %8394 = vmatprep.subr.bf16.mxu1 %v9917_v59  ;;  %v9448_v59 = vcombine.low %v4986_v3, %v4990_v21  ;;  %v9457_v17 = vcombine.high %v4994_v35, %v4998_v49  ;;  %v5037_v3 = vld [vmem:[#allocation18 + $0x230] sm:$0xff]  ;;  %v5034_v21 = vld [vmem:[#allocation18 + $0x218] sm:$0xff] }
 0x72e   :  { %8231 = vmatpush1.bf16.msra.mxu0 %v9914_v42  ;;  %v5002_v42 = vld [vmem:[#allocation18 + $0x118] sm:$0xff] }
 0x72f   :  { %8395 = vmatpush1.bf16.msra.mxu1 %v9916_v43  ;;  %8232 = vmatprep.subr.bf16.mxu0 %v9923_v45  ;;  %v5006_v43 = vld [vmem:[#allocation18 + $0x138] sm:$0xff]  ;;  %v9456_v45 = vcombine.low %v4994_v35, %v4998_v49  ;;  %v5045_v35 = vld [vmem:[#allocation18 + $0x270] sm:$0xff] }
 0x730   :  { %8396 = vmatprep.subr.bf16.mxu1 %v9925_v52  ;;  %v9463_v52 = vcombine.high %v5001_v48, %v5005_v41  ;;  %v9465_v44 = vcombine.high %v5002_v42, %v5006_v43  ;;  %v5042_v49 = vld [vmem:[#allocation18 + $0x258] sm:$0xff] }
 0x732   :  { %8233 = vmatpush1.bf16.msra.mxu0 %v9922_v16  ;;  %v5014_v16 = vld [vmem:[#allocation18 + $0x178] sm:$0xff] }
 0x733   :  { %8397 = vmatpush1.bf16.msra.mxu1 %v9924_v56  ;;  %8234 = vmatprep.subr.bf16.mxu0 %v9931_v28  ;;  %v9462_v56 = vcombine.low %v5001_v48, %v5005_v41  ;;  %v9464_v28 = vcombine.low %v5002_v42, %v5006_v43  ;;  %v9473_v23 = vcombine.high %v5010_v14, %v5014_v16  ;;  %v5049_v41 = vld [vmem:[#allocation18 + $0x290] sm:$0xff]  ;;  %v5050_v43 = vld [vmem:[#allocation18 + $0x298] sm:$0xff] }
 0x734   :  { %8398 = vmatprep.subr.bf16.mxu1 %v9933_v20  ;;  %v9471_v20 = vcombine.high %v5009_v4, %v5013_v60  ;;  %v5053_v42 = vld [vmem:[#allocation18 + $0x2b0] sm:$0xff] }
 0x736   :  { %8235 = vmatpush1.bf16.msra.mxu0 %v9930_v5  ;;  %v5022_v5 = vld [vmem:[#allocation18 + $0x1b8] sm:$0xff] }
 0x737   :  { %8399 = vmatpush1.bf16.msra.mxu1 %v9932_v1  ;;  %8409 = vmatprep.subr.bf16.mxu0 %v9431_v57  ;;  %v9470_v1 = vcombine.low %v5009_v4, %v5013_v60  ;;  %v9472_v57 = vcombine.low %v5010_v14, %v5014_v16  ;;  %v9481_v26 = vcombine.high %v5018_v2, %v5022_v5  ;;  %v5057_v60 = vld [vmem:[#allocation18 + $0x2d0] sm:$0xff]  ;;  %v5058_v16 = vld [vmem:[#allocation18 + $0x2d8] sm:$0xff] }
 0x738   :  { %8573 = vmatprep.subr.bf16.mxu1 %v9433_v58  ;;  %v9479_v58 = vcombine.high %v5017_v25, %v5021_v53  ;;  %v5061_v14 = vld [vmem:[#allocation18 + $0x2f0] sm:$0xff] }
 0x739   :  { %8237 = vmatmul.mubr.bf16.vlgmr.msra.gmra.mrb[16].mxu0 %v11130_v39 }
 0x73a   :  { %8401 = vmatmul.mubr.bf16.vlgmr.msra.gmra.mrb[16].mxu1 %v11130_v39  ;;  %8410 = vmatpush1.bf16.msra.mxu0 %v9430_v62  ;;  %v5029_v62 = vld [vmem:[#allocation18 + $0x1f0] sm:$0xff] }
 0x73b   :  { %8441 = vmatprep.mubr.bf16.mxu0 %v11098_v6  ;;  %8574 = vmatpush1.bf16.msra.mxu1 %v9432_v29  ;;  %v9478_v29 = vcombine.low %v5017_v25, %v5021_v53  ;;  %v9487_v8 = vcombine.high %v5025_v19, %v5029_v62  ;;  %v5065_v53 = vld [vmem:[#allocation18 + $0x310] sm:$0xff] }
 0x73c   :  { %8605 = vmatprep.mubr.bf16.mxu1 %v11098_v6  ;;  %8411 = vmatprep.subr.bf16.mxu0 %v9439_v30  ;;  %v9454_v6 = vcombine.low %v4993_v33, %v4997_v46  ;;  %v9480_v30 = vcombine.low %v5018_v2, %v5022_v5  ;;  %v5041_v46 = vld [vmem:[#allocation18 + $0x250] sm:$0xff]  ;;  %v5066_v5 = vld [vmem:[#allocation18 + $0x318] sm:$0xff] }
 0x73d   :  { %8575 = vmatprep.subr.bf16.mxu1 %v9441_v22  ;;  %v5033_v22 = vld [vmem:[#allocation18 + $0x210] sm:$0xff] }
 0x73e   :  { %8412 = vmatpush1.bf16.msra.mxu0 %v9438_v31  ;;  %v5038_v31 = vld [vmem:[#allocation18 + $0x238] sm:$0xff]  ;;  %v5069_v2 = vld [vmem:[#allocation18 + $0x330] sm:$0xff] }
 0x73f   :  { %8576 = vmatpush1.bf16.msra.mxu1 %v9440_v51  ;;  %8413 = vmatprep.subr.bf16.mxu0 %v9447_v10  ;;  %v9486_v51 = vcombine.low %v5025_v19, %v5029_v62  ;;  %v9488_v10 = vcombine.low %v5026_v27, %v5030_v13  ;;  %v9497_v33 = vcombine.high %v5034_v21, %v5038_v31  ;;  %v5073_v62 = vld [vmem:[#allocation18 + $0x350] sm:$0xff]  ;;  %v5074_v13 = vld [vmem:[#allocation18 + $0x358] sm:$0xff] }
 0x740   :  { %8577 = vmatprep.subr.bf16.mxu1 %v9449_v38  ;;  %v9495_v38 = vcombine.high %v5033_v22, %v5037_v3  ;;  %v5077_v27 = vld [vmem:[#allocation18 + $0x370] sm:$0xff] }
 0x742   :  { %8414 = vmatpush1.bf16.msra.mxu0 %v9446_v36  ;;  %v5046_v36 = vld [vmem:[#allocation18 + $0x278] sm:$0xff] }
 0x743   :  { %8578 = vmatpush1.bf16.msra.mxu1 %v9448_v59  ;;  %8415 = vmatprep.subr.bf16.mxu0 %v9455_v37  ;;  %v9494_v59 = vcombine.low %v5033_v22, %v5037_v3  ;;  %v9496_v37 = vcombine.low %v5034_v21, %v5038_v31  ;;  %v9505_v48 = vcombine.high %v5042_v49, %v5046_v36  ;;  %v5081_v3 = vld [vmem:[#allocation18 + $0x390] sm:$0xff]  ;;  %v5082_v31 = vld [vmem:[#allocation18 + $0x398] sm:$0xff] }
 0x744   :  { %8579 = vmatprep.subr.bf16.mxu1 %v9457_v17  ;;  %v9503_v17 = vcombine.high %v5041_v46, %v5045_v35  ;;  %v5085_v21 = vld [vmem:[#allocation18 + $0x3b0] sm:$0xff] }
 0x746   :  { %8416 = vmatpush1.bf16.msra.mxu0 %v9454_v6  ;;  %v5054_v6 = vld [vmem:[#allocation18 + $0x2b8] sm:$0xff] }
 0x747   :  { %8580 = vmatpush1.bf16.msra.mxu1 %v9456_v45  ;;  %8417 = vmatprep.subr.bf16.mxu0 %v9463_v52  ;;  %v9502_v45 = vcombine.low %v5041_v46, %v5045_v35  ;;  %v9504_v52 = vcombine.low %v5042_v49, %v5046_v36  ;;  %v9513_v4 = vcombine.high %v5050_v43, %v5054_v6  ;;  %v5089_v35 = vld [vmem:[#allocation18 + $0x3d0] sm:$0xff]  ;;  %v5090_v36 = vld [vmem:[#allocation18 + $0x3d8] sm:$0xff] }
 0x748   :  { %8581 = vmatprep.subr.bf16.mxu1 %v9465_v44  ;;  %v9511_v44 = vcombine.high %v5049_v41, %v5053_v42  ;;  %v5093_v49 = vld [vmem:[#allocation18 + $0x3f0] sm:$0xff] }
 0x74a   :  { %8418 = vmatpush1.bf16.msra.mxu0 %v9462_v56  ;;  %v5062_v56 = vld [vmem:[#allocation18 + $0x2f8] sm:$0xff] }
 0x74b   :  { %8582 = vmatpush1.bf16.msra.mxu1 %v9464_v28  ;;  %8419 = vmatprep.subr.bf16.mxu0 %v9471_v20  ;;  %v9510_v28 = vcombine.low %v5049_v41, %v5053_v42  ;;  %v9512_v20 = vcombine.low %v5050_v43, %v5054_v6  ;;  %v9521_v25 = vcombine.high %v5058_v16, %v5062_v56  ;;  %v5097_v42 = vld [vmem:[#allocation18 + $0x410] sm:$0xff]  ;;  %v5098_v6 = vld [vmem:[#allocation18 + $0x418] sm:$0xff] }
 0x74c   :  { %8583 = vmatprep.subr.bf16.mxu1 %v9473_v23  ;;  %v9519_v23 = vcombine.high %v5057_v60, %v5061_v14  ;;  %v5101_v43 = vld [vmem:[#allocation18 + $0x430] sm:$0xff] }
 0x74e   :  { %8420 = vmatpush1.bf16.msra.mxu0 %v9470_v1  ;;  %v5070_v1 = vld [vmem:[#allocation18 + $0x338] sm:$0xff] }
 0x74f   :  { %8584 = vmatpush1.bf16.msra.mxu1 %v9472_v57  ;;  %8421 = vmatprep.subr.bf16.mxu0 %v9479_v58  ;;  %v9518_v57 = vcombine.low %v5057_v60, %v5061_v14  ;;  %v9520_v58 = vcombine.low %v5058_v16, %v5062_v56  ;;  %v9529_v19 = vcombine.high %v5066_v5, %v5070_v1  ;;  %v5105_v14 = vld [vmem:[#allocation18 + $0x450] sm:$0xff] }
 0x750   :  { %8585 = vmatprep.subr.bf16.mxu1 %v9481_v26  ;;  %v9527_v26 = vcombine.high %v5065_v53, %v5069_v2  ;;  %v5109_v16 = vld [vmem:[#allocation18 + $0x470] sm:$0xff]  ;;  %v9558_v56 = vcombine.low %v5097_v42, %v5101_v43 }
 0x752   :  { %8422 = vmatpush1.bf16.msra.mxu0 %v9478_v29  ;;  %v5078_v29 = vld [vmem:[#allocation18 + $0x378] sm:$0xff] }
 0x753   :  { %8586 = vmatpush1.bf16.msra.mxu1 %v9480_v30  ;;  %8423 = vmatprep.subr.bf16.mxu0 %v9487_v8  ;;  %v9526_v30 = vcombine.low %v5065_v53, %v5069_v2  ;;  %v9528_v8 = vcombine.low %v5066_v5, %v5070_v1  ;;  %v9537_v22 = vcombine.high %v5074_v13, %v5078_v29  ;;  %v5113_v53 = vld [vmem:[#allocation18 + $0x490] sm:$0xff]  ;;  %v5114_v1 = vld [vmem:[#allocation18 + $0x498] sm:$0xff] }
 0x754   :  { %8587 = vmatprep.subr.bf16.mxu1 %v9489_v18  ;;  %v9535_v18 = vcombine.high %v5073_v62, %v5077_v27  ;;  %v5117_v2 = vld [vmem:[#allocation18 + $0x4b0] sm:$0xff] }
 0x756   :  { %8424 = vmatpush1.bf16.msra.mxu0 %v9486_v51  ;;  %v5086_v51 = vld [vmem:[#allocation18 + $0x3b8] sm:$0xff] }
 0x757   :  { %8588 = vmatpush1.bf16.msra.mxu1 %v9488_v10  ;;  %8425 = vmatprep.subr.bf16.mxu0 %v9495_v38  ;;  %v9534_v10 = vcombine.low %v5073_v62, %v5077_v27  ;;  %v9536_v38 = vcombine.low %v5074_v13, %v5078_v29  ;;  %v9545_v46 = vcombine.high %v5082_v31, %v5086_v51  ;;  %v5121_v27 = vld [vmem:[#allocation18 + $0x4d0] sm:$0xff]  ;;  %v5122_v29 = vld [vmem:[#allocation18 + $0x4d8] sm:$0xff] }
 0x758   :  { %8589 = vmatprep.subr.bf16.mxu1 %v9497_v33  ;;  %v9543_v33 = vcombine.high %v5081_v3, %v5085_v21  ;;  %v5125_v13 = vld [vmem:[#allocation18 + $0x4f0] sm:$0xff] }
 0x75a   :  { %8426 = vmatpush1.bf16.msra.mxu0 %v9494_v59  ;;  %v5094_v59 = vld [vmem:[#allocation18 + $0x3f8] sm:$0xff] }
 0x75b   :  { %8590 = vmatpush1.bf16.msra.mxu1 %v9496_v37  ;;  %8427 = vmatprep.subr.bf16.mxu0 %v9503_v17  ;;  %v9542_v37 = vcombine.low %v5081_v3, %v5085_v21  ;;  %v9544_v17 = vcombine.low %v5082_v31, %v5086_v51  ;;  %v9553_v41 = vcombine.high %v5090_v36, %v5094_v59  ;;  %v5129_v3 = vld [vmem:[#allocation18 + $0x510] sm:$0xff]  ;;  %v5130_v31 = vld [vmem:[#allocation18 + $0x518] sm:$0xff] }
 0x75c   :  { %8591 = vmatprep.subr.bf16.mxu1 %v9505_v48  ;;  %v9551_v48 = vcombine.high %v5089_v35, %v5093_v49  ;;  %v5133_v21 = vld [vmem:[#allocation18 + $0x530] sm:$0xff]  ;;  %v5134_v51 = vld [vmem:[#allocation18 + $0x538] sm:$0xff] }
 0x75e   :  { %8428 = vmatpush1.bf16.msra.mxu0 %v9502_v45  ;;  %v5102_v45 = vld [vmem:[#allocation18 + $0x438] sm:$0xff] }
 0x75f   :  { %8592 = vmatpush1.bf16.msra.mxu1 %v9504_v52  ;;  %8429 = vmatprep.subr.bf16.mxu0 %v9511_v44  ;;  %v9550_v52 = vcombine.low %v5089_v35, %v5093_v49  ;;  %v9552_v44 = vcombine.low %v5090_v36, %v5094_v59  ;;  %v9561_v60 = vcombine.high %v5098_v6, %v5102_v45  ;;  %v5141_v35 = vld [vmem:[#allocation18 + $0x570] sm:$0xff]  ;;  %v5138_v49 = vld [vmem:[#allocation18 + $0x558] sm:$0xff] }
 0x760   :  { %8593 = vmatprep.subr.bf16.mxu1 %v9513_v4  ;;  %v9559_v4 = vcombine.high %v5097_v42, %v5101_v43  ;;  %v5142_v36 = vld [vmem:[#allocation18 + $0x578] sm:$0xff]  ;;  %v9590_v59 = vcombine.low %v5129_v3, %v5133_v21  ;;  %v5149_v42 = vld [vmem:[#allocation18 + $0x5b0] sm:$0xff] }
 0x761   :  { %v5146_v43 = vld [vmem:[#allocation18 + $0x598] sm:$0xff] }
 0x762   :  { %8430 = vmatpush1.bf16.msra.mxu0 %v9510_v28  ;;  %v5106_v28 = vld [vmem:[#allocation18 + $0x458] sm:$0xff] }
 0x763   :  { %8594 = vmatpush1.bf16.msra.mxu1 %v9512_v20  ;;  %8431 = vmatprep.subr.bf16.mxu0 %v9519_v23  ;;  %v5110_v20 = vld [vmem:[#allocation18 + $0x478] sm:$0xff]  ;;  %v9560_v23 = vcombine.low %v5098_v6, %v5102_v45 }
 0x764   :  { %8595 = vmatprep.subr.bf16.mxu1 %v9521_v25  ;;  %v9567_v25 = vcombine.high %v5105_v14, %v5109_v16  ;;  %v9569_v5 = vcombine.high %v5106_v28, %v5110_v20  ;;  %v5150_v6 = vld [vmem:[#allocation18 + $0x5b8] sm:$0xff] }
 0x766   :  { %8432 = vmatpush1.bf16.msra.mxu0 %v9518_v57  ;;  %v5118_v57 = vld [vmem:[#allocation18 + $0x4b8] sm:$0xff] }
 0x767   :  { %8596 = vmatpush1.bf16.msra.mxu1 %v9520_v58  ;;  %8433 = vmatprep.subr.bf16.mxu0 %v9527_v26  ;;  %v9566_v58 = vcombine.low %v5105_v14, %v5109_v16  ;;  %v9568_v26 = vcombine.low %v5106_v28, %v5110_v20  ;;  %v9577_v62 = vcombine.high %v5114_v1, %v5118_v57  ;;  %v5157_v14 = vld [vmem:[#allocation18 + $0x5f0] sm:$0xff]  ;;  %v5154_v16 = vld [vmem:[#allocation18 + $0x5d8] sm:$0xff] }
 0x768   :  { %8597 = vmatprep.subr.bf16.mxu1 %v9529_v19  ;;  %v9575_v19 = vcombine.high %v5113_v53, %v5117_v2  ;;  %v9608_v20 = vcombine.low %v5146_v43, %v5150_v6 }
 0x76a   :  { %8434 = vmatpush1.bf16.msra.mxu0 %v9526_v30  ;;  %v5126_v30 = vld [vmem:[#allocation18 + $0x4f8] sm:$0xff] }
 0x76b   :  { %8598 = vmatpush1.bf16.msra.mxu1 %v9528_v8  ;;  %8435 = vmatprep.subr.bf16.mxu0 %v9535_v18  ;;  %v9574_v8 = vcombine.low %v5113_v53, %v5117_v2  ;;  %v9583_v18 = vcombine.high %v5121_v27, %v5125_v13  ;;  %v5161_v53 = vld [vmem:[#allocation18 + $0x610] sm:$0xff] }
 0x76c   :  { %8599 = vmatprep.subr.bf16.mxu1 %v9537_v22  ;;  %v9585_v22 = vcombine.high %v5122_v29, %v5126_v30  ;;  %v5165_v2 = vld [vmem:[#allocation18 + $0x630] sm:$0xff] }
 0x76e   :  { %8436 = vmatpush1.bf16.msra.mxu0 %v9534_v10  ;;  %v9584_v10 = vcombine.low %v5122_v29, %v5126_v30  ;;  %v5174_v29 = vld [vmem:[#allocation18 + $0x678] sm:$0xff]  ;;  %v9622_v30 = vcombine.low %v5161_v53, %v5165_v2 }
 0x76f   :  { %8600 = vmatpush1.bf16.msra.mxu1 %v9536_v38  ;;  %8437 = vmatprep.subr.bf16.mxu0 %v9543_v33  ;;  %v9591_v38 = vcombine.high %v5129_v3, %v5133_v21  ;;  %v9593_v33 = vcombine.high %v5130_v31, %v5134_v51  ;;  %v5181_v3 = vld [vmem:[#allocation18 + $0x6b0] sm:$0xff]  ;;  %v5178_v21 = vld [vmem:[#allocation18 + $0x698] sm:$0xff] }
 0x770   :  { %8601 = vmatprep.subr.bf16.mxu1 %v9545_v46  ;;  %v5137_v46 = vld [vmem:[#allocation18 + $0x550] sm:$0xff] }
 0x771   :  { %v9598_v45 = vcombine.low %v5137_v46, %v5141_v35 }
 0x772   :  { %8438 = vmatpush1.bf16.msra.mxu0 %v9542_v37  ;;  %v9592_v37 = vcombine.low %v5130_v31, %v5134_v51  ;;  %v5182_v31 = vld [vmem:[#allocation18 + $0x6b8] sm:$0xff] }
 0x773   :  { %8602 = vmatpush1.bf16.msra.mxu1 %v9544_v17  ;;  %8439 = vmatprep.subr.bf16.mxu0 %v9551_v48  ;;  %v9599_v17 = vcombine.high %v5137_v46, %v5141_v35  ;;  %v9601_v48 = vcombine.high %v5138_v49, %v5142_v36  ;;  %v5189_v46 = vld [vmem:[#allocation18 + $0x6f0] sm:$0xff]  ;;  %v5186_v35 = vld [vmem:[#allocation18 + $0x6d8] sm:$0xff] }
 0x774   :  { %8603 = vmatprep.subr.bf16.mxu1 %v9553_v41  ;;  %v5145_v41 = vld [vmem:[#allocation18 + $0x590] sm:$0xff] }
 0x775   :  { %v9606_v28 = vcombine.low %v5145_v41, %v5149_v42 }
 0x776   :  { %8440 = vmatpush1.bf16.msra.mxu0 %v9550_v52  ;;  %v9600_v52 = vcombine.low %v5138_v49, %v5142_v36  ;;  %v5190_v49 = vld [vmem:[#allocation18 + $0x6f8] sm:$0xff] }
 0x777   :  { %8604 = vmatpush1.bf16.msra.mxu1 %v9552_v44  ;;  %8450 = vmatprep.subr.bf16.mxu0 %v9559_v4  ;;  %v9607_v44 = vcombine.high %v5145_v41, %v5149_v42  ;;  %v9609_v4 = vcombine.high %v5146_v43, %v5150_v6  ;;  %v5197_v41 = vld [vmem:[#allocation18 + $0x730] sm:$0xff]  ;;  %v5194_v42 = vld [vmem:[#allocation18 + $0x718] sm:$0xff] }
 0x778   :  { %8614 = vmatprep.subr.bf16.mxu1 %v9561_v60  ;;  %v5153_v60 = vld [vmem:[#allocation18 + $0x5d0] sm:$0xff]  ;;  %v5198_v43 = vld [vmem:[#allocation18 + $0x738] sm:$0xff] }
 0x779   :  { %8442 = vmatmul.mubr.bf16.vlgmr.msra.gmra.mrb[20].mxu0 %v11102_v55 }
 0x77a   :  { %8606 = vmatmul.mubr.bf16.vlgmr.msra.gmra.mrb[20].mxu1 %v11102_v55  ;;  %8451 = vmatpush1.bf16.msra.mxu0 %v9558_v56  ;;  %v9576_v55 = vcombine.low %v5114_v1, %v5118_v57  ;;  %v5158_v56 = vld [vmem:[#allocation18 + $0x5f8] sm:$0xff]  ;;  %v9614_v57 = vcombine.low %v5153_v60, %v5157_v14 }
 0x77b   :  { %8482 = vmatprep.mubr.bf16.mxu0 %v11100_v50  ;;  %8615 = vmatpush1.bf16.msra.mxu1 %v9560_v23  ;;  %v9615_v23 = vcombine.high %v5153_v60, %v5157_v14  ;;  %v5166_v1 = vld [vmem:[#allocation18 + $0x638] sm:$0xff]  ;;  %v5205_v60 = vld [vmem:[#allocation18 + $0x770] sm:$0xff] }
 0x77c   :  { %8646 = vmatprep.mubr.bf16.mxu1 %v11100_v50  ;;  %8452 = vmatprep.subr.bf16.mxu0 %v9567_v25  ;;  %v9582_v50 = vcombine.low %v5121_v27, %v5125_v13  ;;  %v9617_v25 = vcombine.high %v5154_v16, %v5158_v56  ;;  %v5173_v27 = vld [vmem:[#allocation18 + $0x670] sm:$0xff]  ;;  %v5170_v13 = vld [vmem:[#allocation18 + $0x658] sm:$0xff] }
 0x77d   :  { %8616 = vmatprep.subr.bf16.mxu1 %v9569_v5  ;;  %v5162_v5 = vld [vmem:[#allocation18 + $0x618] sm:$0xff] }
 0x77e   :  { %8453 = vmatpush1.bf16.msra.mxu0 %v9566_v58  ;;  %v9616_v58 = vcombine.low %v5154_v16, %v5158_v56  ;;  %v5202_v14 = vld [vmem:[#allocation18 + $0x758] sm:$0xff] }
 0x77f   :  { %8617 = vmatpush1.bf16.msra.mxu1 %v9568_v26  ;;  %8454 = vmatprep.subr.bf16.mxu0 %v9575_v19  ;;  %v9623_v26 = vcombine.high %v5161_v53, %v5165_v2  ;;  %v9625_v19 = vcombine.high %v5162_v5, %v5166_v1  ;;  %v5206_v16 = vld [vmem:[#allocation18 + $0x778] sm:$0xff]  ;;  %v5213_v53 = vld [vmem:[#allocation18 + $0x7b0] sm:$0xff] }
 0x780   :  { %8618 = vmatprep.subr.bf16.mxu1 %v9577_v62  ;;  %v5169_v62 = vld [vmem:[#allocation18 + $0x650] sm:$0xff]  ;;  %v5210_v2 = vld [vmem:[#allocation18 + $0x798] sm:$0xff] }
 0x781   :  { %v9630_v51 = vcombine.low %v5169_v62, %v5173_v27 }
 0x782   :  { %8455 = vmatpush1.bf16.msra.mxu0 %v9574_v8  ;;  %v9624_v8 = vcombine.low %v5162_v5, %v5166_v1  ;;  %v5214_v5 = vld [vmem:[#allocation18 + $0x7b8] sm:$0xff] }
 0x783   :  { %8619 = vmatpush1.bf16.msra.mxu1 %v9576_v55  ;;  %8456 = vmatprep.subr.bf16.mxu0 %v9583_v18  ;;  %v9631_v55 = vcombine.high %v5169_v62, %v5173_v27  ;;  %v9633_v18 = vcombine.high %v5170_v13, %v5174_v29  ;;  %v5221_v62 = vld [vmem:[#allocation18 + $0x7f0] sm:$0xff]  ;;  %v5218_v27 = vld [vmem:[#allocation18 + $0x7d8] sm:$0xff] }
 0x784   :  { %8620 = vmatprep.subr.bf16.mxu1 %v9585_v22  ;;  %v5177_v22 = vld [vmem:[#allocation18 + $0x690] sm:$0xff] }
 0x785   :  { %v9638_v36 = vcombine.low %v5177_v22, %v5181_v3 }
 0x786   :  { %8457 = vmatpush1.bf16.msra.mxu0 %v9582_v50  ;;  %v9632_v50 = vcombine.low %v5170_v13, %v5174_v29  ;;  %v5222_v13 = vld [vmem:[#allocation18 + $0x7f8] sm:$0xff] }
 0x787   :  { %8621 = vmatpush1.bf16.msra.mxu1 %v9584_v10  ;;  %8458 = vmatprep.subr.bf16.mxu0 %v9591_v38  ;;  %v9639_v10 = vcombine.high %v5177_v22, %v5181_v3  ;;  %v9641_v38 = vcombine.high %v5178_v21, %v5182_v31  ;;  %v5229_v22 = vld [vmem:[#allocation18 + $0x830] sm:$0xff]  ;;  %v5226_v3 = vld [vmem:[#allocation18 + $0x818] sm:$0xff] }
 0x788   :  { %8622 = vmatprep.subr.bf16.mxu1 %v9593_v33  ;;  %v5185_v33 = vld [vmem:[#allocation18 + $0x6d0] sm:$0xff] }
 0x789   :  { %v9646_v6 = vcombine.low %v5185_v33, %v5189_v46 }
 0x78a   :  { %8459 = vmatpush1.bf16.msra.mxu0 %v9590_v59  ;;  %v9640_v59 = vcombine.low %v5178_v21, %v5182_v31  ;;  %v5230_v21 = vld [vmem:[#allocation18 + $0x838] sm:$0xff] }
 0x78b   :  { %8623 = vmatpush1.bf16.msra.mxu1 %v9592_v37  ;;  %8460 = vmatprep.subr.bf16.mxu0 %v9599_v17  ;;  %v9647_v37 = vcombine.high %v5185_v33, %v5189_v46  ;;  %v9649_v17 = vcombine.high %v5186_v35, %v5190_v49  ;;  %v5237_v33 = vld [vmem:[#allocation18 + $0x870] sm:$0xff] }
 0x78c   :  { %8624 = vmatprep.subr.bf16.mxu1 %v9601_v48  ;;  %v5193_v48 = vld [vmem:[#allocation18 + $0x710] sm:$0xff] }
 0x78d   :  { %v9654_v56 = vcombine.low %v5193_v48, %v5197_v41 }
 0x78e   :  { %8461 = vmatpush1.bf16.msra.mxu0 %v9598_v45  ;;  %v9648_v45 = vcombine.low %v5186_v35, %v5190_v49  ;;  %v5234_v35 = vld [vmem:[#allocation18 + $0x858] sm:$0xff] }
 0x78f   :  { %8625 = vmatpush1.bf16.msra.mxu1 %v9600_v52  ;;  %8462 = vmatprep.subr.bf16.mxu0 %v9607_v44  ;;  %v9655_v52 = vcombine.high %v5193_v48, %v5197_v41  ;;  %v9657_v44 = vcombine.high %v5194_v42, %v5198_v43  ;;  %v5238_v49 = vld [vmem:[#allocation18 + $0x878] sm:$0xff] }
 0x790   :  { %8626 = vmatprep.subr.bf16.mxu1 %v9609_v4  ;;  %v5201_v4 = vld [vmem:[#allocation18 + $0x750] sm:$0xff]  ;;  %v9697_v48 = vcombine.high %v5234_v35, %v5238_v49  ;;  %v5242_v41 = vld [vmem:[#allocation18 + $0x898] sm:$0xff] }
 0x791   :  { %v9662_v1 = vcombine.low %v5201_v4, %v5205_v60 }
 0x792   :  { %8463 = vmatpush1.bf16.msra.mxu0 %v9606_v28  ;;  %v9656_v28 = vcombine.low %v5194_v42, %v5198_v43  ;;  %v5246_v42 = vld [vmem:[#allocation18 + $0x8b8] sm:$0xff] }
 0x793   :  { %8627 = vmatpush1.bf16.msra.mxu1 %v9608_v20  ;;  %8464 = vmatprep.subr.bf16.mxu0 %v9615_v23  ;;  %v9663_v20 = vcombine.high %v5201_v4, %v5205_v60  ;;  %v9665_v23 = vcombine.high %v5202_v14, %v5206_v16  ;;  %v5253_v4 = vld [vmem:[#allocation18 + $0x8f0] sm:$0xff]  ;;  %v5250_v60 = vld [vmem:[#allocation18 + $0x8d8] sm:$0xff] }
 0x794   :  { %8628 = vmatprep.subr.bf16.mxu1 %v9617_v25  ;;  %v5209_v25 = vld [vmem:[#allocation18 + $0x790] sm:$0xff] }
 0x795   :  { %v9670_v29 = vcombine.low %v5209_v25, %v5213_v53 }
 0x796   :  { %8465 = vmatpush1.bf16.msra.mxu0 %v9614_v57  ;;  %v9664_v57 = vcombine.low %v5202_v14, %v5206_v16  ;;  %v5254_v14 = vld [vmem:[#allocation18 + $0x8f8] sm:$0xff] }
 0x797   :  { %8629 = vmatpush1.bf16.msra.mxu1 %v9616_v58  ;;  %8466 = vmatprep.subr.bf16.mxu0 %v9623_v26  ;;  %v9671_v58 = vcombine.high %v5209_v25, %v5213_v53  ;;  %v9673_v26 = vcombine.high %v5210_v2, %v5214_v5  ;;  %v5258_v25 = vld [vmem:[#allocation18 + $0x918] sm:$0xff] }
 0x798   :  { %8630 = vmatprep.subr.bf16.mxu1 %v9625_v19  ;;  %v5217_v19 = vld [vmem:[#allocation18 + $0x7d0] sm:$0xff]  ;;  %v5262_v53 = vld [vmem:[#allocation18 + $0x938] sm:$0xff] }
 0x799   :  { %v9678_v31 = vcombine.low %v5217_v19, %v5221_v62 }
 0x79a   :  { %8467 = vmatpush1.bf16.msra.mxu0 %v9622_v30  ;;  %v9672_v30 = vcombine.low %v5210_v2, %v5214_v5  ;;  %v9712_v2 = vcombine.low %v5250_v60, %v5254_v14 }
 0x79b   :  { %8631 = vmatpush1.bf16.msra.mxu1 %v9624_v8  ;;  %8468 = vmatprep.subr.bf16.mxu0 %v9631_v55  ;;  %v9679_v8 = vcombine.high %v5217_v19, %v5221_v62  ;;  %v9681_v55 = vcombine.high %v5218_v27, %v5222_v13  ;;  %v5270_v19 = vld [vmem:[#allocation18 + $0x978] sm:$0xff] }
 0x79c   :  { %8632 = vmatprep.subr.bf16.mxu1 %v9633_v18  ;;  %v5225_v18 = vld [vmem:[#allocation18 + $0x810] sm:$0xff] }
 0x79d   :  { %v9686_v46 = vcombine.low %v5225_v18, %v5229_v22 }
 0x79e   :  { %8469 = vmatpush1.bf16.msra.mxu0 %v9630_v51  ;;  %v9680_v51 = vcombine.low %v5218_v27, %v5222_v13  ;;  %v9720_v27 = vcombine.low %v5258_v25, %v5262_v53 }
 0x79f   :  { %8633 = vmatpush1.bf16.msra.mxu1 %v9632_v50  ;;  %8470 = vmatprep.subr.bf16.mxu0 %v9639_v10  ;;  %v9687_v50 = vcombine.high %v5225_v18, %v5229_v22  ;;  %v9689_v10 = vcombine.high %v5226_v3, %v5230_v21  ;;  %v5278_v18 = vld [vmem:[#allocation18 + $0x9b8] sm:$0xff] }
 0x7a0   :  { %8634 = vmatprep.subr.bf16.mxu1 %v9641_v38  ;;  %v5233_v38 = vld [vmem:[#allocation18 + $0x850] sm:$0xff] }
 0x7a1   :  { %v9694_v43 = vcombine.low %v5233_v38, %v5237_v33 }
 0x7a2   :  { %8471 = vmatpush1.bf16.msra.mxu0 %v9638_v36  ;;  %v9688_v36 = vcombine.low %v5226_v3, %v5230_v21 }
 0x7a3   :  { %8635 = vmatpush1.bf16.msra.mxu1 %v9640_v59  ;;  %8472 = vmatprep.subr.bf16.mxu0 %v9647_v37  ;;  %v9695_v59 = vcombine.high %v5233_v38, %v5237_v33  ;;  %v5241_v37 = vld [vmem:[#allocation18 + $0x890] sm:$0xff]  ;;  %v5286_v38 = vld [vmem:[#allocation18 + $0x9f8] sm:$0xff] }
 0x7a4   :  { %8636 = vmatprep.subr.bf16.mxu1 %v9649_v17  ;;  %v5245_v17 = vld [vmem:[#allocation18 + $0x8b0] sm:$0xff] }
 0x7a5   :  { %v9702_v16 = vcombine.low %v5241_v37, %v5245_v17 }
 0x7a6   :  { %8473 = vmatpush1.bf16.msra.mxu0 %v9646_v6  ;;  %v9696_v6 = vcombine.low %v5234_v35, %v5238_v49 }
 0x7a7   :  { %8637 = vmatpush1.bf16.msra.mxu1 %v9648_v45  ;;  %8474 = vmatprep.subr.bf16.mxu0 %v9655_v52  ;;  %v9703_v45 = vcombine.high %v5241_v37, %v5245_v17  ;;  %v9705_v52 = vcombine.high %v5242_v41, %v5246_v42  ;;  %v5290_v37 = vld [vmem:[#allocation18 + $0xa18] sm:$0xff] }
 0x7a8   :  { %8638 = vmatprep.subr.bf16.mxu1 %v9657_v44  ;;  %v5249_v44 = vld [vmem:[#allocation18 + $0x8d0] sm:$0xff]  ;;  %v5294_v17 = vld [vmem:[#allocation18 + $0xa38] sm:$0xff] }
 0x7aa   :  { %8475 = vmatpush1.bf16.msra.mxu0 %v9654_v56  ;;  %v9711_v56 = vcombine.high %v5249_v44, %v5253_v4 }
 0x7ab   :  { %8639 = vmatpush1.bf16.msra.mxu1 %v9656_v28  ;;  %8476 = vmatprep.subr.bf16.mxu0 %v9663_v20  ;;  %v9713_v28 = vcombine.high %v5250_v60, %v5254_v14  ;;  %v5257_v20 = vld [vmem:[#allocation18 + $0x910] sm:$0xff]  ;;  %v9752_v60 = vcombine.low %v5290_v37, %v5294_v17 }
 0x7ac   :  { %8640 = vmatprep.subr.bf16.mxu1 %v9665_v23  ;;  %v5261_v23 = vld [vmem:[#allocation18 + $0x930] sm:$0xff] }
 0x7ad   :  { %v9719_v5 = vcombine.high %v5257_v20, %v5261_v23  ;;  %v9718_v62 = vcombine.low %v5257_v20, %v5261_v23  ;;  %v5310_v20 = vld [vmem:[#allocation18 + $0xab8] sm:$0xff] }
 0x7ae   :  { %8477 = vmatpush1.bf16.msra.mxu0 %v9662_v1  ;;  %v9721_v1 = vcombine.high %v5258_v25, %v5262_v53 }
 0x7af   :  { %8641 = vmatpush1.bf16.msra.mxu1 %v9664_v57  ;;  %8478 = vmatprep.subr.bf16.mxu0 %v9671_v58  ;;  %v5265_v57 = vld [vmem:[#allocation18 + $0x950] sm:$0xff] }
 0x7b0   :  { %8642 = vmatprep.subr.bf16.mxu1 %v9673_v26  ;;  %v5269_v58 = vld [vmem:[#allocation18 + $0x970] sm:$0xff]  ;;  %v5266_v26 = vld [vmem:[#allocation18 + $0x958] sm:$0xff] }
 0x7b1   :  { %v9727_v13 = vcombine.high %v5265_v57, %v5269_v58  ;;  %v9726_v22 = vcombine.low %v5265_v57, %v5269_v58  ;;  %v9728_v3 = vcombine.low %v5266_v26, %v5270_v19  ;;  %v5318_v57 = vld [vmem:[#allocation18 + $0xaf8] sm:$0xff] }
 0x7b2   :  { %8479 = vmatpush1.bf16.msra.mxu0 %v9670_v29  ;;  %v9729_v29 = vcombine.high %v5266_v26, %v5270_v19 }
 0x7b3   :  { %8643 = vmatpush1.bf16.msra.mxu1 %v9672_v30  ;;  %8480 = vmatprep.subr.bf16.mxu0 %v9679_v8  ;;  %v5273_v30 = vld [vmem:[#allocation18 + $0x990] sm:$0xff] }
 0x7b4   :  { %8644 = vmatprep.subr.bf16.mxu1 %v9681_v55  ;;  %v5277_v8 = vld [vmem:[#allocation18 + $0x9b0] sm:$0xff]  ;;  %v5274_v55 = vld [vmem:[#allocation18 + $0x998] sm:$0xff] }
 0x7b5   :  { %v9735_v21 = vcombine.high %v5273_v30, %v5277_v8  ;;  %v9734_v33 = vcombine.low %v5273_v30, %v5277_v8  ;;  %v5326_v30 = vld [vmem:[#allocation18 + $0xb38] sm:$0xff] }
 0x7b6   :  { %8481 = vmatpush1.bf16.msra.mxu0 %v9678_v31  ;;  %v9737_v31 = vcombine.high %v5274_v55, %v5278_v18 }
 0x7b7   :  { %8645 = vmatpush1.bf16.msra.mxu1 %v9680_v51  ;;  %8491 = vmatprep.subr.bf16.mxu0 %v9687_v50  ;;  %v5281_v51 = vld [vmem:[#allocation18 + $0x9d0] sm:$0xff] }
 0x7b8   :  { %8655 = vmatprep.subr.bf16.mxu1 %v9689_v10  ;;  %v5285_v50 = vld [vmem:[#allocation18 + $0x9f0] sm:$0xff]  ;;  %v5282_v10 = vld [vmem:[#allocation18 + $0x9d8] sm:$0xff] }
 0x7b9   :  { %8483 = vmatmul.mubr.bf16.vlgmr.msra.gmra.mrb[20].mxu0 %v11104_v11  ;;  %v9743_v35 = vcombine.high %v5281_v51, %v5285_v50  ;;  %v9745_v49 = vcombine.high %v5282_v10, %v5286_v38 }
 0x7ba   :  { %8647 = vmatmul.mubr.bf16.vlgmr.msra.gmra.mrb[20].mxu1 %v11104_v11  ;;  %8492 = vmatpush1.bf16.msra.mxu0 %v9686_v46  ;;  %v9704_v11 = vcombine.low %v5242_v41, %v5246_v42  ;;  %v9736_v46 = vcombine.low %v5274_v55, %v5278_v18  ;;  %v9744_v41 = vcombine.low %v5282_v10, %v5286_v38 }
 0x7bb   :  { %8523 = vmatprep.mubr.bf16.mxu0 %v11110_v40  ;;  %8656 = vmatpush1.bf16.msra.mxu1 %v9688_v36  ;;  %v5289_v36 = vld [vmem:[#allocation18 + $0xa10] sm:$0xff] }
 0x7bc   :  { %8687 = vmatprep.mubr.bf16.mxu1 %v11110_v40  ;;  %8493 = vmatprep.subr.bf16.mxu0 %v9695_v59  ;;  %v9710_v40 = vcombine.low %v5249_v44, %v5253_v4  ;;  %v5293_v59 = vld [vmem:[#allocation18 + $0xa30] sm:$0xff]  ;;  %v5302_v44 = vld [vmem:[#allocation18 + $0xa78] sm:$0xff] }
 0x7bd   :  { %8657 = vmatprep.subr.bf16.mxu1 %v9697_v48  ;;  %v9742_v48 = vcombine.low %v5281_v51, %v5285_v50  ;;  %v9751_v42 = vcombine.high %v5289_v36, %v5293_v59  ;;  %v9750_v4 = vcombine.low %v5289_v36, %v5293_v59  ;;  %v5334_v51 = vld [vmem:[#allocation18 + $0xb78] sm:$0xff] }
 0x7be   :  { %8494 = vmatpush1.bf16.msra.mxu0 %v9694_v43  ;;  %v9753_v43 = vcombine.high %v5290_v37, %v5294_v17  ;;  %v5342_v36 = vld [vmem:[#allocation18 + $0xbb8] sm:$0xff] }
 0x7bf   :  { %8658 = vmatpush1.bf16.msra.mxu1 %v9696_v6  ;;  %8495 = vmatprep.subr.bf16.mxu0 %v9703_v45  ;;  %v5297_v6 = vld [vmem:[#allocation18 + $0xa50] sm:$0xff] }
 0x7c0   :  { %8659 = vmatprep.subr.bf16.mxu1 %v9705_v52  ;;  %v5301_v45 = vld [vmem:[#allocation18 + $0xa70] sm:$0xff]  ;;  %v5298_v52 = vld [vmem:[#allocation18 + $0xa58] sm:$0xff] }
 0x7c1   :  { %v9759_v14 = vcombine.high %v5297_v6, %v5301_v45  ;;  %v9758_v23 = vcombine.low %v5297_v6, %v5301_v45  ;;  %v9760_v25 = vcombine.low %v5298_v52, %v5302_v44  ;;  %v5350_v6 = vld [vmem:[#allocation18 + $0xbf8] sm:$0xff] }
 0x7c2   :  { %8496 = vmatpush1.bf16.msra.mxu0 %v9702_v16  ;;  %v9761_v16 = vcombine.high %v5298_v52, %v5302_v44 }
 0x7c3   :  { %8660 = vmatpush1.bf16.msra.mxu1 %v9704_v11  ;;  %8497 = vmatprep.subr.bf16.mxu0 %v9711_v56  ;;  %v5305_v11 = vld [vmem:[#allocation18 + $0xa90] sm:$0xff] }
 0x7c4   :  { %8661 = vmatprep.subr.bf16.mxu1 %v9713_v28  ;;  %v5309_v56 = vld [vmem:[#allocation18 + $0xab0] sm:$0xff]  ;;  %v5306_v28 = vld [vmem:[#allocation18 + $0xa98] sm:$0xff] }
 0x7c5   :  { %v9767_v53 = vcombine.high %v5305_v11, %v5309_v56  ;;  %v9766_v58 = vcombine.low %v5305_v11, %v5309_v56  ;;  %v9768_v26 = vcombine.low %v5306_v28, %v5310_v20  ;;  %v5358_v11 = vld [vmem:[#allocation18 + $0xc38] sm:$0xff] }
 0x7c6   :  { %8498 = vmatpush1.bf16.msra.mxu0 %v9710_v40  ;;  %v9769_v40 = vcombine.high %v5306_v28, %v5310_v20 }
 0x7c7   :  { %8662 = vmatpush1.bf16.msra.mxu1 %v9712_v2  ;;  %8499 = vmatprep.subr.bf16.mxu0 %v9719_v5  ;;  %v5313_v2 = vld [vmem:[#allocation18 + $0xad0] sm:$0xff] }
 0x7c8   :  { %8663 = vmatprep.subr.bf16.mxu1 %v9721_v1  ;;  %v5317_v5 = vld [vmem:[#allocation18 + $0xaf0] sm:$0xff]  ;;  %v5314_v1 = vld [vmem:[#allocation18 + $0xad8] sm:$0xff] }
 0x7c9   :  { %v9775_v19 = vcombine.high %v5313_v2, %v5317_v5  ;;  %v9774_v8 = vcombine.low %v5313_v2, %v5317_v5  ;;  %v9776_v55 = vcombine.low %v5314_v1, %v5318_v57  ;;  %v5362_v2 = vld [vmem:[#allocation18 + $0xc58] sm:$0xff] }
 0x7ca   :  { %8500 = vmatpush1.bf16.msra.mxu0 %v9718_v62  ;;  %v9777_v62 = vcombine.high %v5314_v1, %v5318_v57  ;;  %v5366_v5 = vld [vmem:[#allocation18 + $0xc78] sm:$0xff] }
 0x7cb   :  { %8664 = vmatpush1.bf16.msra.mxu1 %v9720_v27  ;;  %8501 = vmatprep.subr.bf16.mxu0 %v9727_v13  ;;  %v5321_v27 = vld [vmem:[#allocation18 + $0xb10] sm:$0xff] }
 0x7cc   :  { %8665 = vmatprep.subr.bf16.mxu1 %v9729_v29  ;;  %v5325_v13 = vld [vmem:[#allocation18 + $0xb30] sm:$0xff]  ;;  %v5322_v29 = vld [vmem:[#allocation18 + $0xb18] sm:$0xff] }
 0x7cd   :  { %v9783_v18 = vcombine.high %v5321_v27, %v5325_v13  ;;  %v9782_v50 = vcombine.low %v5321_v27, %v5325_v13  ;;  %v9784_v10 = vcombine.low %v5322_v29, %v5326_v30  ;;  %v5374_v27 = vld [vmem:[#allocation18 + $0xcb8] sm:$0xff] }
 0x7ce   :  { %8502 = vmatpush1.bf16.msra.mxu0 %v9726_v22  ;;  %v9785_v22 = vcombine.high %v5322_v29, %v5326_v30  ;;  %v9824_v29 = vcombine.low %v5362_v2, %v5366_v5 }
 0x7cf   :  { %8666 = vmatpush1.bf16.msra.mxu1 %v9728_v3  ;;  %8503 = vmatprep.subr.bf16.mxu0 %v9735_v21  ;;  %v5329_v3 = vld [vmem:[#allocation18 + $0xb50] sm:$0xff] }
 0x7d0   :  { %8667 = vmatprep.subr.bf16.mxu1 %v9737_v31  ;;  %v5333_v21 = vld [vmem:[#allocation18 + $0xb70] sm:$0xff]  ;;  %v5330_v31 = vld [vmem:[#allocation18 + $0xb58] sm:$0xff] }
 0x7d1   :  { %v9791_v38 = vcombine.high %v5329_v3, %v5333_v21  ;;  %v9790_v59 = vcombine.low %v5329_v3, %v5333_v21  ;;  %v9792_v37 = vcombine.low %v5330_v31, %v5334_v51  ;;  %v5382_v3 = vld [vmem:[#allocation18 + $0xcf8] sm:$0xff] }
 0x7d2   :  { %8504 = vmatpush1.bf16.msra.mxu0 %v9734_v33  ;;  %v9793_v33 = vcombine.high %v5330_v31, %v5334_v51 }
 0x7d3   :  { %8668 = vmatpush1.bf16.msra.mxu1 %v9736_v46  ;;  %8505 = vmatprep.subr.bf16.mxu0 %v9743_v35  ;;  %v5337_v46 = vld [vmem:[#allocation18 + $0xb90] sm:$0xff] }
 0x7d4   :  { %8669 = vmatprep.subr.bf16.mxu1 %v9745_v49  ;;  %v5341_v35 = vld [vmem:[#allocation18 + $0xbb0] sm:$0xff]  ;;  %v5338_v49 = vld [vmem:[#allocation18 + $0xb98] sm:$0xff] }
 0x7d5   :  { %v9799_v17 = vcombine.high %v5337_v46, %v5341_v35  ;;  %v9798_v45 = vcombine.low %v5337_v46, %v5341_v35  ;;  %v9800_v52 = vcombine.low %v5338_v49, %v5342_v36 }
 0x7d6   :  { %8506 = vmatpush1.bf16.msra.mxu0 %v9742_v48  ;;  %v9801_v48 = vcombine.high %v5338_v49, %v5342_v36  ;;  %v5393_v36 = vld [vmem:[#allocation18 + $0xd50] sm:$0xff] }
 0x7d7   :  { %8670 = vmatpush1.bf16.msra.mxu1 %v9744_v41  ;;  %8507 = vmatprep.subr.bf16.mxu0 %v9751_v42  ;;  %v5345_v41 = vld [vmem:[#allocation18 + $0xbd0] sm:$0xff] }
 0x7d8   :  { %8671 = vmatprep.subr.bf16.mxu1 %v9753_v43  ;;  %v5349_v42 = vld [vmem:[#allocation18 + $0xbf0] sm:$0xff]  ;;  %v5346_v43 = vld [vmem:[#allocation18 + $0xbd8] sm:$0xff] }
 0x7d9   :  { %v9807_v44 = vcombine.high %v5345_v41, %v5349_v42  ;;  %v9806_v56 = vcombine.low %v5345_v41, %v5349_v42  ;;  %v9808_v28 = vcombine.low %v5346_v43, %v5350_v6  ;;  %v11169_v41 = vld [vmem:[#allocation20] sm:$0xff] }
 0x7da   :  { %8508 = vmatpush1.bf16.msra.mxu0 %v9750_v4  ;;  %v9809_v4 = vcombine.high %v5346_v43, %v5350_v6 }
 0x7db   :  { %8672 = vmatpush1.bf16.msra.mxu1 %v9752_v60  ;;  %8509 = vmatprep.subr.bf16.mxu0 %v9759_v14  ;;  %v5353_v60 = vld [vmem:[#allocation18 + $0xc10] sm:$0xff] }
 0x7dc   :  { %8673 = vmatprep.subr.bf16.mxu1 %v9761_v16  ;;  %v5357_v14 = vld [vmem:[#allocation18 + $0xc30] sm:$0xff]  ;;  %v5354_v16 = vld [vmem:[#allocation18 + $0xc18] sm:$0xff] }
 0x7dd   :  { %v9815_v20 = vcombine.high %v5353_v60, %v5357_v14  ;;  %v9816_v1 = vcombine.low %v5354_v16, %v5358_v11 }
 0x7de   :  { %8510 = vmatpush1.bf16.msra.mxu0 %v9758_v23  ;;  %v9817_v23 = vcombine.high %v5354_v16, %v5358_v11  ;;  %v5492_v16 = vrot.slane %v11169_v41, %v10878_v7  ;;  %v5488_v11 = vrot.slane %v11169_v41, %v10870_v63 }
 0x7df   :  { %8674 = vmatpush1.bf16.msra.mxu1 %v9760_v25  ;;  %8511 = vmatprep.subr.bf16.mxu0 %v9767_v53  ;;  %v5361_v25 = vld [vmem:[#allocation18 + $0xc50] sm:$0xff] }
 0x7e0   :  { %8675 = vmatprep.subr.bf16.mxu1 %v9769_v40  ;;  %v5365_v53 = vld [vmem:[#allocation18 + $0xc70] sm:$0xff]  ;;  %v9814_v40 = vcombine.low %v5353_v60, %v5357_v14  ;;  %v5406_v60 = vld [vmem:[#allocation18 + $0xdb8] sm:$0xff]  ;;  %v11173_v14 = vld [vmem:[#allocation21] sm:$0xff] }
 0x7e1   :  { %v9823_v57 = vcombine.high %v5361_v25, %v5365_v53  ;;  %v9822_v13 = vcombine.low %v5361_v25, %v5365_v53 }
 0x7e2   :  { %8512 = vmatpush1.bf16.msra.mxu0 %v9766_v58  ;;  %v5369_v58 = vld [vmem:[#allocation18 + $0xc90] sm:$0xff] }
 0x7e3   :  { %8676 = vmatpush1.bf16.msra.mxu1 %v9768_v26  ;;  %8513 = vmatprep.subr.bf16.mxu0 %v9775_v19  ;;  %v5373_v26 = vld [vmem:[#allocation18 + $0xcb0] sm:$0xff]  ;;  %v9825_v19 = vcombine.high %v5362_v2, %v5366_v5 }
 0x7e4   :  { %8677 = vmatprep.subr.bf16.mxu1 %v9777_v62  ;;  %v5370_v62 = vld [vmem:[#allocation18 + $0xc98] sm:$0xff]  ;;  %v9831_v30 = vcombine.high %v5369_v58, %v5373_v26  ;;  %v9830_v21 = vcombine.low %v5369_v58, %v5373_v26  ;;  %v5413_v2 = vld [vmem:[#allocation18 + $0xdf0] sm:$0xff] }
 0x7e5   :  { %v5410_v26 = vld [vmem:[#allocation18 + $0xdd8] sm:$0xff] }
 0x7e6   :  { %8514 = vmatpush1.bf16.msra.mxu0 %v9774_v8  ;;  %v9833_v8 = vcombine.high %v5370_v62, %v5374_v27 }
 0x7e7   :  { %8678 = vmatpush1.bf16.msra.mxu1 %v9776_v55  ;;  %8515 = vmatprep.subr.bf16.mxu0 %v9783_v18  ;;  %v5377_v55 = vld [vmem:[#allocation18 + $0xcd0] sm:$0xff] }
 0x7e8   :  { %8679 = vmatprep.subr.bf16.mxu1 %v9785_v22  ;;  %v5381_v18 = vld [vmem:[#allocation18 + $0xcf0] sm:$0xff]  ;;  %v5378_v22 = vld [vmem:[#allocation18 + $0xcd8] sm:$0xff] }
 0x7e9   :  { %v9839_v31 = vcombine.high %v5377_v55, %v5381_v18  ;;  %v9841_v51 = vcombine.high %v5378_v22, %v5382_v3  ;;  %v9840_v46 = vcombine.low %v5378_v22, %v5382_v3 }
 0x7ea   :  { %8516 = vmatpush1.bf16.msra.mxu0 %v9782_v50  ;;  %v5385_v50 = vld [vmem:[#allocation18 + $0xd10] sm:$0xff] }
 0x7eb   :  { %8680 = vmatpush1.bf16.msra.mxu1 %v9784_v10  ;;  %8517 = vmatprep.subr.bf16.mxu0 %v9791_v38  ;;  %v5389_v10 = vld [vmem:[#allocation18 + $0xd30] sm:$0xff]  ;;  %v5386_v38 = vld [vmem:[#allocation18 + $0xd18] sm:$0xff] }
 0x7ec   :  { %8681 = vmatprep.subr.bf16.mxu1 %v9793_v33  ;;  %v5390_v33 = vld [vmem:[#allocation18 + $0xd38] sm:$0xff]  ;;  %v9847_v35 = vcombine.high %v5385_v50, %v5389_v10 }
 0x7ed   :  { %v9849_v49 = vcombine.high %v5386_v38, %v5390_v33  ;;  %v9848_v42 = vcombine.low %v5386_v38, %v5390_v33  ;;  %v5421_v38 = vld [vmem:[#allocation18 + $0xe30] sm:$0xff] }
 0x7ee   :  { %8518 = vmatpush1.bf16.msra.mxu0 %v9790_v59  ;;  %v5397_v59 = vld [vmem:[#allocation18 + $0xd70] sm:$0xff] }
 0x7ef   :  { %8682 = vmatpush1.bf16.msra.mxu1 %v9792_v37  ;;  %8519 = vmatprep.subr.bf16.mxu0 %v9799_v17  ;;  %v5394_v37 = vld [vmem:[#allocation18 + $0xd58] sm:$0xff]  ;;  %v9855_v43 = vcombine.high %v5393_v36, %v5397_v59 }
 0x7f0   :  { %8683 = vmatprep.subr.bf16.mxu1 %v9801_v48  ;;  %v5398_v17 = vld [vmem:[#allocation18 + $0xd78] sm:$0xff]  ;;  %v9846_v48 = vcombine.low %v5385_v50, %v5389_v10  ;;  %v5417_v10 = vld [vmem:[#allocation18 + $0xe10] sm:$0xff] }
 0x7f1   :  { %v9857_v6 = vcombine.high %v5394_v37, %v5398_v17 }
 0x7f2   :  { %8520 = vmatpush1.bf16.msra.mxu0 %v9798_v45  ;;  %v5401_v45 = vld [vmem:[#allocation18 + $0xd90] sm:$0xff] }
 0x7f3   :  { %8684 = vmatpush1.bf16.msra.mxu1 %v9800_v52  ;;  %8521 = vmatprep.subr.bf16.mxu0 %v9807_v44  ;;  %v5405_v52 = vld [vmem:[#allocation18 + $0xdb0] sm:$0xff]  ;;  %v5484_v44 = vrot.slane %v11169_v41, %v10872_v0 }
 0x7f4   :  { %8685 = vmatprep.subr.bf16.mxu1 %v9809_v4  ;;  %v5402_v4 = vld [vmem:[#allocation18 + $0xd98] sm:$0xff] }
 0x7f5   :  { %v9865_v53 = vcombine.high %v5402_v4, %v5406_v60 }
 0x7f6   :  { %8522 = vmatpush1.bf16.msra.mxu0 %v9806_v56  ;;  %v9854_v56 = vcombine.low %v5393_v36, %v5397_v59  ;;  %v8762_v36 = vrot.slane %v11173_v14, %v10876_v12 }
 0x7f7   :  { %8686 = vmatpush1.bf16.msra.mxu1 %v9808_v28  ;;  %8532 = vmatprep.subr.bf16.mxu0 %v9815_v20  ;;  %v5496_v28 = vrot.slane %v11169_v41, %v10876_v12  ;;  %v9856_v20 = vcombine.low %v5394_v37, %v5398_v17 }
 0x7f8   :  { %8696 = vmatprep.subr.bf16.mxu1 %v9817_v23  ;;  %v9863_v23 = vcombine.high %v5401_v45, %v5405_v52 }
 0x7f9   :  { %8524 = vmatmul.mubr.bf16.vlgmr.msra.gmra.mrb[20].mxu0 %v11128_v47 }
 0x7fa   :  { %8688 = vmatmul.mubr.bf16.vlgmr.msra.gmra.mrb[20].mxu1 %v11128_v47  ;;  %8533 = vmatpush1.bf16.msra.mxu0 %v9814_v40  ;;  %v9832_v47 = vcombine.low %v5370_v62, %v5374_v27  ;;  %v5409_v40 = vld [vmem:[#allocation18 + $0xdd0] sm:$0xff] }
 0x7fb   :  { %8564 = vmatprep.mubr.bf16.mxu0 %v11112_v54  ;;  %8697 = vmatpush1.bf16.msra.mxu1 %v9816_v1  ;;  %v8750_v1 = vrot.slane %v11173_v14, %v10872_v0  ;;  %v9864_v0 = vcombine.low %v5402_v4, %v5406_v60  ;;  %v9870_v59 = vcombine.low %v5409_v40, %v5413_v2 }
 0x7fc   :  { %8728 = vmatprep.mubr.bf16.mxu1 %v11112_v54  ;;  %8534 = vmatprep.subr.bf16.mxu0 %v9823_v57  ;;  %v9838_v54 = vcombine.low %v5377_v55, %v5381_v18  ;;  %v9878_v60 = vcombine.low %v5417_v10, %v5421_v38 }
 0x7fd   :  { %8698 = vmatprep.subr.bf16.mxu1 %v9825_v19  ;;  %v5414_v19 = vld [vmem:[#allocation18 + $0xdf8] sm:$0xff] }
 0x7fe   :  { %8535 = vmatpush1.bf16.msra.mxu0 %v9822_v13  ;;  %v8754_v13 = vrot.slane %v11173_v14, %v10870_v63  ;;  %v9873_v63 = vcombine.high %v5410_v26, %v5414_v19  ;;  %v9872_v37 = vcombine.low %v5410_v26, %v5414_v19  ;;  %v5446_v26 = vld [vmem:[#allocation18 + $0xef8] sm:$0xff] }
 0x7ff   :  { %8699 = vmatpush1.bf16.msra.mxu1 %v9824_v29  ;;  %8536 = vmatprep.subr.bf16.mxu0 %v9831_v30 }
 0x800   :  { %8700 = vmatprep.subr.bf16.mxu1 %v9833_v8  ;;  %v9862_v8 = vcombine.low %v5401_v45, %v5405_v52  ;;  %v5426_v45 = vld [vmem:[#allocation18 + $0xe58] sm:$0xff] }
 0x801   :  { %v5430_v52 = vld [vmem:[#allocation18 + $0xe78] sm:$0xff] }
 0x802   :  { %8537 = vmatpush1.bf16.msra.mxu0 %v9830_v21  ;;  %v9871_v21 = vcombine.high %v5409_v40, %v5413_v2  ;;  %v9888_v40 = vcombine.low %v5426_v45, %v5430_v52 }
 0x803   :  { %8701 = vmatpush1.bf16.msra.mxu1 %v9832_v47  ;;  %8538 = vmatprep.subr.bf16.mxu0 %v9839_v31  ;;  %v8758_v31 = vrot.slane %v11173_v14, %v10878_v7  ;;  %v9879_v7 = vcombine.high %v5417_v10, %v5421_v38 }
 0x804   :  { %8702 = vmatprep.subr.bf16.mxu1 %v9841_v51 }
 0x806   :  { %8539 = vmatpush1.bf16.msra.mxu0 %v9838_v54  ;;  %v5418_v54 = vld [vmem:[#allocation18 + $0xe18] sm:$0xff] }
 0x807   :  { %8703 = vmatpush1.bf16.msra.mxu1 %v9840_v46  ;;  %8540 = vmatprep.subr.bf16.mxu0 %v9847_v35  ;;  %v5422_v46 = vld [vmem:[#allocation18 + $0xe38] sm:$0xff] }
 0x808   :  { %8704 = vmatprep.subr.bf16.mxu1 %v9849_v49  ;;  %v9880_v12 = vcombine.low %v5418_v54, %v5422_v46 }
 0x80a   :  { %8541 = vmatpush1.bf16.msra.mxu0 %v9846_v48 }
 0x80b   :  { %8705 = vmatpush1.bf16.msra.mxu1 %v9848_v42  ;;  %8542 = vmatprep.subr.bf16.mxu0 %v9855_v43  ;;  %v9881_v42 = vcombine.high %v5418_v54, %v5422_v46  ;;  %v5425_v43 = vld [vmem:[#allocation18 + $0xe50] sm:$0xff]  ;;  %v5466_v46 = vld [vmem:[#allocation18 + $0xf98] sm:$0xff] }
 0x80c   :  { %v8238_v25 = vpop.f32.mrb[16].mxu0  ;;  %8706 = vmatprep.subr.bf16.mxu1 %v9857_v6  ;;  %v5429_v6 = vld [vmem:[#allocation18 + $0xe70] sm:$0xff] }
 0x80d   :  { %v10036_v5 = vadd.f32 %v8238_v25, %v5484_v44  ;;  %v8402_v57 = vpop.f32.mrb[16].mxu1  ;;  %v8240_v58 = vpop.f32.mrb[17].mxu0  ;;  %v5438_v25 = vld [vmem:[#allocation18 + $0xeb8] sm:$0xff]  ;;  %v5469_v54 = vld [vmem:[#allocation18 + $0xfb0] sm:$0xff] }
 0x80e   :  { %v10038_v62 = vadd.f32 %v8402_v57, %v5492_v16  ;;  %v10037_v27 = vadd.f32 %v8240_v58, %v5488_v11  ;;  %v8404_v29 = vpop.f32.mrb[17].mxu1  ;;  %v8242_v30 = vpop.f32.mrb[18].mxu0  ;;  %8543 = vmatpush1.bf16.msra.mxu0 %v9854_v56  ;;  %v9887_v16 = vcombine.high %v5425_v43, %v5429_v6  ;;  %v9889_v56 = vcombine.high %v5426_v45, %v5430_v52  ;;  %v5445_v57 = vld [vmem:[#allocation18 + $0xef0] sm:$0xff]  ;;  %v5442_v58 = vld [vmem:[#allocation18 + $0xed8] sm:$0xff] }
 0x80f   :  { %v8737_v55 = vmax.f32 %v10036_v5, 0.0  ;;  %v10039_v18 = vadd.f32 %v8404_v29, %v5496_v28  ;;  %v8406_v22 = vpop.f32.mrb[18].mxu1  ;;  %8707 = vmatpush1.bf16.msra.mxu1 %v9856_v20  ;;  %v8243_v3 = vpop.f32.mrb[19].mxu0  ;;  %8544 = vmatprep.subr.bf16.mxu0 %v9863_v23  ;;  %v5433_v28 = vld [vmem:[#allocation18 + $0xe90] sm:$0xff]  ;;  %v5434_v23 = vld [vmem:[#allocation18 + $0xe98] sm:$0xff] }
 0x810   :  { %v8739_v47 = vmax.f32 %v10038_v62, 0.0  ;;  %v8738_v51 = vmax.f32 %v10037_v27, 0.0  ;;  %v8407_v50 = vpop.f32.mrb[19].mxu1  ;;  %8708 = vmatprep.subr.bf16.mxu1 %v9865_v53  ;;  %v5437_v20 = vld [vmem:[#allocation18 + $0xeb0] sm:$0xff]  ;;  %v9886_v53 = vcombine.low %v5425_v43, %v5429_v6  ;;  %v9897_v5 = vcombine.high %v5434_v23, %v5438_v25 }
 0x811   :  { %v8787_v33 = vmul.f32 %v8750_v1, %v8737_v55  ;;  %v8740_v49 = vmax.f32 %v10039_v18, 0.0  ;;  %v9895_v2 = vcombine.high %v5433_v28, %v5437_v20  ;;  %v5441_v1 = vld [vmem:[#allocation18 + $0xed0] sm:$0xff]  ;;  %v9894_v19 = vcombine.low %v5433_v28, %v5437_v20  ;;  %v5454_v55 = vld [vmem:[#allocation18 + $0xf38] sm:$0xff] }
 0x812   :  { %v8788_v35 = vmul.f32 %v8754_v13, %v8738_v51  ;;  %8545 = vmatpush1.bf16.msra.mxu0 %v9862_v8  ;;  %v8789_v17 = vmul.f32 %v8758_v31, %v8739_v47  ;;  %v9896_v62 = vcombine.low %v5434_v23, %v5438_v25  ;;  %v9903_v27 = vcombine.high %v5441_v1, %v5445_v57  ;;  %v5449_v29 = vld [vmem:[#allocation18 + $0xf10] sm:$0xff]  ;;  %v5450_v8 = vld [vmem:[#allocation18 + $0xf18] sm:$0xff] }
 0x813   :  { %8709 = vmatpush1.bf16.msra.mxu1 %v9864_v0  ;;  %8546 = vmatprep.subr.bf16.mxu0 %v9871_v21  ;;  %v8790_v44 = vmul.f32 %v8762_v36, %v8740_v49  ;;  %v9905_v13 = vcombine.high %v5442_v58, %v5446_v26  ;;  %v5453_v30 = vld [vmem:[#allocation18 + $0xf30] sm:$0xff]  ;;  %v9902_v18 = vcombine.low %v5441_v1, %v5445_v57  ;;  %v5458_v31 = vld [vmem:[#allocation18 + $0xf58] sm:$0xff] }
 0x814   :  { %v8795_v48 = vadd.f32 %v8788_v35, %v8787_v33  ;;  %8710 = vmatprep.subr.bf16.mxu1 %v9873_v63  ;;  %v9904_v22 = vcombine.low %v5442_v58, %v5446_v26  ;;  %v9911_v3 = vcombine.high %v5449_v29, %v5453_v30  ;;  %v9913_v0 = vcombine.high %v5450_v8, %v5454_v55  ;;  %v5457_v21 = vld [vmem:[#allocation18 + $0xf50] sm:$0xff]  ;;  %v5462_v51 = vld [vmem:[#allocation18 + $0xf78] sm:$0xff] }
 0x815   :  { %v5461_v47 = vld [vmem:[#allocation18 + $0xf70] sm:$0xff]  ;;  %v9910_v50 = vcombine.low %v5449_v29, %v5453_v30  ;;  %v9912_v63 = vcombine.low %v5450_v8, %v5454_v55  ;;  %v9921_v38 = vcombine.high %v5458_v31, %v5462_v51  ;;  %v5470_v35 = vld [vmem:[#allocation18 + $0xfb8] sm:$0xff]  ;;  %v9920_v36 = vcombine.low %v5458_v31, %v5462_v51 }
 0x816   :  { %v8796_v4 = vadd.f32 %v8795_v48, %v8789_v17  ;;  %8547 = vmatpush1.bf16.msra.mxu0 %v9870_v59  ;;  %v9919_v10 = vcombine.high %v5457_v21, %v5461_v47  ;;  %v5465_v33 = vld [vmem:[#allocation18 + $0xf90] sm:$0xff]  ;;  %v9918_v49 = vcombine.low %v5457_v21, %v5461_v47  ;;  %v5474_v48 = vld [vmem:[#allocation18 + $0xfd8] sm:$0xff]  ;;  %v9928_v6 = vcombine.low %v5466_v46, %v5470_v35 }
 0x817   :  { %8711 = vmatpush1.bf16.msra.mxu1 %v9872_v37  ;;  %8548 = vmatprep.subr.bf16.mxu0 %v9879_v7  ;;  %v9927_v59 = vcombine.high %v5465_v33, %v5469_v54  ;;  %v9929_v37 = vcombine.high %v5466_v46, %v5470_v35  ;;  %v5473_v7 = vld [vmem:[#allocation18 + $0xfd0] sm:$0xff]  ;;  %v9926_v43 = vcombine.low %v5465_v33, %v5469_v54  ;;  %v10550_v21 = vmov 0  }
 0x818   :  { %v11189_v11 = vadd.f32 %v8796_v4, %v8790_v44  ;;  %8712 = vmatprep.subr.bf16.mxu1 %v9881_v42  ;;  %v5477_v17 = vld [vmem:[#allocation18 + $0xff0] sm:$0xff]  ;;  %v5478_v42 = vld [vmem:[#allocation18 + $0xff8] sm:$0xff]  ;;  %v8766_v23 = vrot.slane %v11173_v14, %v10888_v15  ;;  %10158 = vset.pattern.permute.xlu1 %v10550_v21 }
 0x819   :  { %v9935_v45 = vcombine.high %v5473_v7, %v5477_v17  ;;  %v9937_v52 = vcombine.high %v5474_v48, %v5478_v42  ;;  %v9934_v44 = vcombine.low %v5473_v7, %v5477_v17  ;;  %v9936_v4 = vcombine.low %v5474_v48, %v5478_v42  ;;  %10159 = vset.pattern.permute.xlu0 %v10550_v21  ;;  %v9938_v47 = vld [vmem:[#allocation2] ss:$0 sm:$0xff] }
 0x81a   :  { %8549 = vmatpush1.bf16.msra.mxu0 %v9878_v60  ;;  %v5500_v60 = vrot.slane %v11169_v41, %v10888_v15  ;;  %v8774_v15 = vrot.slane %v11173_v14, %v10915_v32 }
 0x81b   :  { %8713 = vmatpush1.bf16.msra.mxu1 %v9880_v12  ;;  %8550 = vmatprep.subr.bf16.mxu0 %v9887_v16  ;;  %v5508_v12 = vrot.slane %v11169_v41, %v10915_v32  ;;  %v5504_v16 = vrot.slane %v11169_v41, %v10880_v9 }
 0x81c   :  { %8714 = vmatprep.subr.bf16.mxu1 %v9889_v56  ;;  %v5512_v56 = vrot.slane %v11169_v41, %v10904_v24 }
 0x81e   :  { %8551 = vmatpush1.bf16.msra.mxu0 %v9886_v53 }
 0x81f   :  { %8715 = vmatpush1.bf16.msra.mxu1 %v9888_v40  ;;  %8552 = vmatprep.subr.bf16.mxu0 %v9895_v2  ;;  %v8770_v2 = vrot.slane %v11173_v14, %v10880_v9  ;;  %v8778_v9 = vrot.slane %v11173_v14, %v10904_v24  ;;  %v8819_v24 = vand.u32 127, %v251_v61 }
 0x820   :  { %8716 = vmatprep.subr.bf16.mxu1 %v9897_v5 }
 0x821   :  { %vm8820_vm0 = vcmp.eq.s32.totalorder %v8819_v24, 20 }
 0x822   :  { %8553 = vmatpush1.bf16.msra.mxu0 %v9894_v19 }
 0x823   :  { %8717 = vmatpush1.bf16.msra.mxu1 %v9896_v62  ;;  %8554 = vmatprep.subr.bf16.mxu0 %v9903_v27 }
 0x824   :  { %8718 = vmatprep.subr.bf16.mxu1 %v9905_v13 }
 0x826   :  { %8555 = vmatpush1.bf16.msra.mxu0 %v9902_v18 }
 0x827   :  { %8719 = vmatpush1.bf16.msra.mxu1 %v9904_v22  ;;  %8556 = vmatprep.subr.bf16.mxu0 %v9911_v3 }
 0x828   :  { %8720 = vmatprep.subr.bf16.mxu1 %v9913_v0 }
 0x82a   :  { %8557 = vmatpush1.bf16.msra.mxu0 %v9910_v50 }
 0x82b   :  { %8721 = vmatpush1.bf16.msra.mxu1 %v9912_v63  ;;  %8558 = vmatprep.subr.bf16.mxu0 %v9919_v10 }
 0x82c   :  { %8722 = vmatprep.subr.bf16.mxu1 %v9921_v38 }
 0x82e   :  { %8559 = vmatpush1.bf16.msra.mxu0 %v9918_v49 }
 0x82f   :  { %8723 = vmatpush1.bf16.msra.mxu1 %v9920_v36  ;;  %8560 = vmatprep.subr.bf16.mxu0 %v9927_v59 }
 0x830   :  { %8724 = vmatprep.subr.bf16.mxu1 %v9929_v37 }
 0x832   :  { %8561 = vmatpush1.bf16.msra.mxu0 %v9926_v43 }
 0x833   :  { %8725 = vmatpush1.bf16.msra.mxu1 %v9928_v6  ;;  %8562 = vmatprep.subr.bf16.mxu0 %v9935_v45 }
 0x834   :  { %8726 = vmatprep.subr.bf16.mxu1 %v9937_v52 }
 0x836   :  { %8563 = vmatpush1.bf16.msra.mxu0 %v9934_v44 }
 0x837   :  { %8727 = vmatpush1.bf16.msra.mxu1 %v9936_v4 }
 0x839   :  { %8565 = vmatmul.mubr.bf16.vlgmr.msra.gmra.mrb[20].mxu0 %v11130_v39 }
 0x83a   :  { %8729 = vmatmul.mubr.bf16.vlgmr.msra.gmra.mrb[20].mxu1 %v11130_v39 }
 0x90c   :  { %v8566_v28 = vpop.f32.mrb[20].mxu0 }
 0x90d   :  { %v10040_v20 = vadd.f32 %v8566_v28, %v5500_v60  ;;  %v8730_v25 = vpop.f32.mrb[20].mxu1  ;;  %v8568_v53 = vpop.f32.mrb[21].mxu0 }
 0x90e   :  { %v10042_v39 = vadd.f32 %v8730_v25, %v5508_v12  ;;  %v10041_v40 = vadd.f32 %v8568_v53, %v5504_v16  ;;  %v8732_v5 = vpop.f32.mrb[21].mxu1  ;;  %v8570_v1 = vpop.f32.mrb[22].mxu0 }
 0x90f   :  { %v8741_v57 = vmax.f32 %v10040_v20, 0.0  ;;  %v10043_v58 = vadd.f32 %v8732_v5, %v5512_v56  ;;  %v8734_v26 = vpop.f32.mrb[22].mxu1  ;;  %v8571_v19 = vpop.f32.mrb[23].mxu0 }
 0x910   :  { %v8742_v62 = vmax.f32 %v10041_v40, 0.0  ;;  %v8735_v41 = vpop.f32.mrb[23].mxu1  ;;  %v8743_v13 = vmax.f32 %v10042_v39, 0.0 }
 0x911   :  { %v8791_v27 = vmul.f32 %v8766_v23, %v8741_v57  ;;  %v8744_v8 = vmax.f32 %v10043_v58, 0.0 }
 0x912   :  { %v8792_v29 = vmul.f32 %v8770_v2, %v8742_v62  ;;  %v8793_v55 = vmul.f32 %v8774_v15, %v8743_v13 }
 0x913   :  { %v8798_v30 = vadd.f32 %v11189_v11, %v8791_v27  ;;  %v8794_v22 = vmul.f32 %v8778_v9, %v8744_v8 }
 0x915   :  { %v8799_v18 = vadd.f32 %v8798_v30, %v8792_v29 }
 0x917   :  { %v8800_v3 = vadd.f32 %v8799_v18, %v8793_v55 }
 0x919   :  { %v8801_v0 = vadd.f32 %v8800_v3, %v8794_v22 }
 0x91b   :  { %8802 = vadd.xlane.f32.xlu0 %v8801_v0 }
 0x9a8   :  { %v8803_v31 = vpop.xlane.xlu0 %8802 }
 0x9a9   :  { %v8811_v51 = vadd.f32 %v9938_v47, %v8803_v31 }
 0x9ab   :  { %v9939_v32 = vmul.f32 -1.442695, %v8811_v51 }
 0x9ad   :  { %10228 = vpow2.f32 %v9939_v32 }
 0x9b7   :  { %v10229_v50 = vpop.eup %10228 }
 0x9b8   :  { %v8815_v11 = vadd.f32 1.0, %v10229_v50 }
 0x9ba   :  { %10230 = vrcp.f32 %v8815_v11 }
 0x9c4   :  { %v10231_v63 = vpop.eup %10230 }
 0x9c5   :  { %8823 = vperm.xlu1 %10158, %v10231_v63  }
 0xa44   :  { %v8824_v14 = vpop.permute.xlu1 %8823 }
 0xa45   :  { %v8826_v10 = vsel %vm8820_vm0, %v8824_v14, %v11151_v34 }
 0xa46   :  { %8827 = vst [vmem:[#allocation23] sm:$0xff] %v8826_v10 }
 0xa47   :  { %10507 = shalt.err (!%p10504_p2)
}
 0xa48   :  { %s10508_s27 = scalar_lea.hbm %s11237_s13, 128 }
 0xa49   :  { %p10509_p3 = scmp.ne.s32.totalorder %s11237_s13, %s10508_s27  ;;  %p10512_p4 = scmp.lt.u32.totalorder %s10508_s27, %s11237_s13 }
 0xa4b   :  { %p10514_p5 = pnand %p10512_p4, %p10509_p3 }
 0xa4d   :  { %10517 = shalt.err (!%p10514_p5)
}
 0xa4e   :  { %8837 = dma.vmem_to_hbm [thread:$0]  %s8835_s23, 128, %s11237_s13, [#allocation5]  }
 0xa4f   :  { %10532 = dma.done.wait [#allocation5], 128  }
 0xa50   :  { %10533 = vsyncadd [#allocation5], 4294967168 }
 0xa51   :  { %8841 = vsyncpa [#allocation4], 1 }
 0xa52   :  { %8842 = vsyncpa [#allocation7], 1 }
 0xa53   :  { %8843 = vsyncpa [#allocation10], 1 }
 0xa54   :  { %8844 = vsyncpa [#allocation13], 1 }
 0xa55   :  { %8845 = vsyncpa [#allocation16], 1 }
 0xa56   :  { %8846 = vsyncpa [#allocation19], 1 }
 0xa57   :  { %8847 = vsyncpa [#allocation22], 1 }
 0xa58   :  { %8848 = vsyncpa [#allocation5], 1 }

</bundles_post_ra>
